<compile_context>
chip_gen: v7x
topology: tpu7x:2x2x1
jax: 0.10.0
libtpu: 0.0.40
codegen_flags: <defaults>
</compile_context>

<pallas_src>
import functools

import numpy as np
import jax
import jax.numpy as jnp
from jax import lax
from jax.experimental import pallas as pl
from jax.experimental.pallas import tpu as pltpu


_TAPS = tuple((dy, dx) for dy in range(3) for dx in range(3))


def residual_block_kernel(x_ref, w1_ref, b1_ref, w2_ref, b2_ref, o_ref,
                          pad_in_ref, pad_h_ref, col_ref, *, compute_dtype):
    """One (batch, row-band) step of the ResidualBlock, entirely in VMEM.

    x_ref      : (1, H, W, C)        full input image for this batch element
                                     (block index constant across bands, so it
                                     is DMA'd once per batch; also the residual)
    w1/w2      : (9*C, C)            conv weights in compute_dtype,
                                     rows ordered (ky, kx, c_in)
    b1/b2      : (1, C)              f32 biases
    o_ref      : (1, band, W, C)     output row-band
    pad_in_ref : (band+4, W+2, C)    f32 scratch: zero-padded input window
                                     (image rows r0-2 .. r0+band+1)
    pad_h_ref  : (band+2, W+2, C)    f32 scratch: zero-padded conv1 output
                                     (image rows r0-1 .. r0+band)
    col_ref    : ((band+2)*W, 9*C)   compute_dtype scratch: im2col buffer,
                                     reused by both convolutions
    """
    _, H, W, C = x_ref.shape
    band = o_ref.shape[1]
    nbh = band + 2                       # conv1 output rows (band + 1-row halo)
    f32 = jnp.float32

    j = pl.program_id(1)
    nb = pl.num_programs(1)
    r0 = pl.multiple_of(j * band, band)  # first output row of this band

    # ---- zero-padding bookkeeping --------------------------------------
    # Left/right 1-column strips are never touched by the interior writes
    # below; re-zeroing them each step is a handful of masked stores and is
    # negligible next to the 9x im2col traffic.
    pad_in_ref[:, 0:1, :] = jnp.zeros((band + 4, 1, C), f32)
    pad_in_ref[:, W + 1:W + 2, :] = jnp.zeros((band + 4, 1, C), f32)
    pad_h_ref[:, 0:1, :] = jnp.zeros((nbh, 1, C), f32)
    pad_h_ref[:, W + 1:W + 2, :] = jnp.zeros((nbh, 1, C), f32)

    # Core band rows (always inside the image).
    pad_in_ref[2:2 + band, 1:1 + W, :] = x_ref[0, pl.ds(r0, band), :, :]

    # Top halo: input rows r0-2, r0-1 (zero padding for the first band).
    @pl.when(j == 0)
    def _():
        pad_in_ref[0:2, 1:1 + W, :] = jnp.zeros((2, W, C), f32)

    @pl.when(j > 0)
    def _():
        pad_in_ref[0:2, 1:1 + W, :] = x_ref[0, pl.ds(r0 - 2, 2), :, :]

    # Bottom halo: input rows r0+band, r0+band+1 (zero for the last band).
    @pl.when(j == nb - 1)
    def _():
        pad_in_ref[band + 2:band + 4, 1:1 + W, :] = jnp.zeros((2, W, C), f32)

    @pl.when(j < nb - 1)
    def _():
        pad_in_ref[band + 2:band + 4, 1:1 + W, :] = (
            x_ref[0, pl.ds(r0 + band, 2), :, :])

    # ---- conv1 + ReLU on band+2 rows (halo rows feed conv2) -------------
    # im2col: 9 shifted windows written (already cast to compute_dtype) into
    # the 2-D col buffer, then ONE large-M MXU matmul with f32 accumulation.
    # (For very large C, a 9-matmul direct accumulation from shifted windows
    #  would avoid the im2col store traffic entirely; not needed here.)
    for t, (dy, dx) in enumerate(_TAPS):
        col_ref[:, t * C:(t + 1) * C] = (
            pad_in_ref[dy:dy + nbh, dx:dx + W, :]
            .reshape(nbh * W, C).astype(compute_dtype))
    h = jnp.dot(col_ref[...], w1_ref[...],
                preferred_element_type=jnp.float32)        # (nbh*W, C) f32
    h = jnp.maximum(h + b1_ref[...], 0.0)

    # ---- re-pad the hidden activation for conv2 -------------------------
    pad_h_ref[:, 1:1 + W, :] = h.reshape(nbh, W, C)

    # The halo rows computed above are only valid INSIDE the image; at the
    # image boundary conv2 must see zero padding of h, not conv1-of-zeros.
    @pl.when(j == 0)
    def _():
        pad_h_ref[0:1, 1:1 + W, :] = jnp.zeros((1, W, C), f32)

    @pl.when(j == nb - 1)
    def _():
        pad_h_ref[nbh - 1:nbh, 1:1 + W, :] = jnp.zeros((1, W, C), f32)

    # ---- conv2 on the band rows (reuse the same col scratch) ------------
    m2 = band * W
    for t, (dy, dx) in enumerate(_TAPS):
        col_ref[0:m2, t * C:(t + 1) * C] = (
            pad_h_ref[dy:dy + band, dx:dx + W, :]
            .reshape(m2, C).astype(compute_dtype))
    y = jnp.dot(col_ref[0:m2, :], w2_ref[...],
                preferred_element_type=jnp.float32) + b2_ref[...]

    # ---- residual add + final ReLU (f32 epilogue) ------------------------
    # Residual rows are re-read from the (already VMEM-resident) input block
    # instead of being kept live across both matmuls.
    res = x_ref[0, pl.ds(r0, band), :, :]
    o_ref[0] = jnp.maximum(y.reshape(band, W, C) + res, 0.0).astype(o_ref.dtype)


def _vmem_footprint_bytes(H, W, C, band, compute_itemsize):
    f32 = 4
    in_block = H * W * C * f32
    out_block = band * W * C * f32
    params = 2 * (9 * C * C * compute_itemsize + C * f32)
    pad_in = (band + 4) * (W + 2) * C * f32
    pad_h = (band + 2) * (W + 2) * C * f32
    col = (band + 2) * W * 9 * C * compute_itemsize
    # in/out/param blocks are double-buffered by the BlockSpec pipeline.
    return 2 * (in_block + out_block + params) + pad_in + pad_h + col


def _pick_band(H, W, C, compute_itemsize, budget_bytes):
    divisors = [d for d in range(2, H + 1) if H % d == 0] or [H]
    # Prefer modest bands (<= 32 rows) with at least 2 bands so each
    # TensorCore gets several pipeline steps; largest such band first to
    # amortize the fixed per-step overhead.
    preferred = sorted([d for d in divisors if d <= 32 and H // d >= 2],
                       reverse=True)
    rest = sorted(set(divisors) - set(preferred), reverse=True)
    for d in preferred + rest:
        if _vmem_footprint_bytes(H, W, C, d, compute_itemsize) <= budget_bytes:
            return d
    return min(divisors)


def residual_block(x_nchw, w1, b1, w2, b2, *, compute_dtype=jnp.bfloat16,
                   band=None):
    """ResidualBlock forward.

    x_nchw : (B, C, H, W) f32.   w1/w2 : (3, 3, C, C) HWIO.   b1/b2 : (1, C).
    Returns (B, C, H, W) f32.

    compute_dtype is the MXU operand dtype (bf16 default for v5e/v6e/v7x;
    accumulation and the bias/residual/ReLU epilogue are always f32).
    Intended regime is C % 128 == 0 (lane-dense stores, aligned tap slots);
    smaller C is functionally correct but under-utilizes lanes and the MXU.
    """
    x = jnp.transpose(x_nchw, (0, 2, 3, 1))            # NCHW -> NHWC
    B, H, W, C = x.shape
    compute_dtype = np.dtype(compute_dtype)

    # One-time weight/bias prep in XLA: HWIO -> (9*C, C), rows ordered
    # (ky, kx, c_in) to match the im2col tap ordering, cast to compute_dtype.
    w1m = w1.reshape(9 * C, C).astype(compute_dtype)
    w2m = w2.reshape(9 * C, C).astype(compute_dtype)
    b1r = b1.reshape(1, C).astype(jnp.float32)
    b2r = b2.reshape(1, C).astype(jnp.float32)

    # VMEM budget derived from the actual chip (v5e/v6e: 128 MiB, v7x: 64 MiB)
    # rather than a hard-coded limit.
    try:
        vmem_cap = int(pltpu.get_tpu_info().vmem_capacity_bytes)
    except Exception:
        vmem_cap = 64 * 1024 * 1024       # conservative (v7x) fallback

    if band is None:
        band = _pick_band(H, W, C, compute_dtype.itemsize,
                          budget_bytes=int(0.70 * vmem_cap))
    assert H % band == 0, "band must divide H"
    nb = H // band

    kernel = functools.partial(residual_block_kernel,
                               compute_dtype=compute_dtype)

    out_nhwc = pl.pallas_call(
        kernel,
        out_shape=jax.ShapeDtypeStruct((B, H, W, C), x.dtype),
        grid_spec=pltpu.PrefetchScalarGridSpec(
            num_scalar_prefetch=0,
            grid=(B, nb),                  # (batch, row-band): both independent
            in_specs=[
                # Full image per batch element: block index is constant in j,
                # so it is DMA'd once per batch and stays VMEM-resident while
                # every band (incl. halo rows) is sliced from it in-kernel.
                pl.BlockSpec((1, H, W, C), lambda b, j: (b, 0, 0, 0)),   # x
                pl.BlockSpec((9 * C, C), lambda b, j: (0, 0)),           # w1
                pl.BlockSpec((1, C), lambda b, j: (0, 0)),               # b1
                pl.BlockSpec((9 * C, C), lambda b, j: (0, 0)),           # w2
                pl.BlockSpec((1, C), lambda b, j: (0, 0)),               # b2
            ],
            out_specs=pl.BlockSpec((1, band, W, C),
                                   lambda b, j: (b, j, 0, 0)),
            scratch_shapes=[
                pltpu.VMEM((band + 4, W + 2, C), jnp.float32),       # padded input
                pltpu.VMEM((band + 2, W + 2, C), jnp.float32),       # padded conv1 out
                pltpu.VMEM(((band + 2) * W, 9 * C), compute_dtype),  # im2col
            ],
        ),
        compiler_params=pltpu.CompilerParams(
            dimension_semantics=("parallel", "parallel"),
            vmem_limit_bytes=int(0.85 * vmem_cap),
        ),
    )(x, w1m, b1r, w2m, b2r)

    return jnp.transpose(out_nhwc, (0, 3, 1, 2))       # NHWC -> NCHW


def reference_forward(x_nchw, w1, b1, w2, b2):
    """Pure-JAX reference (lax.conv) matching F.conv2d semantics."""
    x = jnp.transpose(x_nchw, (0, 2, 3, 1))
    dn = lax.conv_dimension_numbers(x.shape, w1.shape, ('NHWC', 'HWIO', 'NHWC'))
    h = lax.conv_general_dilated(x, w1, (1, 1), 'SAME', dimension_numbers=dn) + b1
    h = jnp.maximum(h, 0.0)
    y = lax.conv_general_dilated(h, w2, (1, 1), 'SAME', dimension_numbers=dn) + b2
    y = jnp.maximum(y + x, 0.0)
    return jnp.transpose(y, (0, 3, 1, 2))


if __name__ == "__main__":
    B, C, H, W = 2, 4, 16, 16
    key = jax.random.PRNGKey(0)
    k_x, k_w1, k_b1, k_w2, k_b2 = jax.random.split(key, 5)

    x = jax.random.normal(k_x, (B, C, H, W), dtype=jnp.float32)

    # Deterministic synthetic parameters (HWIO layout for the kernel).
    fan_in = C * 3 * 3
    scale = 1.0 / float(np.sqrt(fan_in))
    w1 = jax.random.uniform(k_w1, (3, 3, C, C), jnp.float32, -scale, scale)
    b1 = jax.random.uniform(k_b1, (1, C), jnp.float32, -scale, scale)
    w2 = jax.random.uniform(k_w2, (3, 3, C, C), jnp.float32, -scale, scale)
    b2 = jax.random.uniform(k_b2, (1, C), jnp.float32, -scale, scale)

    ref = jax.block_until_ready(reference_forward(x, w1, b1, w2, b2))

    # f32 MXU operands: tight verification at these toy shapes.
    out_f32 = jax.block_until_ready(
        residual_block(x, w1, b1, w2, b2, compute_dtype=jnp.float32))
    assert out_f32.shape == (B, C, H, W)
    assert jnp.allclose(out_f32, ref, atol=1e-4, rtol=1e-4), "f32 mismatch"

    # Default bf16 MXU operands (f32 accumulate / epilogue): looser tolerance.
    out_bf16 = jax.block_until_ready(residual_block(x, w1, b1, w2, b2))
    assert out_bf16.shape == (B, C, H, W)
    assert jnp.allclose(out_bf16, ref, atol=5e-2, rtol=5e-2), "bf16 mismatch"

    print("KERNEL_OK")
</pallas_src>

<mosaic_0001>
module attributes {stable_mosaic.version = 11 : i64} {
  func.func @residual_block_kernel(%arg0: i32, %arg1: i32, %arg2: memref<1x16x16x4xf32, #tpu.memory_space<vmem>>, %arg3: memref<36x4xf32, #tpu.memory_space<vmem>>, %arg4: memref<1x4xf32, #tpu.memory_space<vmem>>, %arg5: memref<36x4xf32, #tpu.memory_space<vmem>>, %arg6: memref<1x4xf32, #tpu.memory_space<vmem>>, %arg7: memref<1x8x16x4xf32, #tpu.memory_space<vmem>>, %arg8: memref<12x18x4xf32, #tpu.memory_space<vmem>>, %arg9: memref<10x18x4xf32, #tpu.memory_space<vmem>>, %arg10: memref<160x36xf32, #tpu.memory_space<vmem>>) attributes {dimension_semantics = [#tpu.dimension_semantics<parallel>, #tpu.dimension_semantics<parallel>], iteration_bounds = array<i64: 2, 2>, scalar_prefetch = 0 : i64, scratch_operands = 3 : i64, tpu.core_type = #tpu.core_type<tc>, window_params = [{transform_indices = @transform_0, window_bounds = array<i64: 1, 16, 16, 4>}, {pipeline_mode = #tpu.pipeline_mode<synchronous>, transform_indices = @transform_1, window_bounds = array<i64: 36, 4>}, {pipeline_mode = #tpu.pipeline_mode<synchronous>, transform_indices = @transform_2, window_bounds = array<i64: 1, 4>}, {pipeline_mode = #tpu.pipeline_mode<synchronous>, transform_indices = @transform_3, window_bounds = array<i64: 36, 4>}, {pipeline_mode = #tpu.pipeline_mode<synchronous>, transform_indices = @transform_4, window_bounds = array<i64: 1, 4>}, {transform_indices = @transform_5, window_bounds = array<i64: 1, 8, 16, 4>}]} {
    %c8_i32 = arith.constant 8 : i32
    %0 = arith.muli %arg1, %c8_i32 : i32
    %1 = tpu.assume_multiple %0, 8 : i32
    %cst = arith.constant 0.000000e+00 : f32
    %2 = vector.broadcast %cst : f32 to vector<12x1x4xf32>
    %c0 = arith.constant 0 : index
    %c0_0 = arith.constant 0 : index
    %c0_1 = arith.constant 0 : index
    %3 = vector.load %arg8[%c0, %c0_0, %c0_1] : memref<12x18x4xf32, #tpu.memory_space<vmem>>, vector<12x1x4xf32>
    tpu.vector_store %arg8[%c0, %c0_0, %c0_1], %2 {strides = array<i32>} : memref<12x18x4xf32, #tpu.memory_space<vmem>>, vector<12x1x4xf32>,
    %cst_2 = arith.constant 0.000000e+00 : f32
    %4 = vector.broadcast %cst_2 : f32 to vector<12x1x4xf32>
    %c0_3 = arith.constant 0 : index
    %c17 = arith.constant 17 : index
    %c0_4 = arith.constant 0 : index
    %5 = vector.load %arg8[%c0_3, %c17, %c0_4] : memref<12x18x4xf32, #tpu.memory_space<vmem>>, vector<12x1x4xf32>
    tpu.vector_store %arg8[%c0_3, %c17, %c0_4], %4 {strides = array<i32>} : memref<12x18x4xf32, #tpu.memory_space<vmem>>, vector<12x1x4xf32>,
    %cst_5 = arith.constant 0.000000e+00 : f32
    %6 = vector.broadcast %cst_5 : f32 to vector<10x1x4xf32>
    %c0_6 = arith.constant 0 : index
    %c0_7 = arith.constant 0 : index
    %c0_8 = arith.constant 0 : index
    %7 = vector.load %arg9[%c0_6, %c0_7, %c0_8] : memref<10x18x4xf32, #tpu.memory_space<vmem>>, vector<10x1x4xf32>
    tpu.vector_store %arg9[%c0_6, %c0_7, %c0_8], %6 {strides = array<i32>} : memref<10x18x4xf32, #tpu.memory_space<vmem>>, vector<10x1x4xf32>,
    %cst_9 = arith.constant 0.000000e+00 : f32
    %8 = vector.broadcast %cst_9 : f32 to vector<10x1x4xf32>
    %c0_10 = arith.constant 0 : index
    %c17_11 = arith.constant 17 : index
    %c0_12 = arith.constant 0 : index
    %9 = vector.load %arg9[%c0_10, %c17_11, %c0_12] : memref<10x18x4xf32, #tpu.memory_space<vmem>>, vector<10x1x4xf32>
    tpu.vector_store %arg9[%c0_10, %c17_11, %c0_12], %8 {strides = array<i32>} : memref<10x18x4xf32, #tpu.memory_space<vmem>>, vector<10x1x4xf32>,
    %c0_13 = arith.constant 0 : index
    %10 = arith.index_cast %1 : i32 to index
    %c0_14 = arith.constant 0 : index
    %c0_15 = arith.constant 0 : index
    %11 = vector.load %arg2[%c0_13, %10, %c0_14, %c0_15] : memref<1x16x16x4xf32, #tpu.memory_space<vmem>>, vector<1x8x16x4xf32>
    %12 = vector.shape_cast %11 : vector<1x8x16x4xf32> to vector<8x16x4xf32>
    %c2 = arith.constant 2 : index
    %c1 = arith.constant 1 : index
    %c0_16 = arith.constant 0 : index
    %13 = vector.load %arg8[%c2, %c1, %c0_16] : memref<12x18x4xf32, #tpu.memory_space<vmem>>, vector<8x16x4xf32>
    tpu.vector_store %arg8[%c2, %c1, %c0_16], %12 {strides = array<i32>} : memref<12x18x4xf32, #tpu.memory_space<vmem>>, vector<8x16x4xf32>,
    %c0_i32 = arith.constant 0 : i32
    %14 = arith.cmpi eq, %arg1, %c0_i32 : i32
    %15 = arith.extui %14 : i1 to i32
    %c0_i32_17 = arith.constant 0 : i32
    %16 = arith.cmpi ne, %15, %c0_i32_17 : i32
    scf.if %16 {
      %cst_135 = arith.constant 0.000000e+00 : f32
      %112 = vector.broadcast %cst_135 : f32 to vector<2x16x4xf32>
      %c0_136 = arith.constant 0 : index
      %c1_137 = arith.constant 1 : index
      %c0_138 = arith.constant 0 : index
      %113 = vector.load %arg8[%c0_136, %c1_137, %c0_138] : memref<12x18x4xf32, #tpu.memory_space<vmem>>, vector<2x16x4xf32>
      tpu.vector_store %arg8[%c0_136, %c1_137, %c0_138], %112 {strides = array<i32>} : memref<12x18x4xf32, #tpu.memory_space<vmem>>, vector<2x16x4xf32>,
    } else {
    }
    %c0_i32_18 = arith.constant 0 : i32
    %17 = arith.cmpi sgt, %arg1, %c0_i32_18 : i32
    %18 = arith.extui %17 : i1 to i32
    %c0_i32_19 = arith.constant 0 : i32
    %19 = arith.cmpi ne, %18, %c0_i32_19 : i32
    scf.if %19 {
      %c2_i32 = arith.constant 2 : i32
      %112 = arith.subi %1, %c2_i32 : i32
      %c0_135 = arith.constant 0 : index
      %113 = arith.index_cast %112 : i32 to index
      %c0_136 = arith.constant 0 : index
      %c0_137 = arith.constant 0 : index
      %114 = vector.load %arg2[%c0_135, %113, %c0_136, %c0_137] : memref<1x16x16x4xf32, #tpu.memory_space<vmem>>, vector<1x2x16x4xf32>
      %115 = vector.shape_cast %114 : vector<1x2x16x4xf32> to vector<2x16x4xf32>
      %c0_138 = arith.constant 0 : index
      %c1_139 = arith.constant 1 : index
      %c0_140 = arith.constant 0 : index
      %116 = vector.load %arg8[%c0_138, %c1_139, %c0_140] : memref<12x18x4xf32, #tpu.memory_space<vmem>>, vector<2x16x4xf32>
      tpu.vector_store %arg8[%c0_138, %c1_139, %c0_140], %115 {strides = array<i32>} : memref<12x18x4xf32, #tpu.memory_space<vmem>>, vector<2x16x4xf32>,
    } else {
    }
    %c1_i32 = arith.constant 1 : i32
    %20 = arith.cmpi eq, %arg1, %c1_i32 : i32
    %21 = arith.extui %20 : i1 to i32
    %c0_i32_20 = arith.constant 0 : i32
    %22 = arith.cmpi ne, %21, %c0_i32_20 : i32
    scf.if %22 {
      %cst_135 = arith.constant 0.000000e+00 : f32
      %112 = vector.broadcast %cst_135 : f32 to vector<2x16x4xf32>
      %c10 = arith.constant 10 : index
      %c1_136 = arith.constant 1 : index
      %c0_137 = arith.constant 0 : index
      %113 = vector.load %arg8[%c10, %c1_136, %c0_137] : memref<12x18x4xf32, #tpu.memory_space<vmem>>, vector<2x16x4xf32>
      tpu.vector_store %arg8[%c10, %c1_136, %c0_137], %112 {strides = array<i32>} : memref<12x18x4xf32, #tpu.memory_space<vmem>>, vector<2x16x4xf32>,
    } else {
    }
    %c1_i32_21 = arith.constant 1 : i32
    %23 = arith.cmpi slt, %arg1, %c1_i32_21 : i32
    %24 = arith.extui %23 : i1 to i32
    %c0_i32_22 = arith.constant 0 : i32
    %25 = arith.cmpi ne, %24, %c0_i32_22 : i32
    scf.if %25 {
      %c8_i32_135 = arith.constant 8 : i32
      %112 = arith.addi %1, %c8_i32_135 : i32
      %c0_136 = arith.constant 0 : index
      %113 = arith.index_cast %112 : i32 to index
      %c0_137 = arith.constant 0 : index
      %c0_138 = arith.constant 0 : index
      %114 = vector.load %arg2[%c0_136, %113, %c0_137, %c0_138] : memref<1x16x16x4xf32, #tpu.memory_space<vmem>>, vector<1x2x16x4xf32>
      %115 = vector.shape_cast %114 : vector<1x2x16x4xf32> to vector<2x16x4xf32>
      %c10 = arith.constant 10 : index
      %c1_139 = arith.constant 1 : index
      %c0_140 = arith.constant 0 : index
      %116 = vector.load %arg8[%c10, %c1_139, %c0_140] : memref<12x18x4xf32, #tpu.memory_space<vmem>>, vector<2x16x4xf32>
      tpu.vector_store %arg8[%c10, %c1_139, %c0_140], %115 {strides = array<i32>} : memref<12x18x4xf32, #tpu.memory_space<vmem>>, vector<2x16x4xf32>,
    } else {
    }
    %c0_23 = arith.constant 0 : index
    %c0_24 = arith.constant 0 : index
    %c0_25 = arith.constant 0 : index
    %26 = vector.load %arg8[%c0_23, %c0_24, %c0_25] : memref<12x18x4xf32, #tpu.memory_space<vmem>>, vector<10x16x4xf32>
    %27 = vector.shape_cast %26 : vector<10x16x4xf32> to vector<160x4xf32>
    %c0_26 = arith.constant 0 : index
    %c0_27 = arith.constant 0 : index
    %28 = vector.load %arg10[%c0_26, %c0_27] : memref<160x36xf32, #tpu.memory_space<vmem>>, vector<160x4xf32>
    tpu.vector_store %arg10[%c0_26, %c0_27], %27 {strides = array<i32>} : memref<160x36xf32, #tpu.memory_space<vmem>>, vector<160x4xf32>,
    %c0_28 = arith.constant 0 : index
    %c1_29 = arith.constant 1 : index
    %c0_30 = arith.constant 0 : index
    %29 = vector.load %arg8[%c0_28, %c1_29, %c0_30] : memref<12x18x4xf32, #tpu.memory_space<vmem>>, vector<10x16x4xf32>
    %30 = vector.shape_cast %29 : vector<10x16x4xf32> to vector<160x4xf32>
    %c0_31 = arith.constant 0 : index
    %c4 = arith.constant 4 : index
    %31 = vector.load %arg10[%c0_31, %c4] : memref<160x36xf32, #tpu.memory_space<vmem>>, vector<160x4xf32>
    tpu.vector_store %arg10[%c0_31, %c4], %30 {strides = array<i32>} : memref<160x36xf32, #tpu.memory_space<vmem>>, vector<160x4xf32>,
    %c0_32 = arith.constant 0 : index
    %c2_33 = arith.constant 2 : index
    %c0_34 = arith.constant 0 : index
    %32 = vector.load %arg8[%c0_32, %c2_33, %c0_34] : memref<12x18x4xf32, #tpu.memory_space<vmem>>, vector<10x16x4xf32>
    %33 = vector.shape_cast %32 : vector<10x16x4xf32> to vector<160x4xf32>
    %c0_35 = arith.constant 0 : index
    %c8 = arith.constant 8 : index
    %34 = vector.load %arg10[%c0_35, %c8] : memref<160x36xf32, #tpu.memory_space<vmem>>, vector<160x4xf32>
    tpu.vector_store %arg10[%c0_35, %c8], %33 {strides = array<i32>} : memref<160x36xf32, #tpu.memory_space<vmem>>, vector<160x4xf32>,
    %c1_36 = arith.constant 1 : index
    %c0_37 = arith.constant 0 : index
    %c0_38 = arith.constant 0 : index
    %35 = vector.load %arg8[%c1_36, %c0_37, %c0_38] : memref<12x18x4xf32, #tpu.memory_space<vmem>>, vector<10x16x4xf32>
    %36 = vector.shape_cast %35 : vector<10x16x4xf32> to vector<160x4xf32>
    %c0_39 = arith.constant 0 : index
    %c12 = arith.constant 12 : index
    %37 = vector.load %arg10[%c0_39, %c12] : memref<160x36xf32, #tpu.memory_space<vmem>>, vector<160x4xf32>
    tpu.vector_store %arg10[%c0_39, %c12], %36 {strides = array<i32>} : memref<160x36xf32, #tpu.memory_space<vmem>>, vector<160x4xf32>,
    %c1_40 = arith.constant 1 : index
    %c1_41 = arith.constant 1 : index
    %c0_42 = arith.constant 0 : index
    %38 = vector.load %arg8[%c1_40, %c1_41, %c0_42] : memref<12x18x4xf32, #tpu.memory_space<vmem>>, vector<10x16x4xf32>
    %39 = vector.shape_cast %38 : vector<10x16x4xf32> to vector<160x4xf32>
    %c0_43 = arith.constant 0 : index
    %c16 = arith.constant 16 : index
    %40 = vector.load %arg10[%c0_43, %c16] : memref<160x36xf32, #tpu.memory_space<vmem>>, vector<160x4xf32>
    tpu.vector_store %arg10[%c0_43, %c16], %39 {strides = array<i32>} : memref<160x36xf32, #tpu.memory_space<vmem>>, vector<160x4xf32>,
    %c1_44 = arith.constant 1 : index
    %c2_45 = arith.constant 2 : index
    %c0_46 = arith.constant 0 : index
    %41 = vector.load %arg8[%c1_44, %c2_45, %c0_46] : memref<12x18x4xf32, #tpu.memory_space<vmem>>, vector<10x16x4xf32>
    %42 = vector.shape_cast %41 : vector<10x16x4xf32> to vector<160x4xf32>
    %c0_47 = arith.constant 0 : index
    %c20 = arith.constant 20 : index
    %43 = vector.load %arg10[%c0_47, %c20] : memref<160x36xf32, #tpu.memory_space<vmem>>, vector<160x4xf32>
    tpu.vector_store %arg10[%c0_47, %c20], %42 {strides = array<i32>} : memref<160x36xf32, #tpu.memory_space<vmem>>, vector<160x4xf32>,
    %c2_48 = arith.constant 2 : index
    %c0_49 = arith.constant 0 : index
    %c0_50 = arith.constant 0 : index
    %44 = vector.load %arg8[%c2_48, %c0_49, %c0_50] : memref<12x18x4xf32, #tpu.memory_space<vmem>>, vector<10x16x4xf32>
    %45 = vector.shape_cast %44 : vector<10x16x4xf32> to vector<160x4xf32>
    %c0_51 = arith.constant 0 : index
    %c24 = arith.constant 24 : index
    %46 = vector.load %arg10[%c0_51, %c24] : memref<160x36xf32, #tpu.memory_space<vmem>>, vector<160x4xf32>
    tpu.vector_store %arg10[%c0_51, %c24], %45 {strides = array<i32>} : memref<160x36xf32, #tpu.memory_space<vmem>>, vector<160x4xf32>,
    %c2_52 = arith.constant 2 : index
    %c1_53 = arith.constant 1 : index
    %c0_54 = arith.constant 0 : index
    %47 = vector.load %arg8[%c2_52, %c1_53, %c0_54] : memref<12x18x4xf32, #tpu.memory_space<vmem>>, vector<10x16x4xf32>
    %48 = vector.shape_cast %47 : vector<10x16x4xf32> to vector<160x4xf32>
    %c0_55 = arith.constant 0 : index
    %c28 = arith.constant 28 : index
    %49 = vector.load %arg10[%c0_55, %c28] : memref<160x36xf32, #tpu.memory_space<vmem>>, vector<160x4xf32>
    tpu.vector_store %arg10[%c0_55, %c28], %48 {strides = array<i32>} : memref<160x36xf32, #tpu.memory_space<vmem>>, vector<160x4xf32>,
    %c2_56 = arith.constant 2 : index
    %c2_57 = arith.constant 2 : index
    %c0_58 = arith.constant 0 : index
    %50 = vector.load %arg8[%c2_56, %c2_57, %c0_58] : memref<12x18x4xf32, #tpu.memory_space<vmem>>, vector<10x16x4xf32>
    %51 = vector.shape_cast %50 : vector<10x16x4xf32> to vector<160x4xf32>
    %c0_59 = arith.constant 0 : index
    %c32 = arith.constant 32 : index
    %52 = vector.load %arg10[%c0_59, %c32] : memref<160x36xf32, #tpu.memory_space<vmem>>, vector<160x4xf32>
    tpu.vector_store %arg10[%c0_59, %c32], %51 {strides = array<i32>} : memref<160x36xf32, #tpu.memory_space<vmem>>, vector<160x4xf32>,
    %c0_60 = arith.constant 0 : index
    %c0_61 = arith.constant 0 : index
    %53 = vector.load %arg10[%c0_60, %c0_61] : memref<160x36xf32, #tpu.memory_space<vmem>>, vector<160x36xf32>
    %c0_62 = arith.constant 0 : index
    %c0_63 = arith.constant 0 : index
    %54 = vector.load %arg3[%c0_62, %c0_63] : memref<36x4xf32, #tpu.memory_space<vmem>>, vector<36x4xf32>
    %cst_64 = arith.constant dense<0.000000e+00> : vector<160x4xf32>
    %55 = tpu.matmul %53, %54, %cst_64 {dimension_numbers = #tpu.dot_dimension_numbers<[1], [0], [0], [1], [0, 0, 1, 1], [], []>} : vector<160x36xf32>, vector<36x4xf32>, vector<160x4xf32> -> vector<160x4xf32>
    %c0_65 = arith.constant 0 : index
    %c0_66 = arith.constant 0 : index
    %56 = vector.load %arg4[%c0_65, %c0_66] : memref<1x4xf32, #tpu.memory_space<vmem>>, vector<1x4xf32>
    %57 = vector.broadcast %56 : vector<1x4xf32> to vector<160x4xf32>
    %58 = arith.addf %55, %57 : vector<160x4xf32>
    %cst_67 = arith.constant 0.000000e+00 : f32
    %59 = vector.broadcast %cst_67 : f32 to vector<160x4xf32>
    %60 = arith.maximumf %58, %59 : vector<160x4xf32>
    %61 = vector.shape_cast %60 : vector<160x4xf32> to vector<10x16x4xf32>
    %c0_68 = arith.constant 0 : index
    %c1_69 = arith.constant 1 : index
    %c0_70 = arith.constant 0 : index
    %62 = vector.load %arg9[%c0_68, %c1_69, %c0_70] : memref<10x18x4xf32, #tpu.memory_space<vmem>>, vector<10x16x4xf32>
    tpu.vector_store %arg9[%c0_68, %c1_69, %c0_70], %61 {strides = array<i32>} : memref<10x18x4xf32, #tpu.memory_space<vmem>>, vector<10x16x4xf32>,
    %c0_i32_71 = arith.constant 0 : i32
    %63 = arith.cmpi eq, %arg1, %c0_i32_71 : i32
    %64 = arith.extui %63 : i1 to i32
    %c0_i32_72 = arith.constant 0 : i32
    %65 = arith.cmpi ne, %64, %c0_i32_72 : i32
    scf.if %65 {
      %cst_135 = arith.constant 0.000000e+00 : f32
      %112 = vector.broadcast %cst_135 : f32 to vector<1x16x4xf32>
      %c0_136 = arith.constant 0 : index
      %c1_137 = arith.constant 1 : index
      %c0_138 = arith.constant 0 : index
      %113 = vector.load %arg9[%c0_136, %c1_137, %c0_138] : memref<10x18x4xf32, #tpu.memory_space<vmem>>, vector<1x16x4xf32>
      tpu.vector_store %arg9[%c0_136, %c1_137, %c0_138], %112 {strides = array<i32>} : memref<10x18x4xf32, #tpu.memory_space<vmem>>, vector<1x16x4xf32>,
    } else {
    }
    %c1_i32_73 = arith.constant 1 : i32
    %66 = arith.cmpi eq, %arg1, %c1_i32_73 : i32
    %67 = arith.extui %66 : i1 to i32
    %c0_i32_74 = arith.constant 0 : i32
    %68 = arith.cmpi ne, %67, %c0_i32_74 : i32
    scf.if %68 {
      %cst_135 = arith.constant 0.000000e+00 : f32
      %112 = vector.broadcast %cst_135 : f32 to vector<1x16x4xf32>
      %c9 = arith.constant 9 : index
      %c1_136 = arith.constant 1 : index
      %c0_137 = arith.constant 0 : index
      %113 = vector.load %arg9[%c9, %c1_136, %c0_137] : memref<10x18x4xf32, #tpu.memory_space<vmem>>, vector<1x16x4xf32>
      tpu.vector_store %arg9[%c9, %c1_136, %c0_137], %112 {strides = array<i32>} : memref<10x18x4xf32, #tpu.memory_space<vmem>>, vector<1x16x4xf32>,
    } else {
    }
    %c0_75 = arith.constant 0 : index
    %c0_76 = arith.constant 0 : index
    %c0_77 = arith.constant 0 : index
    %69 = vector.load %arg9[%c0_75, %c0_76, %c0_77] : memref<10x18x4xf32, #tpu.memory_space<vmem>>, vector<8x16x4xf32>
    %70 = vector.shape_cast %69 : vector<8x16x4xf32> to vector<128x4xf32>
    %c0_78 = arith.constant 0 : index
    %c0_79 = arith.constant 0 : index
    %71 = vector.load %arg10[%c0_78, %c0_79] : memref<160x36xf32, #tpu.memory_space<vmem>>, vector<128x4xf32>
    tpu.vector_store %arg10[%c0_78, %c0_79], %70 {strides = array<i32>} : memref<160x36xf32, #tpu.memory_space<vmem>>, vector<128x4xf32>,
    %c0_80 = arith.constant 0 : index
    %c1_81 = arith.constant 1 : index
    %c0_82 = arith.constant 0 : index
    %72 = vector.load %arg9[%c0_80, %c1_81, %c0_82] : memref<10x18x4xf32, #tpu.memory_space<vmem>>, vector<8x16x4xf32>
    %73 = vector.shape_cast %72 : vector<8x16x4xf32> to vector<128x4xf32>
    %c0_83 = arith.constant 0 : index
    %c4_84 = arith.constant 4 : index
    %74 = vector.load %arg10[%c0_83, %c4_84] : memref<160x36xf32, #tpu.memory_space<vmem>>, vector<128x4xf32>
    tpu.vector_store %arg10[%c0_83, %c4_84], %73 {strides = array<i32>} : memref<160x36xf32, #tpu.memory_space<vmem>>, vector<128x4xf32>,
    %c0_85 = arith.constant 0 : index
    %c2_86 = arith.constant 2 : index
    %c0_87 = arith.constant 0 : index
    %75 = vector.load %arg9[%c0_85, %c2_86, %c0_87] : memref<10x18x4xf32, #tpu.memory_space<vmem>>, vector<8x16x4xf32>
    %76 = vector.shape_cast %75 : vector<8x16x4xf32> to vector<128x4xf32>
    %c0_88 = arith.constant 0 : index
    %c8_89 = arith.constant 8 : index
    %77 = vector.load %arg10[%c0_88, %c8_89] : memref<160x36xf32, #tpu.memory_space<vmem>>, vector<128x4xf32>
    tpu.vector_store %arg10[%c0_88, %c8_89], %76 {strides = array<i32>} : memref<160x36xf32, #tpu.memory_space<vmem>>, vector<128x4xf32>,
    %c1_90 = arith.constant 1 : index
    %c0_91 = arith.constant 0 : index
    %c0_92 = arith.constant 0 : index
    %78 = vector.load %arg9[%c1_90, %c0_91, %c0_92] : memref<10x18x4xf32, #tpu.memory_space<vmem>>, vector<8x16x4xf32>
    %79 = vector.shape_cast %78 : vector<8x16x4xf32> to vector<128x4xf32>
    %c0_93 = arith.constant 0 : index
    %c12_94 = arith.constant 12 : index
    %80 = vector.load %arg10[%c0_93, %c12_94] : memref<160x36xf32, #tpu.memory_space<vmem>>, vector<128x4xf32>
    tpu.vector_store %arg10[%c0_93, %c12_94], %79 {strides = array<i32>} : memref<160x36xf32, #tpu.memory_space<vmem>>, vector<128x4xf32>,
    %c1_95 = arith.constant 1 : index
    %c1_96 = arith.constant 1 : index
    %c0_97 = arith.constant 0 : index
    %81 = vector.load %arg9[%c1_95, %c1_96, %c0_97] : memref<10x18x4xf32, #tpu.memory_space<vmem>>, vector<8x16x4xf32>
    %82 = vector.shape_cast %81 : vector<8x16x4xf32> to vector<128x4xf32>
    %c0_98 = arith.constant 0 : index
    %c16_99 = arith.constant 16 : index
    %83 = vector.load %arg10[%c0_98, %c16_99] : memref<160x36xf32, #tpu.memory_space<vmem>>, vector<128x4xf32>
    tpu.vector_store %arg10[%c0_98, %c16_99], %82 {strides = array<i32>} : memref<160x36xf32, #tpu.memory_space<vmem>>, vector<128x4xf32>,
    %c1_100 = arith.constant 1 : index
    %c2_101 = arith.constant 2 : index
    %c0_102 = arith.constant 0 : index
    %84 = vector.load %arg9[%c1_100, %c2_101, %c0_102] : memref<10x18x4xf32, #tpu.memory_space<vmem>>, vector<8x16x4xf32>
    %85 = vector.shape_cast %84 : vector<8x16x4xf32> to vector<128x4xf32>
    %c0_103 = arith.constant 0 : index
    %c20_104 = arith.constant 20 : index
    %86 = vector.load %arg10[%c0_103, %c20_104] : memref<160x36xf32, #tpu.memory_space<vmem>>, vector<128x4xf32>
    tpu.vector_store %arg10[%c0_103, %c20_104], %85 {strides = array<i32>} : memref<160x36xf32, #tpu.memory_space<vmem>>, vector<128x4xf32>,
    %c2_105 = arith.constant 2 : index
    %c0_106 = arith.constant 0 : index
    %c0_107 = arith.constant 0 : index
    %87 = vector.load %arg9[%c2_105, %c0_106, %c0_107] : memref<10x18x4xf32, #tpu.memory_space<vmem>>, vector<8x16x4xf32>
    %88 = vector.shape_cast %87 : vector<8x16x4xf32> to vector<128x4xf32>
    %c0_108 = arith.constant 0 : index
    %c24_109 = arith.constant 24 : index
    %89 = vector.load %arg10[%c0_108, %c24_109] : memref<160x36xf32, #tpu.memory_space<vmem>>, vector<128x4xf32>
    tpu.vector_store %arg10[%c0_108, %c24_109], %88 {strides = array<i32>} : memref<160x36xf32, #tpu.memory_space<vmem>>, vector<128x4xf32>,
    %c2_110 = arith.constant 2 : index
    %c1_111 = arith.constant 1 : index
    %c0_112 = arith.constant 0 : index
    %90 = vector.load %arg9[%c2_110, %c1_111, %c0_112] : memref<10x18x4xf32, #tpu.memory_space<vmem>>, vector<8x16x4xf32>
    %91 = vector.shape_cast %90 : vector<8x16x4xf32> to vector<128x4xf32>
    %c0_113 = arith.constant 0 : index
    %c28_114 = arith.constant 28 : index
    %92 = vector.load %arg10[%c0_113, %c28_114] : memref<160x36xf32, #tpu.memory_space<vmem>>, vector<128x4xf32>
    tpu.vector_store %arg10[%c0_113, %c28_114], %91 {strides = array<i32>} : memref<160x36xf32, #tpu.memory_space<vmem>>, vector<128x4xf32>,
    %c2_115 = arith.constant 2 : index
    %c2_116 = arith.constant 2 : index
    %c0_117 = arith.constant 0 : index
    %93 = vector.load %arg9[%c2_115, %c2_116, %c0_117] : memref<10x18x4xf32, #tpu.memory_space<vmem>>, vector<8x16x4xf32>
    %94 = vector.shape_cast %93 : vector<8x16x4xf32> to vector<128x4xf32>
    %c0_118 = arith.constant 0 : index
    %c32_119 = arith.constant 32 : index
    %95 = vector.load %arg10[%c0_118, %c32_119] : memref<160x36xf32, #tpu.memory_space<vmem>>, vector<128x4xf32>
    tpu.vector_store %arg10[%c0_118, %c32_119], %94 {strides = array<i32>} : memref<160x36xf32, #tpu.memory_space<vmem>>, vector<128x4xf32>,
    %c0_120 = arith.constant 0 : index
    %c0_121 = arith.constant 0 : index
    %96 = vector.load %arg10[%c0_120, %c0_121] : memref<160x36xf32, #tpu.memory_space<vmem>>, vector<128x36xf32>
    %c0_122 = arith.constant 0 : index
    %c0_123 = arith.constant 0 : index
    %97 = vector.load %arg5[%c0_122, %c0_123] : memref<36x4xf32, #tpu.memory_space<vmem>>, vector<36x4xf32>
    %cst_124 = arith.constant dense<0.000000e+00> : vector<128x4xf32>
    %98 = tpu.matmul %96, %97, %cst_124 {dimension_numbers = #tpu.dot_dimension_numbers<[1], [0], [0], [1], [0, 0, 1, 1], [], []>} : vector<128x36xf32>, vector<36x4xf32>, vector<128x4xf32> -> vector<128x4xf32>
    %c0_125 = arith.constant 0 : index
    %c0_126 = arith.constant 0 : index
    %99 = vector.load %arg6[%c0_125, %c0_126] : memref<1x4xf32, #tpu.memory_space<vmem>>, vector<1x4xf32>
    %100 = vector.broadcast %99 : vector<1x4xf32> to vector<128x4xf32>
    %101 = arith.addf %98, %100 : vector<128x4xf32>
    %c0_127 = arith.constant 0 : index
    %102 = arith.index_cast %1 : i32 to index
    %c0_128 = arith.constant 0 : index
    %c0_129 = arith.constant 0 : index
    %103 = vector.load %arg2[%c0_127, %102, %c0_128, %c0_129] : memref<1x16x16x4xf32, #tpu.memory_space<vmem>>, vector<1x8x16x4xf32>
    %104 = vector.shape_cast %103 : vector<1x8x16x4xf32> to vector<8x16x4xf32>
    %105 = vector.shape_cast %101 : vector<128x4xf32> to vector<8x16x4xf32>
    %106 = arith.addf %105, %104 : vector<8x16x4xf32>
    %cst_130 = arith.constant 0.000000e+00 : f32
    %107 = vector.broadcast %cst_130 : f32 to vector<8x16x4xf32>
    %108 = arith.maximumf %106, %107 : vector<8x16x4xf32>
    %c0_131 = arith.constant 0 : index
    %c0_132 = arith.constant 0 : index
    %c0_133 = arith.constant 0 : index
    %c0_134 = arith.constant 0 : index
    %109 = vector.load %arg7[%c0_131, %c0_132, %c0_133, %c0_134] : memref<1x8x16x4xf32, #tpu.memory_space<vmem>>, vector<1x8x16x4xf32>
    %110 = vector.shape_cast %109 : vector<1x8x16x4xf32> to vector<8x16x4xf32>
    %111 = vector.shape_cast %108 : vector<8x16x4xf32> to vector<1x8x16x4xf32>
    tpu.vector_store %arg7[%c0_131, %c0_132, %c0_133, %c0_134], %111 {strides = array<i32>} : memref<1x8x16x4xf32, #tpu.memory_space<vmem>>, vector<1x8x16x4xf32>,
    return
  }
  func.func @transform_0(%arg0: i32, %arg1: i32) -> (i32, i32, i32, i32) {
    %c0_i32 = arith.constant 0 : i32
    %c0_i32_0 = arith.constant 0 : i32
    %c0_i32_1 = arith.constant 0 : i32
    %c0_i32_2 = arith.constant 0 : i32
    return %arg0, %c0_i32, %c0_i32_0, %c0_i32_1 : i32, i32, i32, i32
  }
  func.func @transform_1(%arg0: i32, %arg1: i32) -> (i32, i32) {
    %c0_i32 = arith.constant 0 : i32
    %c0_i32_0 = arith.constant 0 : i32
    %c0_i32_1 = arith.constant 0 : i32
    return %c0_i32, %c0_i32_0 : i32, i32
  }
  func.func @transform_2(%arg0: i32, %arg1: i32) -> (i32, i32) {
    %c0_i32 = arith.constant 0 : i32
    %c0_i32_0 = arith.constant 0 : i32
    %c0_i32_1 = arith.constant 0 : i32
    return %c0_i32, %c0_i32_0 : i32, i32
  }
  func.func @transform_3(%arg0: i32, %arg1: i32) -> (i32, i32) {
    %c0_i32 = arith.constant 0 : i32
    %c0_i32_0 = arith.constant 0 : i32
    %c0_i32_1 = arith.constant 0 : i32
    return %c0_i32, %c0_i32_0 : i32, i32
  }
  func.func @transform_4(%arg0: i32, %arg1: i32) -> (i32, i32) {
    %c0_i32 = arith.constant 0 : i32
    %c0_i32_0 = arith.constant 0 : i32
    %c0_i32_1 = arith.constant 0 : i32
    return %c0_i32, %c0_i32_0 : i32, i32
  }
  func.func @transform_5(%arg0: i32, %arg1: i32) -> (i32, i32, i32, i32) {
    %c0_i32 = arith.constant 0 : i32
    %c0_i32_0 = arith.constant 0 : i32
    %c0_i32_1 = arith.constant 0 : i32
    return %arg0, %arg1, %c0_i32, %c0_i32_0 : i32, i32, i32, i32
  }
}

</mosaic_0001>

<bundles_post_ra>
// kernel: tpu_custom_call.1
= control target key start
LH: loop header
LB: loop body
LE: loop exit
PB: predicated region body
PF: predicated region fallthrough
CT: control target
= control target key end

     0   :  { %s3234_s18 = smov 0   ;;  %s3236_s19 = smov 0   ;;  %s4336_s0 = inlined_call_operand.vmem [shape: f32[2,16,16,4], index: 0, kind: input, shape index: {}]   ;;  %s4337_s1 = inlined_call_operand.vmem [shape: f32[36,4], index: 1, kind: input, shape index: {}]   ;;  %s4338_s2 = inlined_call_operand.vmem [shape: f32[1,4], index: 2, kind: input, shape index: {}]   ;;  %s4339_s3 = inlined_call_operand.vmem [shape: f32[36,4], index: 3, kind: input, shape index: {}]   ;;  %s4340_s4 = inlined_call_operand.vmem [shape: f32[1,4], index: 4, kind: input, shape index: {}]   ;;  %s4341_s5 = inlined_call_operand.vmem [shape: f32[2,16,16,4], index: 5, kind: output, shape index: {}]  }
   0x1   :  { %s3238_s20 = smov 0   ;;  %s3240_s21 = smov 0  }
   0x2   :  { %s3242_s22 = smov 0  }
   0x3 LB: > { %s24_s23 = sadd.s32 1, %s3181_s20  ;;  %s27_s24 = sadd.s32 1, %s3185_s21  ;;  %s3189_s22 = sphi %s3242_s22, %s15_s22   ;;  %s3185_s21 = sphi %s3240_s21, %s4345_s21   ;;  %s3181_s20 = sphi %s3238_s20, %s4344_s20   ;;  %s3177_s19 = sphi %s3236_s19, %s4343_s19   ;;  %s3173_s18 = sphi %s3234_s18, %s4342_s18  }
   0x4   : > { %p25_p0 = scmp.ge.s32.totalorder %s24_s23, 2  ;;  %p2894_p1 = scmp.ge.s32.totalorder %s3189_s22, 1 }
   0x5   : > { %p201_p2 = scmp.lt.s32.totalorder %s3189_s22, 5 }
   0x6   : > { %s4347_s23 = smov (%p25_p0, %s24_s23), 0  ;;  %s4349_s24 = smov (!%p25_p0, %s27_s24), %s3185_s21 }
   0x7   : > { %p202_p3 = pnand %p2894_p1, %p201_p2  ;;  %p29_p4 = scmp.ge.s32.totalorder %s4349_s24, 2 }
   0x8   : > { %vm251_vm0 = vcmask (!%p202_p3), 24576   ;;  %p234_p5 = scmp.lt.s32.totalorder (!%p202_p3), %s3177_s19, 1  ;;  %s3270_s25 = sshll.u32 (!%p202_p3), %s3173_s18, 3  ;;  %v3191_v0 = vmov (!%p202_p3), 0.0   ;;  %vm315_vm1 = vcmask (!%p202_p3), 31744  }
   0x9   : > { %s4351_s24 = smov (%p29_p4, %s4349_s24), 0  ;;  %205 = sbr.rel (%p202_p3) target bundleno = 1334 (0x536), region = 40 }
   0xa   : > { %252 = vst.msk [vmem:[#allocation2] sm:$0x1] (!%p202_p3), %vm251_vm0, %v3191_v0  ;;  %253 = vst.msk [vmem:[#allocation2 + $0x18] sm:$0x1] (!%p202_p3), %vm251_vm0, %v3191_v0  ;;  %p242_p6 = scmp.lt.s32.totalorder (!%p202_p3), %s3270_s25, 15  ;;  %s2960_s26 = sshll.u32 (!%p202_p3), %s3173_s18, 7 }
   0xb   : > { %254 = vst.msk [vmem:[#allocation2 + $0x30] sm:$0x1] (!%p202_p3), %vm251_vm0, %v3191_v0  ;;  %255 = vst.msk [vmem:[#allocation2 + $0x48] sm:$0x1] (!%p202_p3), %vm251_vm0, %v3191_v0  ;;  %p2903_p7 = scmp.ne.s32.totalorder (!%p202_p3), %s3173_s18, 0 }
   0xc   : > { %256 = vst.msk [vmem:[#allocation2 + $0x60] sm:$0x1] (!%p202_p3), %vm251_vm0, %v3191_v0  ;;  %257 = vst.msk [vmem:[#allocation2 + $0x78] sm:$0x1] (!%p202_p3), %vm251_vm0, %v3191_v0 }
   0xd   : > { %258 = vst.msk [vmem:[#allocation2 + $0x90] sm:$0x1] (!%p202_p3), %vm251_vm0, %v3191_v0  ;;  %259 = vst.msk [vmem:[#allocation2 + $0xa8] sm:$0x1] (!%p202_p3), %vm251_vm0, %v3191_v0 }
   0xe   : > { %260 = vst.msk [vmem:[#allocation2 + $0xc0] sm:$0x1] (!%p202_p3), %vm251_vm0, %v3191_v0  ;;  %261 = vst.msk [vmem:[#allocation2 + $0xd8] sm:$0x1] (!%p202_p3), %vm251_vm0, %v3191_v0 }
   0xf   : > { %262 = vst.msk [vmem:[#allocation2 + $0xf0] sm:$0x1] (!%p202_p3), %vm251_vm0, %v3191_v0  ;;  %263 = vst.msk [vmem:[#allocation2 + $0x108] sm:$0x1] (!%p202_p3), %vm251_vm0, %v3191_v0 }
  0x10   : > { %264 = vst.msk [vmem:[#allocation2 + $0x11] sm:$0x1] %vm251_vm0, %v3191_v0  ;;  %265 = vst.msk [vmem:[#allocation2 + $0x29] sm:$0x1] %vm251_vm0, %v3191_v0  ;;  %s4353_s19 = smov (!%p234_p5, %s3177_s19), 1  ;;  %v3192_v17 = vmov (!%p2903_p7), 0.0  }
  0x11   : > { %266 = vst.msk [vmem:[#allocation2 + $0x41] sm:$0x1] %vm251_vm0, %v3191_v0  ;;  %267 = vst.msk [vmem:[#allocation2 + $0x59] sm:$0x1] %vm251_vm0, %v3191_v0  ;;  %s243_s27 = scalar_select %p242_p6, %s3270_s25, 15 }
  0x12   : > { %268 = vst.msk [vmem:[#allocation2 + $0x71] sm:$0x1] %vm251_vm0, %v3191_v0  ;;  %269 = vst.msk [vmem:[#allocation2 + $0x89] sm:$0x1] %vm251_vm0, %v3191_v0  ;;  %s2959_s28 = sshll.u32 %s4353_s19, 8  ;;  %s2899_s29 = sshll.u32 %s4353_s19, 5 }
  0x13   : > { %270 = vst.msk [vmem:[#allocation2 + $0xa1] sm:$0x1] %vm251_vm0, %v3191_v0  ;;  %271 = vst.msk [vmem:[#allocation2 + $0xb9] sm:$0x1] %vm251_vm0, %v3191_v0  ;;  %s3325_s7 = scalar_lea.vmem %s4336_s0, %s2959_s28  ;;  %s2898_s8 = sshll.u32 %s243_s27, 1 }
  0x14   : > { %272 = vst.msk [vmem:[#allocation2 + $0xd1] sm:$0x1] %vm251_vm0, %v3191_v0  ;;  %273 = vst.msk [vmem:[#allocation2 + $0xe9] sm:$0x1] %vm251_vm0, %v3191_v0  ;;  %s246_s9 = sadd.s32 %s2899_s29, %s2898_s8  ;;  %s3328_s10 = scalar_lea.vmem %s3325_s7, %s2960_s26 }
  0x15   : > { %274 = vst.msk [vmem:[#allocation2 + $0x101] sm:$0x1] %vm251_vm0, %v3191_v0  ;;  %275 = vst.msk [vmem:[#allocation2 + $0x119] sm:$0x1] %vm251_vm0, %v3191_v0  ;;  %s2900_s11 = sshll.u32 %s246_s9, 3  ;;  %v298_v1 = vld [vmem:[%s3328_s10] sm:$0xff] }
  0x16   : > { %276 = vst.msk [vmem:[#allocation3] sm:$0x1] %vm251_vm0, %v3191_v0  ;;  %277 = vst.msk [vmem:[#allocation3 + $0x18] sm:$0x1] %vm251_vm0, %v3191_v0  ;;  %v299_v2 = vld [vmem:[%s3328_s10 + $0x8] sm:$0xff]  ;;  %v300_v3 = vld [vmem:[%s3328_s10 + $0x10] sm:$0xff]  ;;  %s3336_s14 = scalar_lea.vmem %s4341_s5, %s2900_s11 }
  0x17   : > { %278 = vst.msk [vmem:[#allocation3 + $0x30] sm:$0x1] %vm251_vm0, %v3191_v0  ;;  %279 = vst.msk [vmem:[#allocation3 + $0x48] sm:$0x1] %vm251_vm0, %v3191_v0  ;;  %v301_v4 = vld [vmem:[%s3328_s10 + $0x18] sm:$0xff]  ;;  %v302_v5 = vld [vmem:[%s3328_s10 + $0x20] sm:$0xff] }
  0x18   : > { %280 = vst.msk [vmem:[#allocation3 + $0x60] sm:$0x1] %vm251_vm0, %v3191_v0  ;;  %281 = vst.msk [vmem:[#allocation3 + $0x78] sm:$0x1] %vm251_vm0, %v3191_v0  ;;  %v303_v6 = vld [vmem:[%s3328_s10 + $0x28] sm:$0xff]  ;;  %v304_v7 = vld [vmem:[%s3328_s10 + $0x30] sm:$0xff] }
  0x19   : > { %282 = vst.msk [vmem:[#allocation3 + $0x90] sm:$0x1] %vm251_vm0, %v3191_v0  ;;  %283 = vst.msk [vmem:[#allocation3 + $0xa8] sm:$0x1] %vm251_vm0, %v3191_v0  ;;  %v305_v8 = vld [vmem:[%s3328_s10 + $0x38] sm:$0xff]  ;;  %v306_v9 = vld [vmem:[%s3328_s10 + $0x40] sm:$0xff] }
  0x1a   : > { %284 = vst.msk [vmem:[#allocation3 + $0xc0] sm:$0x1] %vm251_vm0, %v3191_v0  ;;  %285 = vst.msk [vmem:[#allocation3 + $0xd8] sm:$0x1] %vm251_vm0, %v3191_v0  ;;  %v307_v10 = vld [vmem:[%s3328_s10 + $0x48] sm:$0xff]  ;;  %v308_v11 = vld [vmem:[%s3328_s10 + $0x50] sm:$0xff] }
  0x1b   : > { %286 = vst.msk [vmem:[#allocation3 + $0x11] sm:$0x1] %vm251_vm0, %v3191_v0  ;;  %287 = vst.msk [vmem:[#allocation3 + $0x29] sm:$0x1] %vm251_vm0, %v3191_v0  ;;  %v309_v12 = vld [vmem:[%s3328_s10 + $0x58] sm:$0xff]  ;;  %v310_v13 = vld [vmem:[%s3328_s10 + $0x60] sm:$0xff] }
  0x1c   : > { %288 = vst.msk [vmem:[#allocation3 + $0x41] sm:$0x1] %vm251_vm0, %v3191_v0  ;;  %289 = vst.msk [vmem:[#allocation3 + $0x59] sm:$0x1] %vm251_vm0, %v3191_v0  ;;  %v311_v14 = vld [vmem:[%s3328_s10 + $0x68] sm:$0xff]  ;;  %v312_v15 = vld [vmem:[%s3328_s10 + $0x70] sm:$0xff] }
  0x1d   : > { %290 = vst.msk [vmem:[#allocation3 + $0x71] sm:$0x1] %vm251_vm0, %v3191_v0  ;;  %291 = vst.msk [vmem:[#allocation3 + $0x89] sm:$0x1] %vm251_vm0, %v3191_v0  ;;  %v313_v16 = vld [vmem:[%s3328_s10 + $0x78] sm:$0xff] }
  0x1e   : > { %292 = vst.msk [vmem:[#allocation3 + $0xa1] sm:$0x1] %vm251_vm0, %v3191_v0  ;;  %293 = vst.msk [vmem:[#allocation3 + $0xb9] sm:$0x1] %vm251_vm0, %v3191_v0 }
  0x1f   : > { %294 = vst.msk [vmem:[#allocation3 + $0xd1] sm:$0x1] %vm251_vm0, %v3191_v0  ;;  %295 = vst.msk [vmem:[#allocation3 + $0xe9] sm:$0x1] %vm251_vm0, %v3191_v0 }
  0x20   : > { %316 = vst.msk [vmem:[#allocation2 + $0x31] sm:$0xff] %vm315_vm1, %v298_v1  ;;  %317 = vst.msk [vmem:[#allocation2 + $0x39] sm:$0xff] %vm315_vm1, %v299_v2 }
  0x21   : > { %318 = vst.msk [vmem:[#allocation2 + $0x49] sm:$0xff] %vm315_vm1, %v300_v3  ;;  %319 = vst.msk [vmem:[#allocation2 + $0x51] sm:$0xff] %vm315_vm1, %v301_v4  ;;  %335 = sbr.rel (%p2903_p7) target bundleno = 42 (0x2a), region = 44 }
  0x22   : > { %320 = vst.msk [vmem:[#allocation2 + $0x61] sm:$0xff] %vm315_vm1, %v302_v5  ;;  %321 = vst.msk [vmem:[#allocation2 + $0x69] sm:$0xff] %vm315_vm1, %v303_v6 }
  0x23   : > { %322 = vst.msk [vmem:[#allocation2 + $0x79] sm:$0xff] %vm315_vm1, %v304_v7  ;;  %323 = vst.msk [vmem:[#allocation2 + $0x81] sm:$0xff] %vm315_vm1, %v305_v8 }
  0x24   : > { %324 = vst.msk [vmem:[#allocation2 + $0x91] sm:$0xff] %vm315_vm1, %v306_v9  ;;  %325 = vst.msk [vmem:[#allocation2 + $0x99] sm:$0xff] %vm315_vm1, %v307_v10 }
  0x25   : > { %326 = vst.msk [vmem:[#allocation2 + $0xa9] sm:$0xff] %vm315_vm1, %v308_v11  ;;  %327 = vst.msk [vmem:[#allocation2 + $0xb1] sm:$0xff] %vm315_vm1, %v309_v12 }
  0x26   : > { %328 = vst.msk [vmem:[#allocation2 + $0xc1] sm:$0xff] %vm315_vm1, %v310_v13  ;;  %329 = vst.msk [vmem:[#allocation2 + $0xc9] sm:$0xff] %vm315_vm1, %v311_v14 }
  0x27   : > { %330 = vst.msk [vmem:[#allocation2 + $0xd9] sm:$0xff] %vm315_vm1, %v312_v15  ;;  %331 = vst.msk [vmem:[#allocation2 + $0xe1] sm:$0xff] %vm315_vm1, %v313_v16 }
  0x28   : > { %336 = vst.msk [vmem:[#allocation2 + $0x1] sm:$0xff] %vm315_vm1, %v3192_v17  ;;  %337 = vst.msk [vmem:[#allocation2 + $0x9] sm:$0xff] %vm315_vm1, %v3192_v17 }
  0x29   : > { %338 = vst.msk [vmem:[#allocation2 + $0x19] sm:$0xff] %vm315_vm1, %v3192_v17  ;;  %339 = vst.msk [vmem:[#allocation2 + $0x21] sm:$0xff] %vm315_vm1, %v3192_v17 }
  0x2a PF: > { %p2904_p8 = scmp.le.s32.totalorder %s3173_s18, 0 }
  0x2b   : > { %s2905_s15 = sadd.s32 (!%p2904_p8), 4294967294, %s3270_s25 }
  0x2c   : > { %343 = sbr.rel (%p2904_p8) target bundleno = 51 (0x33), region = 48  ;;  %s2906_s16 = sshll.u32 (!%p2904_p8), %s2905_s15, 4 }
  0x2d   : > { %s346_s17 = scalar_lea.vmem (!%p2904_p8), %s3325_s7, %s2906_s16 }
  0x2e   : > { %v347_v18 = vld [vmem:[%s346_s17] sm:$0xff] (!%p2904_p8)  ;;  %v348_v19 = vld [vmem:[%s346_s17 + $0x8] sm:$0xff] (!%p2904_p8)  ;;  %v349_v20 = vld [vmem:[%s346_s17 + $0x10] sm:$0xff] (!%p2904_p8) }
  0x2f   : > { %351 = vst.msk [vmem:[#allocation2 + $0x1] sm:$0xff] (!%p2904_p8), %vm315_vm1, %v347_v18  ;;  %352 = vst.msk [vmem:[#allocation2 + $0x9] sm:$0xff] (!%p2904_p8), %vm315_vm1, %v348_v19  ;;  %v350_v21 = vld [vmem:[%s346_s17 + $0x18] sm:$0xff] (!%p2904_p8) }
  0x30   : > { %353 = vst.msk [vmem:[#allocation2 + $0x19] sm:$0xff] (!%p2904_p8), %vm315_vm1, %v349_v20  ;;  %354 = vst.msk [vmem:[#allocation2 + $0x21] sm:$0xff] (!%p2904_p8), %vm315_vm1, %v350_v21 }
  0x33 PF: > { %p2907_p9 = scmp.ne.s32.totalorder %s3173_s18, 1 }
  0x34   : > { %v3193_v22 = vmov (!%p2907_p9), 0.0  }
  0x35   : > { %358 = sbr.rel (%p2907_p9) target bundleno = 60 (0x3c), region = 52  ;;  %360 = vst.msk [vmem:[#allocation2 + $0xf1] sm:$0xff] (!%p2907_p9), %vm315_vm1, %v3193_v22  ;;  %361 = vst.msk [vmem:[#allocation2 + $0xf9] sm:$0xff] (!%p2907_p9), %vm315_vm1, %v3193_v22 }
  0x36   : > { %362 = vst.msk [vmem:[#allocation2 + $0x109] sm:$0xff] (!%p2907_p9), %vm315_vm1, %v3193_v22  ;;  %363 = vst.msk [vmem:[#allocation2 + $0x111] sm:$0xff] (!%p2907_p9), %vm315_vm1, %v3193_v22 }
  0x3c PF: > { %p2908_p10 = scmp.ge.s32.totalorder %s3173_s18, 1 }
  0x3d   : > { %v2911_v23 = vld [vmem:[%s3328_s10 + $0x80] sm:$0xff] (!%p2908_p10)  ;;  %v2912_v24 = vld [vmem:[%s3328_s10 + $0x88] sm:$0xff] (!%p2908_p10)  ;;  %v2913_v25 = vld [vmem:[%s3328_s10 + $0x90] sm:$0xff] (!%p2908_p10) }
  0x3e   : > { %367 = sbr.rel (%p2908_p10) target bundleno = 69 (0x45), region = 56  ;;  %376 = vst.msk [vmem:[#allocation2 + $0xf1] sm:$0xff] (!%p2908_p10), %vm315_vm1, %v2911_v23  ;;  %377 = vst.msk [vmem:[#allocation2 + $0xf9] sm:$0xff] (!%p2908_p10), %vm315_vm1, %v2912_v24  ;;  %v2914_v26 = vld [vmem:[%s3328_s10 + $0x98] sm:$0xff] (!%p2908_p10) }
  0x3f   : > { %378 = vst.msk [vmem:[#allocation2 + $0x109] sm:$0xff] (!%p2908_p10), %vm315_vm1, %v2913_v25  ;;  %379 = vst.msk [vmem:[#allocation2 + $0x111] sm:$0xff] (!%p2908_p10), %vm315_vm1, %v2914_v26 }
  0x45 PF: > { %v541_v27 = vld [vmem:[#allocation2 + $0x2] sm:$0xff]  ;;  %s3194_s19 = smov 8   ;;  %s3195_s25 = smov 4   ;;  %v663_v30 = vld [vmem:[#allocation2 + $0x18] sm:$0xff]  ;;  %v542_v31 = vld [vmem:[#allocation2 + $0xa] sm:$0xff]  ;;  %vm1482_vm2 = vcmask 1043456  }
  0x46   : > { %v420_v28 = vld [vmem:[#allocation2 + $0x1] sm:$0xff]  ;;  %581 = vrot.lane.b32.xlu1 %v541_v27, %s3194_s19  ;;  %v421_v32 = vld [vmem:[#allocation2 + $0x9] sm:$0xff]  ;;  %402 = vst.msk [vmem:[#allocation4 + $0x10] sm:$0xff] %vm315_vm1, %v663_v30  ;;  %v1027_v34 = vld [vmem:[#allocation2 + $0x38] sm:$0xff]  ;;  %s3196_s26 = smov 12   ;;  %s3197_s27 = smov 16  }
  0x47   : > { %460 = vrot.lane.b32.xlu0 %v420_v28, %s3195_s25  ;;  %v664_v29 = vld [vmem:[#allocation2 + $0x20] sm:$0xff]  ;;  %v1026_v33 = vld [vmem:[#allocation2 + $0x30] sm:$0xff]  ;;  %v3404_v35 = vld [vmem:[#allocation2 + $0x48] sm:$0xff]  ;;  %405 = vst.msk [vmem:[#allocation4 + $0x28] sm:$0xff] %vm315_vm1, %v1027_v34  ;;  %s3198_s28 = smov 20   ;;  %s3199_s29 = smov 24  }
  0x48   : > { %403 = vst.msk [vmem:[#allocation4 + $0x18] sm:$0xff] %vm315_vm1, %v664_v29  ;;  %404 = vst.msk [vmem:[#allocation4 + $0x20] sm:$0xff] %vm315_vm1, %v1026_v33  ;;  %v3407_v36 = vld [vmem:[#allocation2 + $0x50] sm:$0xff]  ;;  %v3411_v37 = vld [vmem:[#allocation2 + $0x60] sm:$0xff]  ;;  %s3200_s9 = smov 28   ;;  %s3201_s16 = smov 32  }
  0x49   : > { %406 = vst.msk [vmem:[#allocation4 + $0x30] sm:$0xff] %vm315_vm1, %v3404_v35  ;;  %407 = vst.msk [vmem:[#allocation4 + $0x38] sm:$0xff] %vm315_vm1, %v3407_v36  ;;  %v3415_v38 = vld [vmem:[#allocation2 + $0x68] sm:$0xff]  ;;  %v380_v39 = vld [vmem:[#allocation2] sm:$0xff]  ;;  %vm520_vm3 = vcmask 64544   ;;  %vm641_vm4 = vcmask 97344  }
  0x4a   : > { %583 = vrot.lane.b32.xlu1 %v542_v31, %s3194_s19  ;;  %408 = vst.msk [vmem:[#allocation4 + $0x40] sm:$0xff] %vm315_vm1, %v3411_v37  ;;  %v381_v40 = vld [vmem:[#allocation2 + $0x8] sm:$0xff]  ;;  %409 = vst.msk [vmem:[#allocation4 + $0x48] sm:$0xff] %vm315_vm1, %v3415_v38  ;;  %v422_v41 = vld [vmem:[#allocation2 + $0x19] sm:$0xff]  ;;  %vm763_vm5 = vcmask 130144   ;;  %vm884_vm6 = vcmask 162944  }
  0x4b   : > { %462 = vrot.lane.b32.xlu0 %v421_v32, %s3195_s25  ;;  %400 = vst.msk [vmem:[#allocation4] sm:$0xff] %vm315_vm1, %v380_v39  ;;  %401 = vst.msk [vmem:[#allocation4 + $0x8] sm:$0xff] %vm315_vm1, %v381_v40  ;;  %v3425_v42 = vld [vmem:[#allocation2 + $0x78] sm:$0xff]  ;;  %v3427_v43 = vld [vmem:[#allocation2 + $0x80] sm:$0xff]  ;;  %vm1005_vm7 = vcmask 195744   ;;  %vm1126_vm8 = vcmask 228544  }
  0x4c   : > { %410 = vst.msk [vmem:[#allocation4 + $0x50] sm:$0xff] %vm315_vm1, %v3425_v42  ;;  %411 = vst.msk [vmem:[#allocation4 + $0x58] sm:$0xff] %vm315_vm1, %v3427_v43  ;;  %v905_v44 = vld [vmem:[#allocation2 + $0x1a] sm:$0xff]  ;;  %v906_v46 = vld [vmem:[#allocation2 + $0x22] sm:$0xff]  ;;  %vm1247_vm9 = vcmask 261344   ;;  %vm1368_vm10 = vcmask 294144  }
  0x4d   : > { %v785_v45 = vld [vmem:[#allocation2 + $0x21] sm:$0xff]  ;;  %v3439_v47 = vld [vmem:[#allocation2 + $0x90] sm:$0xff]  ;;  %v3453_v51 = vld [vmem:[#allocation2 + $0x98] sm:$0xff]  ;;  %vm1421_vm11 = vcmask 293888  }
  0x4e   : > { %705 = vrot.lane.b32.xlu1 %v664_v29, %s3196_s26  ;;  %412 = vst.msk [vmem:[#allocation4 + $0x60] sm:$0xff] %vm315_vm1, %v3439_v47  ;;  %v1147_v48 = vld [vmem:[#allocation2 + $0x31] sm:$0xff]  ;;  %v1409_v49 = vld [vmem:[%s4337_s1] sm:$0xff]  ;;  %v1410_v50 = vld [vmem:[%s4337_s1 + $0x8] sm:$0xff] }
  0x4f   : > { %703 = vrot.lane.b32.xlu0 %v663_v30, %s3196_s26  ;;  %v3082_v52 = vpack.c.bf16 %v1410_v50, %v1409_v49  ;;  %413 = vst.msk [vmem:[#allocation4 + $0x68] sm:$0xff] %vm315_vm1, %v3453_v51  ;;  %v1411_v53 = vld [vmem:[%s4337_s1 + $0x10] sm:$0xff]  ;;  %v1412_v54 = vld [vmem:[%s4337_s1 + $0x18] sm:$0xff]  ;;  %v1413_v58 = vld [vmem:[%s4337_s1 + $0x20] sm:$0xf] }
  0x50   : > { %v3086_v55 = vpack.c.bf16 %v1412_v54, %v1411_v53  ;;  %v1268_v56 = vld [vmem:[#allocation2 + $0x32] sm:$0xff]  ;;  %v1269_v59 = vld [vmem:[#allocation2 + $0x3a] sm:$0xff]  ;;  %v3480_v60 = vld [vmem:[#allocation2 + $0xa8] sm:$0xff] }
  0x51   : > { %3083 = vmatprep.subr.bf16.mxu0 %v3082_v52  ;;  %v1148_v57 = vld [vmem:[#allocation2 + $0x39] sm:$0xff]  ;;  %414 = vst.msk [vmem:[#allocation4 + $0x70] sm:$0xff] %vm315_vm1, %v3480_v60  ;;  %v1149_v61 = vld [vmem:[#allocation2 + $0x49] sm:$0xff]  ;;  %v1150_v0 = vld [vmem:[#allocation2 + $0x51] sm:$0xff] }
  0x52   : > { %464 = vrot.lane.b32.xlu1 %v422_v41, %s3195_s25  ;;  %3085 = vmatpush3.bf16.msra.mxu0 %v3082_v52  ;;  %v3490_v62 = vld [vmem:[#allocation2 + $0xb0] sm:$0xff]  ;;  %v3508_v2 = vld [vmem:[#allocation2 + $0xc0] sm:$0xff]  ;;  %v3518_v4 = vld [vmem:[#allocation2 + $0xc8] sm:$0xff] }
  0x53   : > { %824 = vrot.lane.b32.xlu0 %v422_v41, %s3197_s27  ;;  %3087 = vmatprep.subr.bf16.mxu0 %v3086_v55  ;;  %415 = vst.msk [vmem:[#allocation4 + $0x78] sm:$0xff] %vm315_vm1, %v3490_v62  ;;  %v1270_v63 = vld [vmem:[#allocation2 + $0x4a] sm:$0xff]  ;;  %v1271_v1 = vld [vmem:[#allocation2 + $0x52] sm:$0xff]  ;;  %416 = vst.msk [vmem:[#allocation4 + $0x80] sm:$0xff] %vm315_vm1, %v3508_v2 }
  0x54   : > { %v1151_v3 = vld [vmem:[#allocation2 + $0x61] sm:$0xff]  ;;  %417 = vst.msk [vmem:[#allocation4 + $0x88] sm:$0xff] %vm315_vm1, %v3518_v4  ;;  %v1152_v6 = vld [vmem:[#allocation2 + $0x69] sm:$0xff]  ;;  %v3539_v12 = vld [vmem:[#allocation2 + $0xd8] sm:$0xff] }
  0x55   : > { %v1272_v5 = vld [vmem:[#allocation2 + $0x62] sm:$0xff]  ;;  %v1273_v7 = vld [vmem:[#allocation2 + $0x6a] sm:$0xff]  ;;  %418 = vst.msk [vmem:[#allocation4 + $0x90] sm:$0xff] %vm315_vm1, %v3539_v12  ;;  %v1153_v15 = vld [vmem:[#allocation2 + $0x79] sm:$0xff] }
  0x56   : > { %945 = vrot.lane.b32.xlu1 %v905_v44, %s3198_s28  ;;  %3089 = vmatpush3.bf16.msra.mxu0 %v3086_v55  ;;  %v3554_v18 = vld [vmem:[#allocation2 + $0xe0] sm:$0xff] }
  0x57   : > { %826 = vrot.lane.b32.xlu0 %v785_v45, %s3197_s27  ;;  %3016 = vmatprep.subr.msk.mxu0 %vm1482_vm2, %v1413_v58  ;;  %419 = vst.msk [vmem:[#allocation4 + $0x98] sm:$0xff] %vm315_vm1, %v3554_v18  ;;  %v1274_v21 = vld [vmem:[#allocation2 + $0x7a] sm:$0xff]  ;;  %v1275_v27 = vld [vmem:[#allocation2 + $0x82] sm:$0xff] }
  0x58   : > { %v1154_v22 = vld [vmem:[#allocation2 + $0x81] sm:$0xff] }
  0x59   : > { %v1277_v49 = vld [vmem:[#allocation2 + $0x9a] sm:$0xff] }
  0x5a   : > { %585 = vrot.lane.b32.xlu1 %v905_v44, %s3194_s19  ;;  %3017 = vmatpush3.msk.msra.mxu0 %vm1482_vm2, %v1413_v58  ;;  %v1157_v58 = vld [vmem:[#allocation2 + $0xa9] sm:$0xff] }
  0x5b   : > { %466 = vrot.lane.b32.xlu0 %v785_v45, %s3195_s25 }
  0x5e   : > { %1066 = vrot.lane.b32.xlu1 %v1026_v33, %s3199_s29 }
  0x5f   : > { %947 = vrot.lane.b32.xlu0 %v906_v46, %s3198_s28 }
  0x62   : > { %707 = vrot.lane.b32.xlu1 %v1026_v33, %s3196_s26 }
  0x63   : > { %587 = vrot.lane.b32.xlu0 %v906_v46, %s3194_s19 }
  0x66   : > { %1187 = vrot.lane.b32.xlu1 %v1147_v48, %s3200_s9 }
  0x67   : > { %1068 = vrot.lane.b32.xlu0 %v1027_v34, %s3199_s29 }
  0x6a   : > { %828 = vrot.lane.b32.xlu1 %v1147_v48, %s3197_s27 }
  0x6b   : > { %709 = vrot.lane.b32.xlu0 %v1027_v34, %s3196_s26 }
  0x6e   : > { %1308 = vrot.lane.b32.xlu1 %v1268_v56, %s3201_s16 }
  0x6f   : > { %1189 = vrot.lane.b32.xlu0 %v1148_v57, %s3200_s9 }
  0x72   : > { %830 = vrot.lane.b32.xlu1 %v1148_v57, %s3197_s27 }
  0x73   : > { %468 = vrot.lane.b32.xlu0 %v1147_v48, %s3195_s25 }
  0x76   : > { %1310 = vrot.lane.b32.xlu1 %v1269_v59, %s3201_s16 }
  0x77   : > { %949 = vrot.lane.b32.xlu0 %v1268_v56, %s3198_s28 }
  0x7a   : > { %589 = vrot.lane.b32.xlu1 %v1268_v56, %s3194_s19 }
  0x7b   : > { %470 = vrot.lane.b32.xlu0 %v1148_v57, %s3195_s25 }
  0x7e   : > { %1070 = vrot.lane.b32.xlu1 %v3404_v35, %s3199_s29 }
  0x7f   : > { %951 = vrot.lane.b32.xlu0 %v1269_v59, %s3198_s28 }
  0x82   : > { %711 = vrot.lane.b32.xlu1 %v3404_v35, %s3196_s26 }
  0x83   : > { %591 = vrot.lane.b32.xlu0 %v1269_v59, %s3194_s19 }
  0x86   : > { %1191 = vrot.lane.b32.xlu1 %v1149_v61, %s3200_s9 }
  0x87   : > { %1072 = vrot.lane.b32.xlu0 %v3407_v36, %s3199_s29 }
  0x8a   : > { %832 = vrot.lane.b32.xlu1 %v1149_v61, %s3197_s27 }
  0x8b   : > { %713 = vrot.lane.b32.xlu0 %v3407_v36, %s3196_s26  ;;  %v1155_v36 = vld [vmem:[#allocation2 + $0x91] sm:$0xff] }
  0x8e   : > { %1312 = vrot.lane.b32.xlu1 %v1270_v63, %s3201_s16 }
  0x8f   : > { %1193 = vrot.lane.b32.xlu0 %v1150_v0, %s3200_s9 }
  0x92   : > { %834 = vrot.lane.b32.xlu1 %v1150_v0, %s3197_s27 }
  0x93   : > { %472 = vrot.lane.b32.xlu0 %v1149_v61, %s3195_s25 }
  0x96   : > { %1314 = vrot.lane.b32.xlu1 %v1271_v1, %s3201_s16 }
  0x97   : > { %953 = vrot.lane.b32.xlu0 %v1270_v63, %s3198_s28 }
  0x9a   : > { %593 = vrot.lane.b32.xlu1 %v1270_v63, %s3194_s19 }
  0x9b   : > { %474 = vrot.lane.b32.xlu0 %v1150_v0, %s3195_s25 }
  0x9e   : > { %1074 = vrot.lane.b32.xlu1 %v3411_v37, %s3199_s29 }
  0x9f   : > { %955 = vrot.lane.b32.xlu0 %v1271_v1, %s3198_s28 }
  0xa2   : > { %715 = vrot.lane.b32.xlu1 %v3411_v37, %s3196_s26 }
  0xa3   : > { %595 = vrot.lane.b32.xlu0 %v1271_v1, %s3194_s19 }
  0xa6   : > { %1195 = vrot.lane.b32.xlu1 %v1151_v3, %s3200_s9 }
  0xa7   : > { %1076 = vrot.lane.b32.xlu0 %v3415_v38, %s3199_s29 }
  0xaa   : > { %836 = vrot.lane.b32.xlu1 %v1151_v3, %s3197_s27 }
  0xab   : > { %717 = vrot.lane.b32.xlu0 %v3415_v38, %s3196_s26 }
  0xae   : > { %1316 = vrot.lane.b32.xlu1 %v1272_v5, %s3201_s16 }
  0xaf   : > { %1197 = vrot.lane.b32.xlu0 %v1152_v6, %s3200_s9 }
  0xb2   : > { %838 = vrot.lane.b32.xlu1 %v1152_v6, %s3197_s27 }
  0xb3   : > { %476 = vrot.lane.b32.xlu0 %v1151_v3, %s3195_s25  ;;  %v1158_v3 = vld [vmem:[#allocation2 + $0xb1] sm:$0xff] }
  0xb6   : > { %1318 = vrot.lane.b32.xlu1 %v1273_v7, %s3201_s16 }
  0xb7   : > { %957 = vrot.lane.b32.xlu0 %v1272_v5, %s3198_s28 }
  0xb8   : > { %v582_v8 = vpop.permute.xlu1 %581 }
  0xb9   : > { %v461_v9 = vpop.permute.xlu0 %460 }
  0xba   : > { %521 = vst.msk [vmem:[#allocation4] sm:$0xff] %vm520_vm3, %v461_v9  ;;  %597 = vrot.lane.b32.xlu1 %v1272_v5, %s3194_s19 }
  0xbb   : > { %478 = vrot.lane.b32.xlu0 %v1152_v6, %s3195_s25  ;;  %642 = vst.msk [vmem:[#allocation4] sm:$0xff] %vm641_vm4, %v582_v8 }
  0xbc   : > { %v584_v10 = vpop.permute.xlu1 %583 }
  0xbd   : > { %v463_v11 = vpop.permute.xlu0 %462 }
  0xbe   : > { %522 = vst.msk [vmem:[#allocation4 + $0x8] sm:$0xff] %vm520_vm3, %v463_v11  ;;  %1078 = vrot.lane.b32.xlu1 %v3425_v42, %s3199_s29 }
  0xbf   : > { %959 = vrot.lane.b32.xlu0 %v1273_v7, %s3198_s28  ;;  %643 = vst.msk [vmem:[#allocation4 + $0x8] sm:$0xff] %vm641_vm4, %v584_v10 }
  0xc0   : > { %v706_v13 = vpop.permute.xlu1 %705 }
  0xc1   : > { %v704_v14 = vpop.permute.xlu0 %703  ;;  %765 = vst.msk [vmem:[#allocation4 + $0x8] sm:$0xff] %vm763_vm5, %v706_v13 }
  0xc2   : > { %764 = vst.msk [vmem:[#allocation4] sm:$0xff] %vm763_vm5, %v704_v14  ;;  %719 = vrot.lane.b32.xlu1 %v3425_v42, %s3196_s26  ;;  %v1276_v42 = vld [vmem:[#allocation2 + $0x92] sm:$0xff] }
  0xc3   : > { %599 = vrot.lane.b32.xlu0 %v1273_v7, %s3194_s19 }
  0xc4   : > { %v465_v16 = vpop.permute.xlu1 %464 }
  0xc5   : > { %v825_v17 = vpop.permute.xlu0 %824  ;;  %523 = vst.msk [vmem:[#allocation4 + $0x10] sm:$0xff] %vm520_vm3, %v465_v16 }
  0xc6   : > { %885 = vst.msk [vmem:[#allocation4] sm:$0xff] %vm884_vm6, %v825_v17  ;;  %1199 = vrot.lane.b32.xlu1 %v1153_v15, %s3200_s9 }
  0xc7   : > { %1080 = vrot.lane.b32.xlu0 %v3427_v43, %s3199_s29 }
  0xc8   : > { %v946_v19 = vpop.permute.xlu1 %945 }
  0xc9   : > { %v827_v20 = vpop.permute.xlu0 %826  ;;  %1006 = vst.msk [vmem:[#allocation4] sm:$0xff] %vm1005_vm7, %v946_v19 }
  0xca   : > { %886 = vst.msk [vmem:[#allocation4 + $0x8] sm:$0xff] %vm884_vm6, %v827_v20  ;;  %840 = vrot.lane.b32.xlu1 %v1153_v15, %s3197_s27  ;;  %v1159_v20 = vld [vmem:[#allocation2 + $0xc1] sm:$0xff] }
  0xcb   : > { %721 = vrot.lane.b32.xlu0 %v3427_v43, %s3196_s26  ;;  %v1156_v43 = vld [vmem:[#allocation2 + $0x99] sm:$0xff] }
  0xcc   : > { %v586_v23 = vpop.permute.xlu1 %585 }
  0xcd   : > { %v467_v24 = vpop.permute.xlu0 %466  ;;  %644 = vst.msk [vmem:[#allocation4 + $0x10] sm:$0xff] %vm641_vm4, %v586_v23 }
  0xce   : > { %524 = vst.msk [vmem:[#allocation4 + $0x18] sm:$0xff] %vm520_vm3, %v467_v24  ;;  %1320 = vrot.lane.b32.xlu1 %v1274_v21, %s3201_s16 }
  0xcf   : > { %1201 = vrot.lane.b32.xlu0 %v1154_v22, %s3200_s9 }
  0xd0   : > { %v1067_v25 = vpop.permute.xlu1 %1066 }
  0xd1   : > { %v948_v26 = vpop.permute.xlu0 %947  ;;  %1127 = vst.msk [vmem:[#allocation4] sm:$0xff] %vm1126_vm8, %v1067_v25 }
  0xd2   : > { %1007 = vst.msk [vmem:[#allocation4 + $0x8] sm:$0xff] %vm1005_vm7, %v948_v26  ;;  %842 = vrot.lane.b32.xlu1 %v1154_v22, %s3197_s27  ;;  %v1160_v26 = vld [vmem:[#allocation2 + $0xc9] sm:$0xff] }
  0xd3   : > { %480 = vrot.lane.b32.xlu0 %v1153_v15, %s3195_s25 }
  0xd4   : > { %v708_v28 = vpop.permute.xlu1 %707 }
  0xd5   : > { %v588_v29 = vpop.permute.xlu0 %587  ;;  %766 = vst.msk [vmem:[#allocation4 + $0x10] sm:$0xff] %vm763_vm5, %v708_v28 }
  0xd6   : > { %645 = vst.msk [vmem:[#allocation4 + $0x18] sm:$0xff] %vm641_vm4, %v588_v29  ;;  %1322 = vrot.lane.b32.xlu1 %v1275_v27, %s3201_s16 }
  0xd7   : > { %961 = vrot.lane.b32.xlu0 %v1274_v21, %s3198_s28 }
  0xd8   : > { %v1188_v30 = vpop.permute.xlu1 %1187 }
  0xd9   : > { %v1069_v31 = vpop.permute.xlu0 %1068  ;;  %1248 = vst.msk [vmem:[#allocation4] sm:$0xff] %vm1247_vm9, %v1188_v30 }
  0xda   : > { %1128 = vst.msk [vmem:[#allocation4 + $0x8] sm:$0xff] %vm1126_vm8, %v1069_v31  ;;  %601 = vrot.lane.b32.xlu1 %v1274_v21, %s3194_s19 }
  0xdb   : > { %482 = vrot.lane.b32.xlu0 %v1154_v22, %s3195_s25 }
  0xdc   : > { %v829_v32 = vpop.permute.xlu1 %828 }
  0xdd   : > { %v710_v33 = vpop.permute.xlu0 %709  ;;  %887 = vst.msk [vmem:[#allocation4 + $0x10] sm:$0xff] %vm884_vm6, %v829_v32 }
  0xde   : > { %767 = vst.msk [vmem:[#allocation4 + $0x18] sm:$0xff] %vm763_vm5, %v710_v33  ;;  %1082 = vrot.lane.b32.xlu1 %v3439_v47, %s3199_s29 }
  0xdf   : > { %963 = vrot.lane.b32.xlu0 %v1275_v27, %s3198_s28 }
  0xe0   : > { %v1309_v34 = vpop.permute.xlu1 %1308 }
  0xe1   : > { %v1190_v35 = vpop.permute.xlu0 %1189  ;;  %1369 = vst.msk [vmem:[#allocation4] sm:$0xff] %vm1368_vm10, %v1309_v34 }
  0xe2   : > { %1249 = vst.msk [vmem:[#allocation4 + $0x8] sm:$0xff] %vm1247_vm9, %v1190_v35  ;;  %723 = vrot.lane.b32.xlu1 %v3439_v47, %s3196_s26 }
  0xe3   : > { %603 = vrot.lane.b32.xlu0 %v1275_v27, %s3194_s19 }
  0xe4   : > { %v831_v37 = vpop.permute.xlu1 %830 }
  0xe5   : > { %v469_v38 = vpop.permute.xlu0 %468  ;;  %888 = vst.msk [vmem:[#allocation4 + $0x18] sm:$0xff] %vm884_vm6, %v831_v37 }
  0xe6   : > { %525 = vst.msk [vmem:[#allocation4 + $0x20] sm:$0xff] %vm520_vm3, %v469_v38  ;;  %1203 = vrot.lane.b32.xlu1 %v1155_v36, %s3200_s9 }
  0xe7   : > { %1084 = vrot.lane.b32.xlu0 %v3453_v51, %s3199_s29 }
  0xe8   : > { %v1311_v39 = vpop.permute.xlu1 %1310  ;;  %v1389_v41 = vld [vmem:[#allocation4] sm:$0xff] }
  0xe9   : > { %v950_v40 = vpop.permute.xlu0 %949  ;;  %1370 = vst.msk [vmem:[#allocation4 + $0x8] sm:$0xff] %vm1368_vm10, %v1311_v39  ;;  %3018 = vmatprep.mubr.msk.f32.mxu0 %vm1421_vm11, %v1389_v41 }
  0xea   : > { %1008 = vst.msk [vmem:[#allocation4 + $0x10] sm:$0xff] %vm1005_vm7, %v950_v40  ;;  %844 = vrot.lane.b32.xlu1 %v1155_v36, %s3197_s27  ;;  %v1161_v40 = vld [vmem:[#allocation2 + $0xd9] sm:$0xff] }
  0xeb   : > { %725 = vrot.lane.b32.xlu0 %v3453_v51, %s3196_s26 }
  0xec   : > { %v590_v44 = vpop.permute.xlu1 %589 }
  0xed   : > { %v471_v45 = vpop.permute.xlu0 %470  ;;  %646 = vst.msk [vmem:[#allocation4 + $0x20] sm:$0xff] %vm641_vm4, %v590_v44 }
  0xee   : > { %526 = vst.msk [vmem:[#allocation4 + $0x28] sm:$0xff] %vm520_vm3, %v471_v45  ;;  %1324 = vrot.lane.b32.xlu1 %v1276_v42, %s3201_s16 }
  0xef   : > { %1205 = vrot.lane.b32.xlu0 %v1156_v43, %s3200_s9 }
  0xf0   : > { %v1071_v46 = vpop.permute.xlu1 %1070  ;;  %v1390_v48 = vld [vmem:[#allocation4 + $0x8] sm:$0xff] }
  0xf1   : > { %v952_v47 = vpop.permute.xlu0 %951  ;;  %1129 = vst.msk [vmem:[#allocation4 + $0x10] sm:$0xff] %vm1126_vm8, %v1071_v46  ;;  %3019 = vmatmul.mubr.msk.f32.vlgmr.msra.gmra.mrb[0].mxu0 %vm1421_vm11, %v1390_v48  ;;  %v1162_v46 = vld [vmem:[#allocation2 + $0xe1] sm:$0xff] }
  0xf2   : > { %1009 = vst.msk [vmem:[#allocation4 + $0x18] sm:$0xff] %vm1005_vm7, %v952_v47  ;;  %846 = vrot.lane.b32.xlu1 %v1156_v43, %s3197_s27 }
  0xf3   : > { %484 = vrot.lane.b32.xlu0 %v1155_v36, %s3195_s25 }
  0xf4   : > { %v712_v50 = vpop.permute.xlu1 %711 }
  0xf5   : > { %v592_v51 = vpop.permute.xlu0 %591  ;;  %768 = vst.msk [vmem:[#allocation4 + $0x20] sm:$0xff] %vm763_vm5, %v712_v50 }
  0xf6   : > { %647 = vst.msk [vmem:[#allocation4 + $0x28] sm:$0xff] %vm641_vm4, %v592_v51  ;;  %1326 = vrot.lane.b32.xlu1 %v1277_v49, %s3201_s16 }
  0xf7   : > { %965 = vrot.lane.b32.xlu0 %v1276_v42, %s3198_s28 }
  0xf8   : > { %v1192_v52 = vpop.permute.xlu1 %1191 }
  0xf9   : > { %v1073_v53 = vpop.permute.xlu0 %1072  ;;  %1250 = vst.msk [vmem:[#allocation4 + $0x10] sm:$0xff] %vm1247_vm9, %v1192_v52 }
  0xfa   : > { %1130 = vst.msk [vmem:[#allocation4 + $0x18] sm:$0xff] %vm1126_vm8, %v1073_v53  ;;  %605 = vrot.lane.b32.xlu1 %v1276_v42, %s3194_s19 }
  0xfb   : > { %486 = vrot.lane.b32.xlu0 %v1156_v43, %s3195_s25 }
  0xfc   : > { %v833_v54 = vpop.permute.xlu1 %832 }
  0xfd   : > { %v714_v55 = vpop.permute.xlu0 %713  ;;  %889 = vst.msk [vmem:[#allocation4 + $0x20] sm:$0xff] %vm884_vm6, %v833_v54 }
  0xfe   : > { %769 = vst.msk [vmem:[#allocation4 + $0x28] sm:$0xff] %vm763_vm5, %v714_v55  ;;  %1086 = vrot.lane.b32.xlu1 %v3480_v60, %s3199_s29 }
  0xff   : > { %967 = vrot.lane.b32.xlu0 %v1277_v49, %s3198_s28 }
 0x100   : > { %v1313_v56 = vpop.permute.xlu1 %1312 }
 0x101   : > { %v1194_v57 = vpop.permute.xlu0 %1193  ;;  %1371 = vst.msk [vmem:[#allocation4 + $0x10] sm:$0xff] %vm1368_vm10, %v1313_v56  ;;  %v1042_v56 = vld [vmem:[#allocation2 + $0xf0] sm:$0xff] }
 0x102   : > { %1251 = vst.msk [vmem:[#allocation4 + $0x18] sm:$0xff] %vm1247_vm9, %v1194_v57  ;;  %727 = vrot.lane.b32.xlu1 %v3480_v60, %s3196_s26  ;;  %v1278_v60 = vld [vmem:[#allocation2 + $0xaa] sm:$0xff] }
 0x103   : > { %607 = vrot.lane.b32.xlu0 %v1277_v49, %s3194_s19 }
 0x104   : > { %v835_v59 = vpop.permute.xlu1 %834 }
 0x105   : > { %v473_v61 = vpop.permute.xlu0 %472  ;;  %890 = vst.msk [vmem:[#allocation4 + $0x28] sm:$0xff] %vm884_vm6, %v835_v59 }
 0x106   : > { %527 = vst.msk [vmem:[#allocation4 + $0x30] sm:$0xff] %vm520_vm3, %v473_v61  ;;  %1207 = vrot.lane.b32.xlu1 %v1157_v58, %s3200_s9 }
 0x107   : > { %1088 = vrot.lane.b32.xlu0 %v3490_v62, %s3199_s29 }
 0x108   : > { %v1315_v63 = vpop.permute.xlu1 %1314  ;;  %v1391_v1 = vld [vmem:[#allocation4 + $0x10] sm:$0xff] }
 0x109   : > { %v954_v0 = vpop.permute.xlu0 %953  ;;  %1372 = vst.msk [vmem:[#allocation4 + $0x18] sm:$0xff] %vm1368_vm10, %v1315_v63  ;;  %3021 = vmatprep.mubr.msk.f32.mxu0 %vm1421_vm11, %v1391_v1  ;;  %v1043_v63 = vld [vmem:[#allocation2 + $0xf8] sm:$0xff] }
 0x10a   : > { %1010 = vst.msk [vmem:[#allocation4 + $0x20] sm:$0xff] %vm1005_vm7, %v954_v0  ;;  %848 = vrot.lane.b32.xlu1 %v1157_v58, %s3197_s27  ;;  %v1163_v0 = vld [vmem:[#allocation2 + $0xf1] sm:$0xff] }
 0x10b   : > { %729 = vrot.lane.b32.xlu0 %v3490_v62, %s3196_s26  ;;  %v1279_v62 = vld [vmem:[#allocation2 + $0xb2] sm:$0xff] }
 0x10c   : > { %v594_v5 = vpop.permute.xlu1 %593 }
 0x10d   : > { %v475_v6 = vpop.permute.xlu0 %474  ;;  %648 = vst.msk [vmem:[#allocation4 + $0x30] sm:$0xff] %vm641_vm4, %v594_v5 }
 0x10e   : > { %528 = vst.msk [vmem:[#allocation4 + $0x38] sm:$0xff] %vm520_vm3, %v475_v6  ;;  %1328 = vrot.lane.b32.xlu1 %v1278_v60, %s3201_s16 }
 0x10f   : > { %1209 = vrot.lane.b32.xlu0 %v1158_v3, %s3200_s9 }
 0x110   : > { %v1075_v7 = vpop.permute.xlu1 %1074  ;;  %v1392_v9 = vld [vmem:[#allocation4 + $0x18] sm:$0xff] }
 0x111   : > { %v956_v8 = vpop.permute.xlu0 %955  ;;  %1131 = vst.msk [vmem:[#allocation4 + $0x20] sm:$0xff] %vm1126_vm8, %v1075_v7  ;;  %3022 = vmatmul.mubr.msk.f32.gmra.mrb[2].mxu0 %vm1421_vm11, %v1392_v9  ;;  %v1164_v7 = vld [vmem:[#allocation2 + $0xf9] sm:$0xff] }
 0x112   : > { %1011 = vst.msk [vmem:[#allocation4 + $0x28] sm:$0xff] %vm1005_vm7, %v956_v8  ;;  %850 = vrot.lane.b32.xlu1 %v1158_v3, %s3197_s27  ;;  %v1284_v8 = vld [vmem:[#allocation2 + $0xf2] sm:$0xff] }
 0x113   : > { %488 = vrot.lane.b32.xlu0 %v1157_v58, %s3195_s25 }
 0x114   : > { %v716_v10 = vpop.permute.xlu1 %715 }
 0x115   : > { %v596_v11 = vpop.permute.xlu0 %595  ;;  %770 = vst.msk [vmem:[#allocation4 + $0x30] sm:$0xff] %vm763_vm5, %v716_v10 }
 0x116   : > { %649 = vst.msk [vmem:[#allocation4 + $0x38] sm:$0xff] %vm641_vm4, %v596_v11  ;;  %1330 = vrot.lane.b32.xlu1 %v1279_v62, %s3201_s16 }
 0x117   : > { %969 = vrot.lane.b32.xlu0 %v1278_v60, %s3198_s28 }
 0x118   : > { %v1196_v13 = vpop.permute.xlu1 %1195 }
 0x119   : > { %v1077_v14 = vpop.permute.xlu0 %1076  ;;  %1252 = vst.msk [vmem:[#allocation4 + $0x20] sm:$0xff] %vm1247_vm9, %v1196_v13 }
 0x11a   : > { %1132 = vst.msk [vmem:[#allocation4 + $0x28] sm:$0xff] %vm1126_vm8, %v1077_v14  ;;  %609 = vrot.lane.b32.xlu1 %v1278_v60, %s3194_s19  ;;  %v1285_v14 = vld [vmem:[#allocation2 + $0xfa] sm:$0xff] }
 0x11b   : > { %490 = vrot.lane.b32.xlu0 %v1158_v3, %s3195_s25 }
 0x11c   : > { %v837_v15 = vpop.permute.xlu1 %836 }
 0x11d   : > { %v718_v16 = vpop.permute.xlu0 %717  ;;  %891 = vst.msk [vmem:[#allocation4 + $0x30] sm:$0xff] %vm884_vm6, %v837_v15 }
 0x11e   : > { %771 = vst.msk [vmem:[#allocation4 + $0x38] sm:$0xff] %vm763_vm5, %v718_v16  ;;  %1090 = vrot.lane.b32.xlu1 %v3508_v2, %s3199_s29 }
 0x11f   : > { %971 = vrot.lane.b32.xlu0 %v1279_v62, %s3198_s28 }
 0x120   : > { %v1317_v17 = vpop.permute.xlu1 %1316 }
 0x121   : > { %v1198_v19 = vpop.permute.xlu0 %1197  ;;  %1373 = vst.msk [vmem:[#allocation4 + $0x20] sm:$0xff] %vm1368_vm10, %v1317_v17  ;;  %v1044_v17 = vld [vmem:[#allocation2 + $0x108] sm:$0xff] }
 0x122   : > { %1253 = vst.msk [vmem:[#allocation4 + $0x28] sm:$0xff] %vm1247_vm9, %v1198_v19  ;;  %731 = vrot.lane.b32.xlu1 %v3508_v2, %s3196_s26  ;;  %v1280_v2 = vld [vmem:[#allocation2 + $0xc2] sm:$0xff]  ;;  %v1045_v19 = vld [vmem:[#allocation2 + $0x110] sm:$0xff] }
 0x123   : > { %611 = vrot.lane.b32.xlu0 %v1279_v62, %s3194_s19 }
 0x124   : > { %v839_v21 = vpop.permute.xlu1 %838 }
 0x125   : > { %v477_v22 = vpop.permute.xlu0 %476  ;;  %892 = vst.msk [vmem:[#allocation4 + $0x38] sm:$0xff] %vm884_vm6, %v839_v21 }
 0x126   : > { %529 = vst.msk [vmem:[#allocation4 + $0x40] sm:$0xff] %vm520_vm3, %v477_v22  ;;  %1211 = vrot.lane.b32.xlu1 %v1159_v20, %s3200_s9  ;;  %v1165_v22 = vld [vmem:[#allocation2 + $0x109] sm:$0xff] }
 0x127   : > { %1092 = vrot.lane.b32.xlu0 %v3518_v4, %s3199_s29 }
 0x128   : > { %v1319_v23 = vpop.permute.xlu1 %1318  ;;  %v1393_v25 = vld [vmem:[#allocation4 + $0x20] sm:$0xff] }
 0x129   : > { %v958_v24 = vpop.permute.xlu0 %957  ;;  %1374 = vst.msk [vmem:[#allocation4 + $0x28] sm:$0xff] %vm1368_vm10, %v1319_v23  ;;  %3024 = vmatprep.mubr.msk.f32.mxu0 %vm1421_vm11, %v1393_v25  ;;  %v1166_v23 = vld [vmem:[#allocation2 + $0x111] sm:$0xff] }
 0x12a   : > { %1012 = vst.msk [vmem:[#allocation4 + $0x30] sm:$0xff] %vm1005_vm7, %v958_v24  ;;  %852 = vrot.lane.b32.xlu1 %v1159_v20, %s3197_s27 }
 0x12b   : > { %733 = vrot.lane.b32.xlu0 %v3518_v4, %s3196_s26  ;;  %v1281_v4 = vld [vmem:[#allocation2 + $0xca] sm:$0xff] }
 0x12c   : > { %v598_v27 = vpop.permute.xlu1 %597 }
 0x12d   : > { %v479_v28 = vpop.permute.xlu0 %478  ;;  %650 = vst.msk [vmem:[#allocation4 + $0x40] sm:$0xff] %vm641_vm4, %v598_v27 }
 0x12e   : > { %530 = vst.msk [vmem:[#allocation4 + $0x48] sm:$0xff] %vm520_vm3, %v479_v28  ;;  %1332 = vrot.lane.b32.xlu1 %v1280_v2, %s3201_s16 }
 0x12f   : > { %1213 = vrot.lane.b32.xlu0 %v1160_v26, %s3200_s9 }
 0x130   : > { %v1079_v29 = vpop.permute.xlu1 %1078  ;;  %v1394_v31 = vld [vmem:[#allocation4 + $0x28] sm:$0xff] }
 0x131   : > { %v960_v30 = vpop.permute.xlu0 %959  ;;  %1133 = vst.msk [vmem:[#allocation4 + $0x30] sm:$0xff] %vm1126_vm8, %v1079_v29  ;;  %3025 = vmatmul.mubr.msk.f32.gmra.mrb[4].mxu0 %vm1421_vm11, %v1394_v31 }
 0x132   : > { %1013 = vst.msk [vmem:[#allocation4 + $0x38] sm:$0xff] %vm1005_vm7, %v960_v30  ;;  %854 = vrot.lane.b32.xlu1 %v1160_v26, %s3197_s27 }
 0x133   : > { %492 = vrot.lane.b32.xlu0 %v1159_v20, %s3195_s25 }
 0x134   : > { %v720_v32 = vpop.permute.xlu1 %719 }
 0x135   : > { %v600_v33 = vpop.permute.xlu0 %599  ;;  %772 = vst.msk [vmem:[#allocation4 + $0x40] sm:$0xff] %vm763_vm5, %v720_v32 }
 0x136   : > { %651 = vst.msk [vmem:[#allocation4 + $0x48] sm:$0xff] %vm641_vm4, %v600_v33  ;;  %1334 = vrot.lane.b32.xlu1 %v1281_v4, %s3201_s16 }
 0x137   : > { %973 = vrot.lane.b32.xlu0 %v1280_v2, %s3198_s28 }
 0x138   : > { %v1200_v34 = vpop.permute.xlu1 %1199 }
 0x139   : > { %v1081_v35 = vpop.permute.xlu0 %1080  ;;  %1254 = vst.msk [vmem:[#allocation4 + $0x30] sm:$0xff] %vm1247_vm9, %v1200_v34 }
 0x13a   : > { %1134 = vst.msk [vmem:[#allocation4 + $0x38] sm:$0xff] %vm1126_vm8, %v1081_v35  ;;  %613 = vrot.lane.b32.xlu1 %v1280_v2, %s3194_s19  ;;  %v1286_v2 = vld [vmem:[#allocation2 + $0x10a] sm:$0xff] }
 0x13b   : > { %494 = vrot.lane.b32.xlu0 %v1160_v26, %s3195_s25  ;;  %v1287_v26 = vld [vmem:[#allocation2 + $0x112] sm:$0xff] }
 0x13c   : > { %v841_v36 = vpop.permute.xlu1 %840 }
 0x13d   : > { %v722_v37 = vpop.permute.xlu0 %721  ;;  %893 = vst.msk [vmem:[#allocation4 + $0x40] sm:$0xff] %vm884_vm6, %v841_v36 }
 0x13e   : > { %773 = vst.msk [vmem:[#allocation4 + $0x48] sm:$0xff] %vm763_vm5, %v722_v37  ;;  %1094 = vrot.lane.b32.xlu1 %v3539_v12, %s3199_s29 }
 0x13f   : > { %975 = vrot.lane.b32.xlu0 %v1281_v4, %s3198_s28 }
 0x140   : > { %v1321_v38 = vpop.permute.xlu1 %1320 }
 0x141   : > { %v1202_v39 = vpop.permute.xlu0 %1201  ;;  %1375 = vst.msk [vmem:[#allocation4 + $0x30] sm:$0xff] %vm1368_vm10, %v1321_v38 }
 0x142   : > { %1255 = vst.msk [vmem:[#allocation4 + $0x38] sm:$0xff] %vm1247_vm9, %v1202_v39  ;;  %735 = vrot.lane.b32.xlu1 %v3539_v12, %s3196_s26  ;;  %v1282_v12 = vld [vmem:[#allocation2 + $0xda] sm:$0xff] }
 0x143   : > { %615 = vrot.lane.b32.xlu0 %v1281_v4, %s3194_s19 }
 0x144   : > { %v843_v41 = vpop.permute.xlu1 %842 }
 0x145   : > { %v481_v42 = vpop.permute.xlu0 %480  ;;  %894 = vst.msk [vmem:[#allocation4 + $0x48] sm:$0xff] %vm884_vm6, %v843_v41 }
 0x146   : > { %531 = vst.msk [vmem:[#allocation4 + $0x50] sm:$0xff] %vm520_vm3, %v481_v42  ;;  %1215 = vrot.lane.b32.xlu1 %v1161_v40, %s3200_s9 }
 0x147   : > { %1096 = vrot.lane.b32.xlu0 %v3554_v18, %s3199_s29 }
 0x148   : > { %v1323_v43 = vpop.permute.xlu1 %1322  ;;  %v1395_v45 = vld [vmem:[#allocation4 + $0x30] sm:$0xff] }
 0x149   : > { %v962_v44 = vpop.permute.xlu0 %961  ;;  %1376 = vst.msk [vmem:[#allocation4 + $0x38] sm:$0xff] %vm1368_vm10, %v1323_v43  ;;  %3027 = vmatprep.mubr.msk.f32.mxu0 %vm1421_vm11, %v1395_v45 }
 0x14a   : > { %1014 = vst.msk [vmem:[#allocation4 + $0x40] sm:$0xff] %vm1005_vm7, %v962_v44  ;;  %856 = vrot.lane.b32.xlu1 %v1161_v40, %s3197_s27 }
 0x14b   : > { %737 = vrot.lane.b32.xlu0 %v3554_v18, %s3196_s26  ;;  %v1283_v18 = vld [vmem:[#allocation2 + $0xe2] sm:$0xff] }
 0x14c   : > { %v602_v47 = vpop.permute.xlu1 %601 }
 0x14d   : > { %v483_v48 = vpop.permute.xlu0 %482  ;;  %652 = vst.msk [vmem:[#allocation4 + $0x50] sm:$0xff] %vm641_vm4, %v602_v47 }
 0x14e   : > { %532 = vst.msk [vmem:[#allocation4 + $0x58] sm:$0xff] %vm520_vm3, %v483_v48  ;;  %1336 = vrot.lane.b32.xlu1 %v1282_v12, %s3201_s16 }
 0x14f   : > { %1217 = vrot.lane.b32.xlu0 %v1162_v46, %s3200_s9 }
 0x150   : > { %v1083_v49 = vpop.permute.xlu1 %1082  ;;  %v1396_v51 = vld [vmem:[#allocation4 + $0x38] sm:$0xff] }
 0x151   : > { %v964_v50 = vpop.permute.xlu0 %963  ;;  %1135 = vst.msk [vmem:[#allocation4 + $0x40] sm:$0xff] %vm1126_vm8, %v1083_v49  ;;  %3028 = vmatmul.mubr.msk.f32.gmra.mrb[6].mxu0 %vm1421_vm11, %v1396_v51 }
 0x152   : > { %1015 = vst.msk [vmem:[#allocation4 + $0x48] sm:$0xff] %vm1005_vm7, %v964_v50  ;;  %858 = vrot.lane.b32.xlu1 %v1162_v46, %s3197_s27 }
 0x153   : > { %496 = vrot.lane.b32.xlu0 %v1161_v40, %s3195_s25 }
 0x154   : > { %v724_v52 = vpop.permute.xlu1 %723 }
 0x155   : > { %v604_v53 = vpop.permute.xlu0 %603  ;;  %774 = vst.msk [vmem:[#allocation4 + $0x50] sm:$0xff] %vm763_vm5, %v724_v52 }
 0x156   : > { %653 = vst.msk [vmem:[#allocation4 + $0x58] sm:$0xff] %vm641_vm4, %v604_v53  ;;  %1338 = vrot.lane.b32.xlu1 %v1283_v18, %s3201_s16 }
 0x157   : > { %977 = vrot.lane.b32.xlu0 %v1282_v12, %s3198_s28 }
 0x158   : > { %v1204_v54 = vpop.permute.xlu1 %1203 }
 0x159   : > { %v1085_v55 = vpop.permute.xlu0 %1084  ;;  %1256 = vst.msk [vmem:[#allocation4 + $0x40] sm:$0xff] %vm1247_vm9, %v1204_v54 }
 0x15a   : > { %1136 = vst.msk [vmem:[#allocation4 + $0x48] sm:$0xff] %vm1126_vm8, %v1085_v55  ;;  %617 = vrot.lane.b32.xlu1 %v1282_v12, %s3194_s19 }
 0x15b   : > { %498 = vrot.lane.b32.xlu0 %v1162_v46, %s3195_s25 }
 0x15c   : > { %v845_v57 = vpop.permute.xlu1 %844 }
 0x15d   : > { %v726_v58 = vpop.permute.xlu0 %725  ;;  %895 = vst.msk [vmem:[#allocation4 + $0x50] sm:$0xff] %vm884_vm6, %v845_v57 }
 0x15e   : > { %775 = vst.msk [vmem:[#allocation4 + $0x58] sm:$0xff] %vm763_vm5, %v726_v58  ;;  %1098 = vrot.lane.b32.xlu1 %v1042_v56, %s3199_s29 }
 0x15f   : > { %979 = vrot.lane.b32.xlu0 %v1283_v18, %s3198_s28 }
 0x160   : > { %v1325_v59 = vpop.permute.xlu1 %1324 }
 0x161   : > { %v1206_v61 = vpop.permute.xlu0 %1205  ;;  %1377 = vst.msk [vmem:[#allocation4 + $0x40] sm:$0xff] %vm1368_vm10, %v1325_v59 }
 0x162   : > { %1257 = vst.msk [vmem:[#allocation4 + $0x48] sm:$0xff] %vm1247_vm9, %v1206_v61  ;;  %739 = vrot.lane.b32.xlu1 %v1042_v56, %s3196_s26 }
 0x163   : > { %619 = vrot.lane.b32.xlu0 %v1283_v18, %s3194_s19 }
 0x164   : > { %v847_v1 = vpop.permute.xlu1 %846 }
 0x165   : > { %v485_v60 = vpop.permute.xlu0 %484  ;;  %896 = vst.msk [vmem:[#allocation4 + $0x58] sm:$0xff] %vm884_vm6, %v847_v1 }
 0x166   : > { %533 = vst.msk [vmem:[#allocation4 + $0x60] sm:$0xff] %vm520_vm3, %v485_v60  ;;  %1219 = vrot.lane.b32.xlu1 %v1163_v0, %s3200_s9 }
 0x167   : > { %1100 = vrot.lane.b32.xlu0 %v1043_v63, %s3199_s29 }
 0x168   : > { %v1327_v3 = vpop.permute.xlu1 %1326  ;;  %v1397_v6 = vld [vmem:[#allocation4 + $0x40] sm:$0xff] }
 0x169   : > { %v966_v5 = vpop.permute.xlu0 %965  ;;  %1378 = vst.msk [vmem:[#allocation4 + $0x48] sm:$0xff] %vm1368_vm10, %v1327_v3  ;;  %3030 = vmatprep.mubr.msk.f32.mxu0 %vm1421_vm11, %v1397_v6 }
 0x16a   : > { %1016 = vst.msk [vmem:[#allocation4 + $0x50] sm:$0xff] %vm1005_vm7, %v966_v5  ;;  %860 = vrot.lane.b32.xlu1 %v1163_v0, %s3197_s27  ;;  %v3815_v0 = vld [vmem:[%s4338_s2] ss:$0 sm:$0xff] }
 0x16b   : > { %741 = vrot.lane.b32.xlu0 %v1043_v63, %s3196_s26 }
 0x16c   : > { %v606_v9 = vpop.permute.xlu1 %605 }
 0x16d   : > { %v487_v62 = vpop.permute.xlu0 %486  ;;  %654 = vst.msk [vmem:[#allocation4 + $0x60] sm:$0xff] %vm641_vm4, %v606_v9 }
 0x16e   : > { %534 = vst.msk [vmem:[#allocation4 + $0x68] sm:$0xff] %vm520_vm3, %v487_v62  ;;  %1340 = vrot.lane.b32.xlu1 %v1284_v8, %s3201_s16 }
 0x16f   : > { %1221 = vrot.lane.b32.xlu0 %v1164_v7, %s3200_s9 }
 0x170   : > { %v1087_v10 = vpop.permute.xlu1 %1086  ;;  %v1398_v13 = vld [vmem:[#allocation4 + $0x48] sm:$0xff] }
 0x171   : > { %v968_v11 = vpop.permute.xlu0 %967  ;;  %1137 = vst.msk [vmem:[#allocation4 + $0x50] sm:$0xff] %vm1126_vm8, %v1087_v10  ;;  %3031 = vmatmul.mubr.msk.f32.gmra.mrb[8].mxu0 %vm1421_vm11, %v1398_v13 }
 0x172   : > { %1017 = vst.msk [vmem:[#allocation4 + $0x58] sm:$0xff] %vm1005_vm7, %v968_v11  ;;  %981 = vrot.lane.b32.xlu1 %v1284_v8, %s3198_s28 }
 0x173   : > { %862 = vrot.lane.b32.xlu0 %v1164_v7, %s3197_s27 }
 0x174   : > { %v728_v15 = vpop.permute.xlu1 %727 }
 0x175   : > { %v608_v16 = vpop.permute.xlu0 %607  ;;  %776 = vst.msk [vmem:[#allocation4 + $0x60] sm:$0xff] %vm763_vm5, %v728_v15 }
 0x176   : > { %655 = vst.msk [vmem:[#allocation4 + $0x68] sm:$0xff] %vm641_vm4, %v608_v16  ;;  %983 = vrot.lane.b32.xlu1 %v1285_v14, %s3198_s28 }
 0x177   : > { %1342 = vrot.lane.b32.xlu0 %v1285_v14, %s3201_s16 }
 0x178   : > { %v1208_v20 = vpop.permute.xlu1 %1207 }
 0x179   : > { %v1089_v21 = vpop.permute.xlu0 %1088  ;;  %1258 = vst.msk [vmem:[#allocation4 + $0x50] sm:$0xff] %vm1247_vm9, %v1208_v20 }
 0x17a   : > { %1138 = vst.msk [vmem:[#allocation4 + $0x58] sm:$0xff] %vm1126_vm8, %v1089_v21  ;;  %1104 = vrot.lane.b32.xlu1 %v1045_v19, %s3199_s29 }
 0x17b   : > { %1102 = vrot.lane.b32.xlu0 %v1044_v17, %s3199_s29 }
 0x17c   : > { %v849_v24 = vpop.permute.xlu1 %848 }
 0x17d   : > { %v730_v25 = vpop.permute.xlu0 %729  ;;  %897 = vst.msk [vmem:[#allocation4 + $0x60] sm:$0xff] %vm884_vm6, %v849_v24 }
 0x17e   : > { %777 = vst.msk [vmem:[#allocation4 + $0x68] sm:$0xff] %vm763_vm5, %v730_v25  ;;  %1225 = vrot.lane.b32.xlu1 %v1166_v23, %s3200_s9 }
 0x17f   : > { %1223 = vrot.lane.b32.xlu0 %v1165_v22, %s3200_s9 }
 0x180   : > { %v1329_v27 = vpop.permute.xlu1 %1328 }
 0x181   : > { %v1210_v28 = vpop.permute.xlu0 %1209  ;;  %1379 = vst.msk [vmem:[#allocation4 + $0x50] sm:$0xff] %vm1368_vm10, %v1329_v27 }
 0x182   : > { %1259 = vst.msk [vmem:[#allocation4 + $0x58] sm:$0xff] %vm1247_vm9, %v1210_v28  ;;  %1346 = vrot.lane.b32.xlu1 %v1287_v26, %s3201_s16 }
 0x183   : > { %1344 = vrot.lane.b32.xlu0 %v1286_v2, %s3201_s16 }
 0x184   : > { %v851_v29 = vpop.permute.xlu1 %850 }
 0x185   : > { %v489_v30 = vpop.permute.xlu0 %488  ;;  %898 = vst.msk [vmem:[#allocation4 + $0x68] sm:$0xff] %vm884_vm6, %v851_v29 }
 0x186   : > { %535 = vst.msk [vmem:[#allocation4 + $0x70] sm:$0xff] %vm520_vm3, %v489_v30 }
 0x188   : > { %v1331_v31 = vpop.permute.xlu1 %1330  ;;  %v1399_v32 = vld [vmem:[#allocation4 + $0x50] sm:$0xff] }
 0x189   : > { %v970_v4 = vpop.permute.xlu0 %969  ;;  %1380 = vst.msk [vmem:[#allocation4 + $0x58] sm:$0xff] %vm1368_vm10, %v1331_v31  ;;  %3033 = vmatprep.mubr.msk.f32.mxu0 %vm1421_vm11, %v1399_v32 }
 0x18a   : > { %1018 = vst.msk [vmem:[#allocation4 + $0x60] sm:$0xff] %vm1005_vm7, %v970_v4 }
 0x18c   : > { %v610_v33 = vpop.permute.xlu1 %609 }
 0x18d   : > { %v491_v34 = vpop.permute.xlu0 %490  ;;  %656 = vst.msk [vmem:[#allocation4 + $0x70] sm:$0xff] %vm641_vm4, %v610_v33 }
 0x18e   : > { %536 = vst.msk [vmem:[#allocation4 + $0x78] sm:$0xff] %vm520_vm3, %v491_v34 }
 0x190   : > { %v1091_v35 = vpop.permute.xlu1 %1090  ;;  %v1400_v37 = vld [vmem:[#allocation4 + $0x58] sm:$0xff] }
 0x191   : > { %v972_v36 = vpop.permute.xlu0 %971  ;;  %1139 = vst.msk [vmem:[#allocation4 + $0x60] sm:$0xff] %vm1126_vm8, %v1091_v35  ;;  %3034 = vmatmul.mubr.msk.f32.gmra.mrb[10].mxu0 %vm1421_vm11, %v1400_v37 }
 0x192   : > { %1019 = vst.msk [vmem:[#allocation4 + $0x68] sm:$0xff] %vm1005_vm7, %v972_v36 }
 0x194   : > { %v732_v38 = vpop.permute.xlu1 %731 }
 0x195   : > { %v612_v39 = vpop.permute.xlu0 %611  ;;  %778 = vst.msk [vmem:[#allocation4 + $0x70] sm:$0xff] %vm763_vm5, %v732_v38 }
 0x196   : > { %657 = vst.msk [vmem:[#allocation4 + $0x78] sm:$0xff] %vm641_vm4, %v612_v39 }
 0x198   : > { %v1212_v40 = vpop.permute.xlu1 %1211 }
 0x199   : > { %v1093_v41 = vpop.permute.xlu0 %1092  ;;  %1260 = vst.msk [vmem:[#allocation4 + $0x60] sm:$0xff] %vm1247_vm9, %v1212_v40 }
 0x19a   : > { %1140 = vst.msk [vmem:[#allocation4 + $0x68] sm:$0xff] %vm1126_vm8, %v1093_v41 }
 0x19c   : > { %v853_v42 = vpop.permute.xlu1 %852 }
 0x19d   : > { %v734_v43 = vpop.permute.xlu0 %733  ;;  %899 = vst.msk [vmem:[#allocation4 + $0x70] sm:$0xff] %vm884_vm6, %v853_v42 }
 0x19e   : > { %779 = vst.msk [vmem:[#allocation4 + $0x78] sm:$0xff] %vm763_vm5, %v734_v43 }
 0x1a0   : > { %v1333_v44 = vpop.permute.xlu1 %1332 }
 0x1a1   : > { %v1214_v45 = vpop.permute.xlu0 %1213  ;;  %1381 = vst.msk [vmem:[#allocation4 + $0x60] sm:$0xff] %vm1368_vm10, %v1333_v44 }
 0x1a2   : > { %1261 = vst.msk [vmem:[#allocation4 + $0x68] sm:$0xff] %vm1247_vm9, %v1214_v45 }
 0x1a4   : > { %v855_v12 = vpop.permute.xlu1 %854 }
 0x1a5   : > { %v493_v46 = vpop.permute.xlu0 %492  ;;  %900 = vst.msk [vmem:[#allocation4 + $0x78] sm:$0xff] %vm884_vm6, %v855_v12 }
 0x1a6   : > { %537 = vst.msk [vmem:[#allocation4 + $0x80] sm:$0xff] %vm520_vm3, %v493_v46 }
 0x1a8   : > { %v1335_v47 = vpop.permute.xlu1 %1334  ;;  %v1401_v49 = vld [vmem:[#allocation4 + $0x60] sm:$0xff] }
 0x1a9   : > { %v974_v48 = vpop.permute.xlu0 %973  ;;  %1382 = vst.msk [vmem:[#allocation4 + $0x68] sm:$0xff] %vm1368_vm10, %v1335_v47  ;;  %3036 = vmatprep.mubr.msk.f32.mxu0 %vm1421_vm11, %v1401_v49 }
 0x1aa   : > { %1020 = vst.msk [vmem:[#allocation4 + $0x70] sm:$0xff] %vm1005_vm7, %v974_v48 }
 0x1ac   : > { %v614_v50 = vpop.permute.xlu1 %613 }
 0x1ad   : > { %v495_v51 = vpop.permute.xlu0 %494  ;;  %658 = vst.msk [vmem:[#allocation4 + $0x80] sm:$0xff] %vm641_vm4, %v614_v50 }
 0x1ae   : > { %538 = vst.msk [vmem:[#allocation4 + $0x88] sm:$0xff] %vm520_vm3, %v495_v51 }
 0x1b0   : > { %v1095_v18 = vpop.permute.xlu1 %1094  ;;  %v1402_v53 = vld [vmem:[#allocation4 + $0x68] sm:$0xff] }
 0x1b1   : > { %v976_v52 = vpop.permute.xlu0 %975  ;;  %1141 = vst.msk [vmem:[#allocation4 + $0x70] sm:$0xff] %vm1126_vm8, %v1095_v18  ;;  %3037 = vmatmul.mubr.msk.f32.gmra.mrb[12].mxu0 %vm1421_vm11, %v1402_v53 }
 0x1b2   : > { %1021 = vst.msk [vmem:[#allocation4 + $0x78] sm:$0xff] %vm1005_vm7, %v976_v52 }
 0x1b4   : > { %v736_v54 = vpop.permute.xlu1 %735 }
 0x1b5   : > { %v616_v55 = vpop.permute.xlu0 %615  ;;  %780 = vst.msk [vmem:[#allocation4 + $0x80] sm:$0xff] %vm763_vm5, %v736_v54 }
 0x1b6   : > { %659 = vst.msk [vmem:[#allocation4 + $0x88] sm:$0xff] %vm641_vm4, %v616_v55 }
 0x1b8   : > { %v1216_v56 = vpop.permute.xlu1 %1215 }
 0x1b9   : > { %v1097_v57 = vpop.permute.xlu0 %1096  ;;  %1262 = vst.msk [vmem:[#allocation4 + $0x70] sm:$0xff] %vm1247_vm9, %v1216_v56 }
 0x1ba   : > { %1142 = vst.msk [vmem:[#allocation4 + $0x78] sm:$0xff] %vm1126_vm8, %v1097_v57 }
 0x1bc   : > { %v857_v58 = vpop.permute.xlu1 %856 }
 0x1bd   : > { %v738_v59 = vpop.permute.xlu0 %737  ;;  %901 = vst.msk [vmem:[#allocation4 + $0x80] sm:$0xff] %vm884_vm6, %v857_v58 }
 0x1be   : > { %781 = vst.msk [vmem:[#allocation4 + $0x88] sm:$0xff] %vm763_vm5, %v738_v59 }
 0x1c0   : > { %v1337_v61 = vpop.permute.xlu1 %1336 }
 0x1c1   : > { %v1218_v63 = vpop.permute.xlu0 %1217  ;;  %1383 = vst.msk [vmem:[#allocation4 + $0x70] sm:$0xff] %vm1368_vm10, %v1337_v61 }
 0x1c2   : > { %1263 = vst.msk [vmem:[#allocation4 + $0x78] sm:$0xff] %vm1247_vm9, %v1218_v63 }
 0x1c4   : > { %v859_v1 = vpop.permute.xlu1 %858  ;;  %v3020_v3 = vpop.f32.mrb[0].mxu0 }
 0x1c5   : > { %v497_v60 = vpop.permute.xlu0 %496  ;;  %902 = vst.msk [vmem:[#allocation4 + $0x88] sm:$0xff] %vm884_vm6, %v859_v1  ;;  %v1558_v5 = vadd.f32 %v3020_v3, %v3815_v0  ;;  %v1552_v6 = vpop.f32.mrb[1].mxu0 }
 0x1c6   : > { %539 = vst.msk [vmem:[#allocation4 + $0x90] sm:$0xff] %vm520_vm3, %v497_v60  ;;  %v1553_v7 = vadd.f32 %v3815_v0, %v1552_v6 }
 0x1c7   : > { %v1652_v8 = vmax.f32 %v1558_v5, 0.0 }
 0x1c8   : > { %v1339_v9 = vpop.permute.xlu1 %1338  ;;  %v1403_v10 = vld [vmem:[#allocation4 + $0x70] sm:$0xff]  ;;  %v1651_v11 = vmax.f32 %v1553_v7, 0.0 }
 0x1c9   : > { %v978_v62 = vpop.permute.xlu0 %977  ;;  %1384 = vst.msk [vmem:[#allocation4 + $0x78] sm:$0xff] %vm1368_vm10, %v1339_v9  ;;  %3039 = vmatprep.mubr.msk.f32.mxu0 %vm1421_vm11, %v1403_v10 }
 0x1ca   : > { %1022 = vst.msk [vmem:[#allocation4 + $0x80] sm:$0xff] %vm1005_vm7, %v978_v62 }
 0x1cb   : > { %1672 = vst.msk [vmem:[#allocation3 + $0x9] sm:$0xff] %vm315_vm1, %v1652_v8  ;;  %1671 = vst.msk [vmem:[#allocation3 + $0x1] sm:$0xff] %vm315_vm1, %v1651_v11 }
 0x1cc   : > { %v618_v14 = vpop.permute.xlu1 %617 }
 0x1cd   : > { %v499_v13 = vpop.permute.xlu0 %498  ;;  %660 = vst.msk [vmem:[#allocation4 + $0x90] sm:$0xff] %vm641_vm4, %v618_v14 }
 0x1ce   : > { %540 = vst.msk [vmem:[#allocation4 + $0x98] sm:$0xff] %vm520_vm3, %v499_v13 }
 0x1d0   : > { %v1099_v16 = vpop.permute.xlu1 %1098  ;;  %v1404_v17 = vld [vmem:[#allocation4 + $0x78] sm:$0xff] }
 0x1d1   : > { %v980_v15 = vpop.permute.xlu0 %979  ;;  %1143 = vst.msk [vmem:[#allocation4 + $0x80] sm:$0xff] %vm1126_vm8, %v1099_v16  ;;  %3040 = vmatmul.mubr.msk.f32.gmra.mrb[14].mxu0 %vm1421_vm11, %v1404_v17 }
 0x1d2   : > { %1023 = vst.msk [vmem:[#allocation4 + $0x88] sm:$0xff] %vm1005_vm7, %v980_v15 }
 0x1d4   : > { %v740_v20 = vpop.permute.xlu1 %739 }
 0x1d5   : > { %v620_v19 = vpop.permute.xlu0 %619  ;;  %782 = vst.msk [vmem:[#allocation4 + $0x90] sm:$0xff] %vm763_vm5, %v740_v20 }
 0x1d6   : > { %661 = vst.msk [vmem:[#allocation4 + $0x98] sm:$0xff] %vm641_vm4, %v620_v19 }
 0x1d8   : > { %v1220_v22 = vpop.permute.xlu1 %1219 }
 0x1d9   : > { %v1101_v21 = vpop.permute.xlu0 %1100  ;;  %1264 = vst.msk [vmem:[#allocation4 + $0x80] sm:$0xff] %vm1247_vm9, %v1220_v22 }
 0x1da   : > { %1144 = vst.msk [vmem:[#allocation4 + $0x88] sm:$0xff] %vm1126_vm8, %v1101_v21 }
 0x1dc   : > { %v861_v24 = vpop.permute.xlu1 %860 }
 0x1dd   : > { %v742_v23 = vpop.permute.xlu0 %741  ;;  %903 = vst.msk [vmem:[#allocation4 + $0x90] sm:$0xff] %vm884_vm6, %v861_v24 }
 0x1de   : > { %783 = vst.msk [vmem:[#allocation4 + $0x98] sm:$0xff] %vm763_vm5, %v742_v23 }
 0x1e0   : > { %v1341_v2 = vpop.permute.xlu1 %1340 }
 0x1e1   : > { %v1222_v25 = vpop.permute.xlu0 %1221  ;;  %1385 = vst.msk [vmem:[#allocation4 + $0x80] sm:$0xff] %vm1368_vm10, %v1341_v2 }
 0x1e2   : > { %1265 = vst.msk [vmem:[#allocation4 + $0x88] sm:$0xff] %vm1247_vm9, %v1222_v25 }
 0x1e4   : > { %v3023_v27 = vpop.f32.mrb[2].mxu0  ;;  %v982_v29 = vpop.permute.xlu1 %981 }
 0x1e5   : > { %v863_v26 = vpop.permute.xlu0 %862  ;;  %v1568_v28 = vadd.f32 %v3023_v27, %v3815_v0  ;;  %v1562_v30 = vpop.f32.mrb[3].mxu0  ;;  %1024 = vst.msk [vmem:[#allocation4 + $0x90] sm:$0xff] %vm1005_vm7, %v982_v29 }
 0x1e6   : > { %904 = vst.msk [vmem:[#allocation4 + $0x98] sm:$0xff] %vm884_vm6, %v863_v26  ;;  %v1563_v31 = vadd.f32 %v3815_v0, %v1562_v30 }
 0x1e7   : > { %v1654_v4 = vmax.f32 %v1568_v28, 0.0 }
 0x1e8   : > { %v1653_v32 = vmax.f32 %v1563_v31, 0.0  ;;  %v1405_v34 = vld [vmem:[#allocation4 + $0x80] sm:$0xff]  ;;  %v984_v35 = vpop.permute.xlu1 %983  ;;  %v3202_v31 = vmov (!%p2903_p7), 0.0  }
 0x1e9   : > { %v1343_v33 = vpop.permute.xlu0 %1342  ;;  %1674 = vst.msk [vmem:[#allocation3 + $0x21] sm:$0xff] %vm315_vm1, %v1654_v4  ;;  %3042 = vmatprep.mubr.msk.f32.mxu0 %vm1421_vm11, %v1405_v34  ;;  %1694 = vst.msk [vmem:[#allocation3 + $0x1] sm:$0xff] (!%p2903_p7), %vm315_vm1, %v3202_v31 }
 0x1ea   : > { %1386 = vst.msk [vmem:[#allocation4 + $0x88] sm:$0xff] %vm1368_vm10, %v1343_v33 }
 0x1eb   : > { %1673 = vst.msk [vmem:[#allocation3 + $0x19] sm:$0xff] %vm315_vm1, %v1653_v32  ;;  %1695 = vst.msk [vmem:[#allocation3 + $0x9] sm:$0xff] (!%p2903_p7), %vm315_vm1, %v3202_v31 }
 0x1ec   : > { %1025 = vst.msk [vmem:[#allocation4 + $0x98] sm:$0xff] %vm1005_vm7, %v984_v35  ;;  %v1105_v37 = vpop.permute.xlu1 %1104 }
 0x1ed   : > { %v1103_v36 = vpop.permute.xlu0 %1102  ;;  %1146 = vst.msk [vmem:[#allocation4 + $0x98] sm:$0xff] %vm1126_vm8, %v1105_v37 }
 0x1ee   : > { %1145 = vst.msk [vmem:[#allocation4 + $0x90] sm:$0xff] %vm1126_vm8, %v1103_v36 }
 0x1f0   : > { %v1226_v40 = vpop.permute.xlu1 %1225 }
 0x1f1   : > { %v1224_v38 = vpop.permute.xlu0 %1223  ;;  %v1406_v39 = vld [vmem:[#allocation4 + $0x88] sm:$0xff]  ;;  %1267 = vst.msk [vmem:[#allocation4 + $0x98] sm:$0xff] %vm1247_vm9, %v1226_v40 }
 0x1f2   : > { %1266 = vst.msk [vmem:[#allocation4 + $0x90] sm:$0xff] %vm1247_vm9, %v1224_v38  ;;  %3043 = vmatmul.mubr.msk.f32.gmra.mrb[16].mxu0 %vm1421_vm11, %v1406_v39 }
 0x1f4   : > { %v1347_v42 = vpop.permute.xlu1 %1346 }
 0x1f5   : > { %v1345_v41 = vpop.permute.xlu0 %1344  ;;  %1388 = vst.msk [vmem:[#allocation4 + $0x98] sm:$0xff] %vm1368_vm10, %v1347_v42 }
 0x1f6   : > { %1387 = vst.msk [vmem:[#allocation4 + $0x90] sm:$0xff] %vm1368_vm10, %v1345_v41 }
 0x1fc   : > { %v1408_v44 = vld [vmem:[#allocation4 + $0x98] sm:$0xff] }
 0x1fd   : > { %v1407_v43 = vld [vmem:[#allocation4 + $0x90] sm:$0xff] }
 0x1fe   : > { %3045 = vmatprep.mubr.msk.f32.mxu0 %vm1421_vm11, %v1407_v43 }
 0x1ff   : > { %3046 = vmatmul.mubr.msk.f32.gmra.mrb[18].mxu0 %vm1421_vm11, %v1408_v44 }
 0x204   : > { %v3026_v45 = vpop.f32.mrb[4].mxu0 }
 0x205   : > { %v1578_v12 = vadd.f32 %v3026_v45, %v3815_v0  ;;  %v1572_v46 = vpop.f32.mrb[5].mxu0 }
 0x206   : > { %v1573_v47 = vadd.f32 %v3815_v0, %v1572_v46 }
 0x207   : > { %v1656_v48 = vmax.f32 %v1578_v12, 0.0 }
 0x208   : > { %v1655_v49 = vmax.f32 %v1573_v47, 0.0 }
 0x209   : > { %1676 = vst.msk [vmem:[#allocation3 + $0x39] sm:$0xff] %vm315_vm1, %v1656_v48 }
 0x20a   : > { %1675 = vst.msk [vmem:[#allocation3 + $0x31] sm:$0xff] %vm315_vm1, %v1655_v49 }
 0x224   : > { %v3029_v50 = vpop.f32.mrb[6].mxu0 }
 0x225   : > { %v1588_v51 = vadd.f32 %v3029_v50, %v3815_v0  ;;  %v1582_v18 = vpop.f32.mrb[7].mxu0 }
 0x226   : > { %v1583_v52 = vadd.f32 %v3815_v0, %v1582_v18 }
 0x227   : > { %v1658_v53 = vmax.f32 %v1588_v51, 0.0 }
 0x228   : > { %v1657_v54 = vmax.f32 %v1583_v52, 0.0 }
 0x229   : > { %1678 = vst.msk [vmem:[#allocation3 + $0x51] sm:$0xff] %vm315_vm1, %v1658_v53 }
 0x22a   : > { %1677 = vst.msk [vmem:[#allocation3 + $0x49] sm:$0xff] %vm315_vm1, %v1657_v54 }
 0x244   : > { %v3032_v55 = vpop.f32.mrb[8].mxu0 }
 0x245   : > { %v1598_v56 = vadd.f32 %v3032_v55, %v3815_v0  ;;  %v1592_v57 = vpop.f32.mrb[9].mxu0 }
 0x246   : > { %v1593_v58 = vadd.f32 %v3815_v0, %v1592_v57 }
 0x247   : > { %v1660_v59 = vmax.f32 %v1598_v56, 0.0 }
 0x248   : > { %v1659_v61 = vmax.f32 %v1593_v58, 0.0 }
 0x249   : > { %1680 = vst.msk [vmem:[#allocation3 + $0x69] sm:$0xff] %vm315_vm1, %v1660_v59 }
 0x24a   : > { %1679 = vst.msk [vmem:[#allocation3 + $0x61] sm:$0xff] %vm315_vm1, %v1659_v61 }
 0x264   : > { %v3035_v63 = vpop.f32.mrb[10].mxu0 }
 0x265   : > { %v1608_v1 = vadd.f32 %v3035_v63, %v3815_v0  ;;  %v1602_v60 = vpop.f32.mrb[11].mxu0 }
 0x266   : > { %v1603_v3 = vadd.f32 %v3815_v0, %v1602_v60 }
 0x267   : > { %v1662_v5 = vmax.f32 %v1608_v1, 0.0 }
 0x268   : > { %v1661_v6 = vmax.f32 %v1603_v3, 0.0 }
 0x269   : > { %1682 = vst.msk [vmem:[#allocation3 + $0x81] sm:$0xff] %vm315_vm1, %v1662_v5 }
 0x26a   : > { %1681 = vst.msk [vmem:[#allocation3 + $0x79] sm:$0xff] %vm315_vm1, %v1661_v6 }
 0x284   : > { %v3038_v7 = vpop.f32.mrb[12].mxu0 }
 0x285   : > { %v1618_v8 = vadd.f32 %v3038_v7, %v3815_v0  ;;  %v1612_v9 = vpop.f32.mrb[13].mxu0 }
 0x286   : > { %v1613_v62 = vadd.f32 %v3815_v0, %v1612_v9 }
 0x287   : > { %v1664_v10 = vmax.f32 %v1618_v8, 0.0 }
 0x288   : > { %v1663_v11 = vmax.f32 %v1613_v62, 0.0 }
 0x289   : > { %1684 = vst.msk [vmem:[#allocation3 + $0x99] sm:$0xff] %vm315_vm1, %v1664_v10 }
 0x28a   : > { %1683 = vst.msk [vmem:[#allocation3 + $0x91] sm:$0xff] %vm315_vm1, %v1663_v11 }
 0x2a4   : > { %v3041_v13 = vpop.f32.mrb[14].mxu0 }
 0x2a5   : > { %v1628_v14 = vadd.f32 %v3041_v13, %v3815_v0  ;;  %v1622_v15 = vpop.f32.mrb[15].mxu0 }
 0x2a6   : > { %v1623_v16 = vadd.f32 %v3815_v0, %v1622_v15 }
 0x2a7   : > { %v1666_v17 = vmax.f32 %v1628_v14, 0.0 }
 0x2a8   : > { %v1665_v19 = vmax.f32 %v1623_v16, 0.0 }
 0x2a9   : > { %1686 = vst.msk [vmem:[#allocation3 + $0xb1] sm:$0xff] %vm315_vm1, %v1666_v17 }
 0x2aa   : > { %1685 = vst.msk [vmem:[#allocation3 + $0xa9] sm:$0xff] %vm315_vm1, %v1665_v19 }
 0x2c5   : > { %v3044_v20 = vpop.f32.mrb[16].mxu0 }
 0x2c6   : > { %v1638_v21 = vadd.f32 %v3044_v20, %v3815_v0  ;;  %v1632_v22 = vpop.f32.mrb[17].mxu0 }
 0x2c7   : > { %v1633_v23 = vadd.f32 %v3815_v0, %v1632_v22 }
 0x2c8   : > { %v1668_v24 = vmax.f32 %v1638_v21, 0.0 }
 0x2c9   : > { %v1667_v25 = vmax.f32 %v1633_v23, 0.0 }
 0x2ca   : > { %1688 = vst.msk [vmem:[#allocation3 + $0xc9] sm:$0xff] %vm315_vm1, %v1668_v24 }
 0x2cb   : > { %1687 = vst.msk [vmem:[#allocation3 + $0xc1] sm:$0xff] %vm315_vm1, %v1667_v25 }
 0x2d2   : > { %v3047_v2 = vpop.f32.mrb[18].mxu0  ;;  %1693 = sbr.rel (%p2903_p7) target bundleno = 729 (0x2d9), region = 60 }
 0x2d3   : > { %v1648_v26 = vadd.f32 %v3047_v2, %v3815_v0  ;;  %v1642_v27 = vpop.f32.mrb[19].mxu0 }
 0x2d4   : > { %v1643_v28 = vadd.f32 %v3815_v0, %v1642_v27 }
 0x2d5   : > { %v1670_v29 = vmax.f32 %v1648_v26, 0.0 }
 0x2d6   : > { %v1669_v30 = vmax.f32 %v1643_v28, 0.0 }
 0x2d7   : > { %1690 = vst.msk [vmem:[#allocation3 + $0xe1] sm:$0xff] %vm315_vm1, %v1670_v29 }
 0x2d8   : > { %1689 = vst.msk [vmem:[#allocation3 + $0xd9] sm:$0xff] %vm315_vm1, %v1669_v30 }
 0x2d9 PF: > { %1698 = sbr.rel (%p2907_p9) target bundleno = 736 (0x2e0), region = 64  ;;  %v3203_v4 = vmov (!%p2907_p9), 0.0  }
 0x2da   : > { %1700 = vst.msk [vmem:[#allocation3 + $0xd9] sm:$0xff] (!%p2907_p9), %vm315_vm1, %v3203_v4  ;;  %1701 = vst.msk [vmem:[#allocation3 + $0xe1] sm:$0xff] (!%p2907_p9), %vm315_vm1, %v3203_v4 }
 0x2e0 PF: > { %v1830_v0 = vld [vmem:[#allocation3 + $0x2] sm:$0xff]  ;;  %v1927_v34 = vld [vmem:[#allocation3 + $0x18] sm:$0xff]  ;;  %v1831_v35 = vld [vmem:[#allocation3 + $0xa] sm:$0xff] }
 0x2e1   : > { %v1734_v32 = vld [vmem:[#allocation3 + $0x1] sm:$0xff]  ;;  %1862 = vrot.lane.b32.xlu1 %v1830_v0, %s3194_s19  ;;  %v1735_v36 = vld [vmem:[#allocation3 + $0x9] sm:$0xff]  ;;  %1720 = vst.msk [vmem:[#allocation4 + $0x10] sm:$0xff] %vm315_vm1, %v1927_v34  ;;  %v2217_v38 = vld [vmem:[#allocation3 + $0x38] sm:$0xff] }
 0x2e2   : > { %1766 = vrot.lane.b32.xlu0 %v1734_v32, %s3195_s25  ;;  %v1928_v33 = vld [vmem:[#allocation3 + $0x20] sm:$0xff]  ;;  %v2216_v37 = vld [vmem:[#allocation3 + $0x30] sm:$0xff]  ;;  %v3904_v39 = vld [vmem:[#allocation3 + $0x48] sm:$0xff]  ;;  %1723 = vst.msk [vmem:[#allocation4 + $0x28] sm:$0xff] %vm315_vm1, %v2217_v38 }
 0x2e3   : > { %1721 = vst.msk [vmem:[#allocation4 + $0x18] sm:$0xff] %vm315_vm1, %v1928_v33  ;;  %1722 = vst.msk [vmem:[#allocation4 + $0x20] sm:$0xff] %vm315_vm1, %v2216_v37  ;;  %v3907_v40 = vld [vmem:[#allocation3 + $0x50] sm:$0xff]  ;;  %v3911_v41 = vld [vmem:[#allocation3 + $0x60] sm:$0xff] }
 0x2e4   : > { %1724 = vst.msk [vmem:[#allocation4 + $0x30] sm:$0xff] %vm315_vm1, %v3904_v39  ;;  %1725 = vst.msk [vmem:[#allocation4 + $0x38] sm:$0xff] %vm315_vm1, %v3907_v40  ;;  %v3915_v42 = vld [vmem:[#allocation3 + $0x68] sm:$0xff]  ;;  %v1702_v43 = vld [vmem:[#allocation3] sm:$0xff] }
 0x2e5   : > { %1864 = vrot.lane.b32.xlu1 %v1831_v35, %s3194_s19  ;;  %1726 = vst.msk [vmem:[#allocation4 + $0x40] sm:$0xff] %vm315_vm1, %v3911_v41  ;;  %v1703_v44 = vld [vmem:[#allocation3 + $0x8] sm:$0xff]  ;;  %1727 = vst.msk [vmem:[#allocation4 + $0x48] sm:$0xff] %vm315_vm1, %v3915_v42  ;;  %v1736_v45 = vld [vmem:[#allocation3 + $0x19] sm:$0xff] }
 0x2e6   : > { %1768 = vrot.lane.b32.xlu0 %v1735_v36, %s3195_s25  ;;  %1718 = vst.msk [vmem:[#allocation4] sm:$0xff] %vm315_vm1, %v1702_v43  ;;  %1719 = vst.msk [vmem:[#allocation4 + $0x8] sm:$0xff] %vm315_vm1, %v1703_v44  ;;  %v3925_v12 = vld [vmem:[#allocation3 + $0x78] sm:$0xff]  ;;  %v3927_v46 = vld [vmem:[#allocation3 + $0x80] sm:$0xff] }
 0x2e7   : > { %1728 = vst.msk [vmem:[#allocation4 + $0x50] sm:$0xff] %vm315_vm1, %v3925_v12  ;;  %1729 = vst.msk [vmem:[#allocation4 + $0x58] sm:$0xff] %vm315_vm1, %v3927_v46  ;;  %v2119_v47 = vld [vmem:[#allocation3 + $0x1a] sm:$0xff]  ;;  %v2120_v49 = vld [vmem:[#allocation3 + $0x22] sm:$0xff] }
 0x2e8   : > { %v2024_v48 = vld [vmem:[#allocation3 + $0x21] sm:$0xff]  ;;  %v3939_v50 = vld [vmem:[#allocation3 + $0x90] sm:$0xff]  ;;  %v3953_v53 = vld [vmem:[#allocation3 + $0x98] sm:$0xff] }
 0x2e9   : > { %1961 = vrot.lane.b32.xlu1 %v1928_v33, %s3196_s26  ;;  %1730 = vst.msk [vmem:[#allocation4 + $0x60] sm:$0xff] %vm315_vm1, %v3939_v50  ;;  %v2312_v51 = vld [vmem:[#allocation3 + $0x31] sm:$0xff]  ;;  %v2520_v18 = vld [vmem:[%s4339_s3] sm:$0xff]  ;;  %v2521_v52 = vld [vmem:[%s4339_s3 + $0x8] sm:$0xff] }
 0x2ea   : > { %1959 = vrot.lane.b32.xlu0 %v1927_v34, %s3196_s26  ;;  %v3090_v54 = vpack.c.bf16 %v2521_v52, %v2520_v18  ;;  %1731 = vst.msk [vmem:[#allocation4 + $0x68] sm:$0xff] %vm315_vm1, %v3953_v53  ;;  %v2522_v55 = vld [vmem:[%s4339_s3 + $0x10] sm:$0xff]  ;;  %v2523_v56 = vld [vmem:[%s4339_s3 + $0x18] sm:$0xff]  ;;  %v2524_v61 = vld [vmem:[%s4339_s3 + $0x20] sm:$0xf] }
 0x2eb   : > { %v3094_v57 = vpack.c.bf16 %v2523_v56, %v2522_v55  ;;  %v2408_v58 = vld [vmem:[#allocation3 + $0x32] sm:$0xff]  ;;  %v2409_v63 = vld [vmem:[#allocation3 + $0x3a] sm:$0xff]  ;;  %v3980_v1 = vld [vmem:[#allocation3 + $0xa8] sm:$0xff] }
 0x2ec   : > { %3091 = vmatprep.subr.bf16.mxu1 %v3090_v54  ;;  %v2313_v59 = vld [vmem:[#allocation3 + $0x39] sm:$0xff]  ;;  %1732 = vst.msk [vmem:[#allocation4 + $0x70] sm:$0xff] %vm315_vm1, %v3980_v1  ;;  %v2314_v60 = vld [vmem:[#allocation3 + $0x49] sm:$0xff]  ;;  %v2315_v6 = vld [vmem:[#allocation3 + $0x51] sm:$0xff] }
 0x2ed   : > { %1770 = vrot.lane.b32.xlu1 %v1736_v45, %s3195_s25  ;;  %3093 = vmatpush3.bf16.msra.mxu1 %v3090_v54  ;;  %v3990_v3 = vld [vmem:[#allocation3 + $0xb0] sm:$0xff]  ;;  %v2316_v8 = vld [vmem:[#allocation3 + $0x61] sm:$0xff]  ;;  %v2318_v19 = vld [vmem:[#allocation3 + $0x79] sm:$0xff] }
 0x2ee   : > { %2055 = vrot.lane.b32.xlu0 %v1736_v45, %s3197_s27  ;;  %3095 = vmatprep.subr.bf16.mxu1 %v3094_v57  ;;  %1733 = vst.msk [vmem:[#allocation4 + $0x78] sm:$0xff] %vm315_vm1, %v3990_v3  ;;  %v2410_v5 = vld [vmem:[#allocation3 + $0x4a] sm:$0xff]  ;;  %v2411_v7 = vld [vmem:[#allocation3 + $0x52] sm:$0xff]  ;;  %v2412_v9 = vld [vmem:[#allocation3 + $0x62] sm:$0xff] }
 0x2ef   : > { %v2317_v62 = vld [vmem:[#allocation3 + $0x69] sm:$0xff]  ;;  %v2414_v24 = vld [vmem:[#allocation3 + $0x7a] sm:$0xff]  ;;  %v2320_v36 = vld [vmem:[#allocation3 + $0x91] sm:$0xff] }
 0x2f0   : > { %v2413_v10 = vld [vmem:[#allocation3 + $0x6a] sm:$0xff]  ;;  %v2319_v25 = vld [vmem:[#allocation3 + $0x81] sm:$0xff]  ;;  %v2321_v43 = vld [vmem:[#allocation3 + $0x99] sm:$0xff] }
 0x2f1   : > { %2151 = vrot.lane.b32.xlu1 %v2119_v47, %s3198_s28  ;;  %3097 = vmatpush3.bf16.msra.mxu1 %v3094_v57  ;;  %v2415_v29 = vld [vmem:[#allocation3 + $0x82] sm:$0xff] }
 0x2f2   : > { %2057 = vrot.lane.b32.xlu0 %v2024_v48, %s3197_s27  ;;  %3056 = vmatprep.subr.msk.mxu1 %vm1482_vm2, %v2524_v61  ;;  %v2322_v56 = vld [vmem:[#allocation3 + $0xa9] sm:$0xff] }
 0x2f5   : > { %1866 = vrot.lane.b32.xlu1 %v2119_v47, %s3194_s19  ;;  %3057 = vmatpush3.msk.msra.mxu1 %vm1482_vm2, %v2524_v61 }
 0x2f6   : > { %1772 = vrot.lane.b32.xlu0 %v2024_v48, %s3195_s25  ;;  %v2417_v48 = vld [vmem:[#allocation3 + $0x9a] sm:$0xff] }
 0x2f9   : > { %2248 = vrot.lane.b32.xlu1 %v2216_v37, %s3199_s29 }
 0x2fa   : > { %2153 = vrot.lane.b32.xlu0 %v2120_v49, %s3198_s28 }
 0x2fd   : > { %1963 = vrot.lane.b32.xlu1 %v2216_v37, %s3196_s26 }
 0x2fe   : > { %1868 = vrot.lane.b32.xlu0 %v2120_v49, %s3194_s19 }
 0x301   : > { %2344 = vrot.lane.b32.xlu1 %v2312_v51, %s3200_s9 }
 0x302   : > { %2250 = vrot.lane.b32.xlu0 %v2217_v38, %s3199_s29 }
 0x305   : > { %2059 = vrot.lane.b32.xlu1 %v2312_v51, %s3197_s27 }
 0x306   : > { %1965 = vrot.lane.b32.xlu0 %v2217_v38, %s3196_s26 }
 0x309   : > { %2440 = vrot.lane.b32.xlu1 %v2408_v58, %s3201_s16 }
 0x30a   : > { %2346 = vrot.lane.b32.xlu0 %v2313_v59, %s3200_s9 }
 0x30d   : > { %2061 = vrot.lane.b32.xlu1 %v2313_v59, %s3197_s27 }
 0x30e   : > { %1774 = vrot.lane.b32.xlu0 %v2312_v51, %s3195_s25 }
 0x311   : > { %2442 = vrot.lane.b32.xlu1 %v2409_v63, %s3201_s16 }
 0x312   : > { %2155 = vrot.lane.b32.xlu0 %v2408_v58, %s3198_s28 }
 0x315   : > { %1870 = vrot.lane.b32.xlu1 %v2408_v58, %s3194_s19 }
 0x316   : > { %1776 = vrot.lane.b32.xlu0 %v2313_v59, %s3195_s25 }
 0x319   : > { %2252 = vrot.lane.b32.xlu1 %v3904_v39, %s3199_s29 }
 0x31a   : > { %2157 = vrot.lane.b32.xlu0 %v2409_v63, %s3198_s28 }
 0x31d   : > { %1967 = vrot.lane.b32.xlu1 %v3904_v39, %s3196_s26 }
 0x31e   : > { %1872 = vrot.lane.b32.xlu0 %v2409_v63, %s3194_s19 }
 0x321   : > { %2348 = vrot.lane.b32.xlu1 %v2314_v60, %s3200_s9 }
 0x322   : > { %2254 = vrot.lane.b32.xlu0 %v3907_v40, %s3199_s29 }
 0x325   : > { %2063 = vrot.lane.b32.xlu1 %v2314_v60, %s3197_s27 }
 0x326   : > { %1969 = vrot.lane.b32.xlu0 %v3907_v40, %s3196_s26 }
 0x329   : > { %2444 = vrot.lane.b32.xlu1 %v2410_v5, %s3201_s16 }
 0x32a   : > { %2350 = vrot.lane.b32.xlu0 %v2315_v6, %s3200_s9 }
 0x32d   : > { %2065 = vrot.lane.b32.xlu1 %v2315_v6, %s3197_s27 }
 0x32e   : > { %1778 = vrot.lane.b32.xlu0 %v2314_v60, %s3195_s25  ;;  %v2323_v60 = vld [vmem:[#allocation3 + $0xb1] sm:$0xff] }
 0x331   : > { %2446 = vrot.lane.b32.xlu1 %v2411_v7, %s3201_s16 }
 0x332   : > { %2159 = vrot.lane.b32.xlu0 %v2410_v5, %s3198_s28 }
 0x335   : > { %1874 = vrot.lane.b32.xlu1 %v2410_v5, %s3194_s19 }
 0x336   : > { %1780 = vrot.lane.b32.xlu0 %v2315_v6, %s3195_s25 }
 0x339   : > { %2256 = vrot.lane.b32.xlu1 %v3911_v41, %s3199_s29 }
 0x33a   : > { %2161 = vrot.lane.b32.xlu0 %v2411_v7, %s3198_s28 }
 0x33d   : > { %1971 = vrot.lane.b32.xlu1 %v3911_v41, %s3196_s26 }
 0x33e   : > { %1876 = vrot.lane.b32.xlu0 %v2411_v7, %s3194_s19 }
 0x341   : > { %2352 = vrot.lane.b32.xlu1 %v2316_v8, %s3200_s9 }
 0x342   : > { %2258 = vrot.lane.b32.xlu0 %v3915_v42, %s3199_s29 }
 0x345   : > { %2067 = vrot.lane.b32.xlu1 %v2316_v8, %s3197_s27 }
 0x346   : > { %1973 = vrot.lane.b32.xlu0 %v3915_v42, %s3196_s26  ;;  %v2416_v42 = vld [vmem:[#allocation3 + $0x92] sm:$0xff] }
 0x349   : > { %2448 = vrot.lane.b32.xlu1 %v2412_v9, %s3201_s16 }
 0x34a   : > { %2354 = vrot.lane.b32.xlu0 %v2317_v62, %s3200_s9 }
 0x34d   : > { %2069 = vrot.lane.b32.xlu1 %v2317_v62, %s3197_s27 }
 0x34e   : > { %1782 = vrot.lane.b32.xlu0 %v2316_v8, %s3195_s25 }
 0x351   : > { %2450 = vrot.lane.b32.xlu1 %v2413_v10, %s3201_s16 }
 0x352   : > { %2163 = vrot.lane.b32.xlu0 %v2412_v9, %s3198_s28 }
 0x353   : > { %v1863_v11 = vpop.permute.xlu1 %1862 }
 0x354   : > { %v1767_v13 = vpop.permute.xlu0 %1766 }
 0x355   : > { %1814 = vst.msk [vmem:[#allocation4] sm:$0xff] %vm520_vm3, %v1767_v13  ;;  %1878 = vrot.lane.b32.xlu1 %v2412_v9, %s3194_s19 }
 0x356   : > { %1910 = vst.msk [vmem:[#allocation4] sm:$0xff] %vm641_vm4, %v1863_v11  ;;  %1784 = vrot.lane.b32.xlu0 %v2317_v62, %s3195_s25 }
 0x357   : > { %v1865_v14 = vpop.permute.xlu1 %1864 }
 0x358   : > { %v1769_v15 = vpop.permute.xlu0 %1768 }
 0x359   : > { %1815 = vst.msk [vmem:[#allocation4 + $0x8] sm:$0xff] %vm520_vm3, %v1769_v15  ;;  %2260 = vrot.lane.b32.xlu1 %v3925_v12, %s3199_s29 }
 0x35a   : > { %1911 = vst.msk [vmem:[#allocation4 + $0x8] sm:$0xff] %vm641_vm4, %v1865_v14  ;;  %2165 = vrot.lane.b32.xlu0 %v2413_v10, %s3198_s28  ;;  %v2228_v14 = vld [vmem:[#allocation3 + $0xc0] sm:$0xff] }
 0x35b   : > { %v1962_v16 = vpop.permute.xlu1 %1961 }
 0x35c   : > { %v1960_v17 = vpop.permute.xlu0 %1959  ;;  %2008 = vst.msk [vmem:[#allocation4 + $0x8] sm:$0xff] %vm763_vm5, %v1962_v16 }
 0x35d   : > { %2007 = vst.msk [vmem:[#allocation4] sm:$0xff] %vm763_vm5, %v1960_v17  ;;  %1975 = vrot.lane.b32.xlu1 %v3925_v12, %s3196_s26 }
 0x35e   : > { %1880 = vrot.lane.b32.xlu0 %v2413_v10, %s3194_s19 }
 0x35f   : > { %v1771_v20 = vpop.permute.xlu1 %1770 }
 0x360   : > { %v2056_v21 = vpop.permute.xlu0 %2055  ;;  %1816 = vst.msk [vmem:[#allocation4 + $0x10] sm:$0xff] %vm520_vm3, %v1771_v20  ;;  %v2229_v20 = vld [vmem:[#allocation3 + $0xc8] sm:$0xff] }
 0x361   : > { %2103 = vst.msk [vmem:[#allocation4] sm:$0xff] %vm884_vm6, %v2056_v21  ;;  %2356 = vrot.lane.b32.xlu1 %v2318_v19, %s3200_s9  ;;  %v2324_v21 = vld [vmem:[#allocation3 + $0xc1] sm:$0xff] }
 0x362   : > { %2262 = vrot.lane.b32.xlu0 %v3927_v46, %s3199_s29 }
 0x363   : > { %v2152_v22 = vpop.permute.xlu1 %2151 }
 0x364   : > { %v2058_v23 = vpop.permute.xlu0 %2057  ;;  %2199 = vst.msk [vmem:[#allocation4] sm:$0xff] %vm1005_vm7, %v2152_v22 }
 0x365   : > { %2104 = vst.msk [vmem:[#allocation4 + $0x8] sm:$0xff] %vm884_vm6, %v2058_v23  ;;  %2071 = vrot.lane.b32.xlu1 %v2318_v19, %s3197_s27 }
 0x366   : > { %1977 = vrot.lane.b32.xlu0 %v3927_v46, %s3196_s26 }
 0x367   : > { %v1867_v2 = vpop.permute.xlu1 %1866 }
 0x368   : > { %v1773_v26 = vpop.permute.xlu0 %1772  ;;  %1912 = vst.msk [vmem:[#allocation4 + $0x10] sm:$0xff] %vm641_vm4, %v1867_v2 }
 0x369   : > { %1817 = vst.msk [vmem:[#allocation4 + $0x18] sm:$0xff] %vm520_vm3, %v1773_v26  ;;  %2452 = vrot.lane.b32.xlu1 %v2414_v24, %s3201_s16  ;;  %v2325_v26 = vld [vmem:[#allocation3 + $0xc9] sm:$0xff] }
 0x36a   : > { %2358 = vrot.lane.b32.xlu0 %v2319_v25, %s3200_s9 }
 0x36b   : > { %v2249_v27 = vpop.permute.xlu1 %2248 }
 0x36c   : > { %v2154_v28 = vpop.permute.xlu0 %2153  ;;  %2296 = vst.msk [vmem:[#allocation4] sm:$0xff] %vm1126_vm8, %v2249_v27  ;;  %v2420_v27 = vld [vmem:[#allocation3 + $0xc2] sm:$0xff] }
 0x36d   : > { %2200 = vst.msk [vmem:[#allocation4 + $0x8] sm:$0xff] %vm1005_vm7, %v2154_v28  ;;  %2073 = vrot.lane.b32.xlu1 %v2319_v25, %s3197_s27 }
 0x36e   : > { %1786 = vrot.lane.b32.xlu0 %v2318_v19, %s3195_s25 }
 0x36f   : > { %v1964_v30 = vpop.permute.xlu1 %1963 }
 0x370   : > { %v1869_v31 = vpop.permute.xlu0 %1868  ;;  %2009 = vst.msk [vmem:[#allocation4 + $0x10] sm:$0xff] %vm763_vm5, %v1964_v30 }
 0x371   : > { %1913 = vst.msk [vmem:[#allocation4 + $0x18] sm:$0xff] %vm641_vm4, %v1869_v31  ;;  %2454 = vrot.lane.b32.xlu1 %v2415_v29, %s3201_s16 }
 0x372   : > { %2167 = vrot.lane.b32.xlu0 %v2414_v24, %s3198_s28 }
 0x373   : > { %v2345_v4 = vpop.permute.xlu1 %2344 }
 0x374   : > { %v2251_v0 = vpop.permute.xlu0 %2250  ;;  %2392 = vst.msk [vmem:[#allocation4] sm:$0xff] %vm1247_vm9, %v2345_v4 }
 0x375   : > { %2297 = vst.msk [vmem:[#allocation4 + $0x8] sm:$0xff] %vm1126_vm8, %v2251_v0  ;;  %1882 = vrot.lane.b32.xlu1 %v2414_v24, %s3194_s19  ;;  %v2421_v0 = vld [vmem:[#allocation3 + $0xca] sm:$0xff] }
 0x376   : > { %1788 = vrot.lane.b32.xlu0 %v2319_v25, %s3195_s25 }
 0x377   : > { %v2060_v32 = vpop.permute.xlu1 %2059 }
 0x378   : > { %v1966_v33 = vpop.permute.xlu0 %1965  ;;  %2105 = vst.msk [vmem:[#allocation4 + $0x10] sm:$0xff] %vm884_vm6, %v2060_v32 }
 0x379   : > { %2010 = vst.msk [vmem:[#allocation4 + $0x18] sm:$0xff] %vm763_vm5, %v1966_v33  ;;  %2264 = vrot.lane.b32.xlu1 %v3939_v50, %s3199_s29 }
 0x37a   : > { %2169 = vrot.lane.b32.xlu0 %v2415_v29, %s3198_s28 }
 0x37b   : > { %v2441_v34 = vpop.permute.xlu1 %2440 }
 0x37c   : > { %v2347_v35 = vpop.permute.xlu0 %2346  ;;  %2488 = vst.msk [vmem:[#allocation4] sm:$0xff] %vm1368_vm10, %v2441_v34  ;;  %v2230_v34 = vld [vmem:[#allocation3 + $0xd8] sm:$0xff] }
 0x37d   : > { %2393 = vst.msk [vmem:[#allocation4 + $0x8] sm:$0xff] %vm1247_vm9, %v2347_v35  ;;  %1979 = vrot.lane.b32.xlu1 %v3939_v50, %s3196_s26  ;;  %v2231_v35 = vld [vmem:[#allocation3 + $0xe0] sm:$0xff] }
 0x37e   : > { %1884 = vrot.lane.b32.xlu0 %v2415_v29, %s3194_s19 }
 0x37f   : > { %v2062_v37 = vpop.permute.xlu1 %2061 }
 0x380   : > { %v1775_v38 = vpop.permute.xlu0 %1774  ;;  %2106 = vst.msk [vmem:[#allocation4 + $0x18] sm:$0xff] %vm884_vm6, %v2062_v37 }
 0x381   : > { %1818 = vst.msk [vmem:[#allocation4 + $0x20] sm:$0xff] %vm520_vm3, %v1775_v38  ;;  %2360 = vrot.lane.b32.xlu1 %v2320_v36, %s3200_s9  ;;  %v2326_v38 = vld [vmem:[#allocation3 + $0xd9] sm:$0xff] }
 0x382   : > { %2266 = vrot.lane.b32.xlu0 %v3953_v53, %s3199_s29 }
 0x383   : > { %v2443_v39 = vpop.permute.xlu1 %2442  ;;  %v2504_v41 = vld [vmem:[#allocation4] sm:$0xff] }
 0x384   : > { %v2156_v40 = vpop.permute.xlu0 %2155  ;;  %2489 = vst.msk [vmem:[#allocation4 + $0x8] sm:$0xff] %vm1368_vm10, %v2443_v39  ;;  %3058 = vmatprep.mubr.msk.f32.mxu1 %vm1421_vm11, %v2504_v41  ;;  %v2327_v39 = vld [vmem:[#allocation3 + $0xe1] sm:$0xff] }
 0x385   : > { %2201 = vst.msk [vmem:[#allocation4 + $0x10] sm:$0xff] %vm1005_vm7, %v2156_v40  ;;  %2075 = vrot.lane.b32.xlu1 %v2320_v36, %s3197_s27 }
 0x386   : > { %1981 = vrot.lane.b32.xlu0 %v3953_v53, %s3196_s26 }
 0x387   : > { %v1871_v44 = vpop.permute.xlu1 %1870 }
 0x388   : > { %v1777_v45 = vpop.permute.xlu0 %1776  ;;  %1914 = vst.msk [vmem:[#allocation4 + $0x20] sm:$0xff] %vm641_vm4, %v1871_v44 }
 0x389   : > { %1819 = vst.msk [vmem:[#allocation4 + $0x28] sm:$0xff] %vm520_vm3, %v1777_v45  ;;  %2456 = vrot.lane.b32.xlu1 %v2416_v42, %s3201_s16 }
 0x38a   : > { %2362 = vrot.lane.b32.xlu0 %v2321_v43, %s3200_s9 }
 0x38b   : > { %v2253_v12 = vpop.permute.xlu1 %2252  ;;  %v2505_v47 = vld [vmem:[#allocation4 + $0x8] sm:$0xff] }
 0x38c   : > { %v2158_v46 = vpop.permute.xlu0 %2157  ;;  %2298 = vst.msk [vmem:[#allocation4 + $0x10] sm:$0xff] %vm1126_vm8, %v2253_v12  ;;  %3059 = vmatmul.mubr.msk.f32.vlgmr.msra.gmra.mrb[0].mxu1 %vm1421_vm11, %v2505_v47 }
 0x38d   : > { %2202 = vst.msk [vmem:[#allocation4 + $0x18] sm:$0xff] %vm1005_vm7, %v2158_v46  ;;  %2077 = vrot.lane.b32.xlu1 %v2321_v43, %s3197_s27 }
 0x38e   : > { %1790 = vrot.lane.b32.xlu0 %v2320_v36, %s3195_s25 }
 0x38f   : > { %v1968_v49 = vpop.permute.xlu1 %1967 }
 0x390   : > { %v1873_v50 = vpop.permute.xlu0 %1872  ;;  %2011 = vst.msk [vmem:[#allocation4 + $0x20] sm:$0xff] %vm763_vm5, %v1968_v49 }
 0x391   : > { %1915 = vst.msk [vmem:[#allocation4 + $0x28] sm:$0xff] %vm641_vm4, %v1873_v50  ;;  %2458 = vrot.lane.b32.xlu1 %v2417_v48, %s3201_s16 }
 0x392   : > { %2171 = vrot.lane.b32.xlu0 %v2416_v42, %s3198_s28 }
 0x393   : > { %v2349_v51 = vpop.permute.xlu1 %2348 }
 0x394   : > { %v2255_v18 = vpop.permute.xlu0 %2254  ;;  %2394 = vst.msk [vmem:[#allocation4 + $0x10] sm:$0xff] %vm1247_vm9, %v2349_v51 }
 0x395   : > { %2299 = vst.msk [vmem:[#allocation4 + $0x18] sm:$0xff] %vm1126_vm8, %v2255_v18  ;;  %1886 = vrot.lane.b32.xlu1 %v2416_v42, %s3194_s19  ;;  %v2422_v42 = vld [vmem:[#allocation3 + $0xda] sm:$0xff] }
 0x396   : > { %1792 = vrot.lane.b32.xlu0 %v2321_v43, %s3195_s25  ;;  %v2423_v43 = vld [vmem:[#allocation3 + $0xe2] sm:$0xff] }
 0x397   : > { %v2064_v52 = vpop.permute.xlu1 %2063 }
 0x398   : > { %v1970_v53 = vpop.permute.xlu0 %1969  ;;  %2107 = vst.msk [vmem:[#allocation4 + $0x20] sm:$0xff] %vm884_vm6, %v2064_v52 }
 0x399   : > { %2012 = vst.msk [vmem:[#allocation4 + $0x28] sm:$0xff] %vm763_vm5, %v1970_v53  ;;  %2268 = vrot.lane.b32.xlu1 %v3980_v1, %s3199_s29 }
 0x39a   : > { %2173 = vrot.lane.b32.xlu0 %v2417_v48, %s3198_s28 }
 0x39b   : > { %v2445_v54 = vpop.permute.xlu1 %2444 }
 0x39c   : > { %v2351_v55 = vpop.permute.xlu0 %2350  ;;  %2490 = vst.msk [vmem:[#allocation4 + $0x10] sm:$0xff] %vm1368_vm10, %v2445_v54 }
 0x39d   : > { %2395 = vst.msk [vmem:[#allocation4 + $0x18] sm:$0xff] %vm1247_vm9, %v2351_v55  ;;  %1983 = vrot.lane.b32.xlu1 %v3980_v1, %s3196_s26  ;;  %v2418_v1 = vld [vmem:[#allocation3 + $0xaa] sm:$0xff] }
 0x39e   : > { %1888 = vrot.lane.b32.xlu0 %v2417_v48, %s3194_s19 }
 0x39f   : > { %v2066_v57 = vpop.permute.xlu1 %2065 }
 0x3a0   : > { %v1779_v58 = vpop.permute.xlu0 %1778  ;;  %2108 = vst.msk [vmem:[#allocation4 + $0x28] sm:$0xff] %vm884_vm6, %v2066_v57 }
 0x3a1   : > { %1820 = vst.msk [vmem:[#allocation4 + $0x30] sm:$0xff] %vm520_vm3, %v1779_v58  ;;  %2364 = vrot.lane.b32.xlu1 %v2322_v56, %s3200_s9 }
 0x3a2   : > { %2270 = vrot.lane.b32.xlu0 %v3990_v3, %s3199_s29 }
 0x3a3   : > { %v2447_v59 = vpop.permute.xlu1 %2446  ;;  %v2506_v63 = vld [vmem:[#allocation4 + $0x10] sm:$0xff] }
 0x3a4   : > { %v2160_v61 = vpop.permute.xlu0 %2159  ;;  %2491 = vst.msk [vmem:[#allocation4 + $0x18] sm:$0xff] %vm1368_vm10, %v2447_v59  ;;  %3061 = vmatprep.mubr.msk.f32.mxu1 %vm1421_vm11, %v2506_v63 }
 0x3a5   : > { %2203 = vst.msk [vmem:[#allocation4 + $0x20] sm:$0xff] %vm1005_vm7, %v2160_v61  ;;  %2079 = vrot.lane.b32.xlu1 %v2322_v56, %s3197_s27 }
 0x3a6   : > { %1985 = vrot.lane.b32.xlu0 %v3990_v3, %s3196_s26  ;;  %v2419_v3 = vld [vmem:[#allocation3 + $0xb2] sm:$0xff] }
 0x3a7   : > { %v1875_v5 = vpop.permute.xlu1 %1874 }
 0x3a8   : > { %v1781_v6 = vpop.permute.xlu0 %1780  ;;  %1916 = vst.msk [vmem:[#allocation4 + $0x30] sm:$0xff] %vm641_vm4, %v1875_v5 }
 0x3a9   : > { %1821 = vst.msk [vmem:[#allocation4 + $0x38] sm:$0xff] %vm520_vm3, %v1781_v6  ;;  %2460 = vrot.lane.b32.xlu1 %v2418_v1, %s3201_s16 }
 0x3aa   : > { %2366 = vrot.lane.b32.xlu0 %v2323_v60, %s3200_s9 }
 0x3ab   : > { %v2257_v7 = vpop.permute.xlu1 %2256  ;;  %v2507_v9 = vld [vmem:[#allocation4 + $0x18] sm:$0xff] }
 0x3ac   : > { %v2162_v8 = vpop.permute.xlu0 %2161  ;;  %2300 = vst.msk [vmem:[#allocation4 + $0x20] sm:$0xff] %vm1126_vm8, %v2257_v7  ;;  %3062 = vmatmul.mubr.msk.f32.gmra.mrb[2].mxu1 %vm1421_vm11, %v2507_v9 }
 0x3ad   : > { %2204 = vst.msk [vmem:[#allocation4 + $0x28] sm:$0xff] %vm1005_vm7, %v2162_v8  ;;  %2081 = vrot.lane.b32.xlu1 %v2323_v60, %s3197_s27 }
 0x3ae   : > { %1794 = vrot.lane.b32.xlu0 %v2322_v56, %s3195_s25 }
 0x3af   : > { %v1972_v62 = vpop.permute.xlu1 %1971 }
 0x3b0   : > { %v1877_v10 = vpop.permute.xlu0 %1876  ;;  %2013 = vst.msk [vmem:[#allocation4 + $0x30] sm:$0xff] %vm763_vm5, %v1972_v62 }
 0x3b1   : > { %1917 = vst.msk [vmem:[#allocation4 + $0x38] sm:$0xff] %vm641_vm4, %v1877_v10  ;;  %2462 = vrot.lane.b32.xlu1 %v2419_v3, %s3201_s16 }
 0x3b2   : > { %2175 = vrot.lane.b32.xlu0 %v2418_v1, %s3198_s28 }
 0x3b3   : > { %v2353_v11 = vpop.permute.xlu1 %2352 }
 0x3b4   : > { %v2259_v13 = vpop.permute.xlu0 %2258  ;;  %2396 = vst.msk [vmem:[#allocation4 + $0x20] sm:$0xff] %vm1247_vm9, %v2353_v11 }
 0x3b5   : > { %2301 = vst.msk [vmem:[#allocation4 + $0x28] sm:$0xff] %vm1126_vm8, %v2259_v13  ;;  %1890 = vrot.lane.b32.xlu1 %v2418_v1, %s3194_s19 }
 0x3b6   : > { %1796 = vrot.lane.b32.xlu0 %v2323_v60, %s3195_s25 }
 0x3b7   : > { %v2068_v15 = vpop.permute.xlu1 %2067 }
 0x3b8   : > { %v1974_v16 = vpop.permute.xlu0 %1973  ;;  %2109 = vst.msk [vmem:[#allocation4 + $0x30] sm:$0xff] %vm884_vm6, %v2068_v15 }
 0x3b9   : > { %2014 = vst.msk [vmem:[#allocation4 + $0x38] sm:$0xff] %vm763_vm5, %v1974_v16  ;;  %2272 = vrot.lane.b32.xlu1 %v2228_v14, %s3199_s29 }
 0x3ba   : > { %2177 = vrot.lane.b32.xlu0 %v2419_v3, %s3198_s28 }
 0x3bb   : > { %v2449_v17 = vpop.permute.xlu1 %2448 }
 0x3bc   : > { %v2355_v19 = vpop.permute.xlu0 %2354  ;;  %2492 = vst.msk [vmem:[#allocation4 + $0x20] sm:$0xff] %vm1368_vm10, %v2449_v17 }
 0x3bd   : > { %2397 = vst.msk [vmem:[#allocation4 + $0x28] sm:$0xff] %vm1247_vm9, %v2355_v19  ;;  %1987 = vrot.lane.b32.xlu1 %v2228_v14, %s3196_s26 }
 0x3be   : > { %1892 = vrot.lane.b32.xlu0 %v2419_v3, %s3194_s19 }
 0x3bf   : > { %v2070_v22 = vpop.permute.xlu1 %2069 }
 0x3c0   : > { %v1783_v23 = vpop.permute.xlu0 %1782  ;;  %2110 = vst.msk [vmem:[#allocation4 + $0x38] sm:$0xff] %vm884_vm6, %v2070_v22 }
 0x3c1   : > { %1822 = vst.msk [vmem:[#allocation4 + $0x40] sm:$0xff] %vm520_vm3, %v1783_v23  ;;  %2368 = vrot.lane.b32.xlu1 %v2324_v21, %s3200_s9 }
 0x3c2   : > { %2274 = vrot.lane.b32.xlu0 %v2229_v20, %s3199_s29 }
 0x3c3   : > { %v2451_v24 = vpop.permute.xlu1 %2450  ;;  %v2508_v2 = vld [vmem:[#allocation4 + $0x20] sm:$0xff] }
 0x3c4   : > { %v2164_v25 = vpop.permute.xlu0 %2163  ;;  %2493 = vst.msk [vmem:[#allocation4 + $0x28] sm:$0xff] %vm1368_vm10, %v2451_v24  ;;  %3064 = vmatprep.mubr.msk.f32.mxu1 %vm1421_vm11, %v2508_v2 }
 0x3c5   : > { %2205 = vst.msk [vmem:[#allocation4 + $0x30] sm:$0xff] %vm1005_vm7, %v2164_v25  ;;  %2083 = vrot.lane.b32.xlu1 %v2324_v21, %s3197_s27 }
 0x3c6   : > { %1989 = vrot.lane.b32.xlu0 %v2229_v20, %s3196_s26 }
 0x3c7   : > { %v1879_v28 = vpop.permute.xlu1 %1878 }
 0x3c8   : > { %v1785_v29 = vpop.permute.xlu0 %1784  ;;  %1918 = vst.msk [vmem:[#allocation4 + $0x40] sm:$0xff] %vm641_vm4, %v1879_v28 }
 0x3c9   : > { %1823 = vst.msk [vmem:[#allocation4 + $0x48] sm:$0xff] %vm520_vm3, %v1785_v29  ;;  %2464 = vrot.lane.b32.xlu1 %v2420_v27, %s3201_s16 }
 0x3ca   : > { %2370 = vrot.lane.b32.xlu0 %v2325_v26, %s3200_s9 }
 0x3cb   : > { %v2261_v30 = vpop.permute.xlu1 %2260  ;;  %v2509_v4 = vld [vmem:[#allocation4 + $0x28] sm:$0xff] }
 0x3cc   : > { %v2166_v31 = vpop.permute.xlu0 %2165  ;;  %2302 = vst.msk [vmem:[#allocation4 + $0x30] sm:$0xff] %vm1126_vm8, %v2261_v30  ;;  %3065 = vmatmul.mubr.msk.f32.gmra.mrb[4].mxu1 %vm1421_vm11, %v2509_v4 }
 0x3cd   : > { %2206 = vst.msk [vmem:[#allocation4 + $0x38] sm:$0xff] %vm1005_vm7, %v2166_v31  ;;  %2179 = vrot.lane.b32.xlu1 %v2420_v27, %s3198_s28 }
 0x3ce   : > { %2085 = vrot.lane.b32.xlu0 %v2325_v26, %s3197_s27 }
 0x3cf   : > { %v1976_v32 = vpop.permute.xlu1 %1975 }
 0x3d0   : > { %v1881_v33 = vpop.permute.xlu0 %1880  ;;  %2015 = vst.msk [vmem:[#allocation4 + $0x40] sm:$0xff] %vm763_vm5, %v1976_v32 }
 0x3d1   : > { %1919 = vst.msk [vmem:[#allocation4 + $0x48] sm:$0xff] %vm641_vm4, %v1881_v33  ;;  %2181 = vrot.lane.b32.xlu1 %v2421_v0, %s3198_s28 }
 0x3d2   : > { %2466 = vrot.lane.b32.xlu0 %v2421_v0, %s3201_s16 }
 0x3d3   : > { %v2357_v36 = vpop.permute.xlu1 %2356 }
 0x3d4   : > { %v2263_v37 = vpop.permute.xlu0 %2262  ;;  %2398 = vst.msk [vmem:[#allocation4 + $0x30] sm:$0xff] %vm1247_vm9, %v2357_v36 }
 0x3d5   : > { %2303 = vst.msk [vmem:[#allocation4 + $0x38] sm:$0xff] %vm1126_vm8, %v2263_v37  ;;  %2278 = vrot.lane.b32.xlu1 %v2231_v35, %s3199_s29 }
 0x3d6   : > { %2276 = vrot.lane.b32.xlu0 %v2230_v34, %s3199_s29 }
 0x3d7   : > { %v2072_v40 = vpop.permute.xlu1 %2071 }
 0x3d8   : > { %v1978_v41 = vpop.permute.xlu0 %1977  ;;  %2111 = vst.msk [vmem:[#allocation4 + $0x40] sm:$0xff] %vm884_vm6, %v2072_v40 }
 0x3d9   : > { %2016 = vst.msk [vmem:[#allocation4 + $0x48] sm:$0xff] %vm763_vm5, %v1978_v41  ;;  %2374 = vrot.lane.b32.xlu1 %v2327_v39, %s3200_s9 }
 0x3da   : > { %2372 = vrot.lane.b32.xlu0 %v2326_v38, %s3200_s9 }
 0x3db   : > { %v2453_v44 = vpop.permute.xlu1 %2452 }
 0x3dc   : > { %v2359_v45 = vpop.permute.xlu0 %2358  ;;  %2494 = vst.msk [vmem:[#allocation4 + $0x30] sm:$0xff] %vm1368_vm10, %v2453_v44 }
 0x3dd   : > { %2399 = vst.msk [vmem:[#allocation4 + $0x38] sm:$0xff] %vm1247_vm9, %v2359_v45  ;;  %2470 = vrot.lane.b32.xlu1 %v2423_v43, %s3201_s16 }
 0x3de   : > { %2468 = vrot.lane.b32.xlu0 %v2422_v42, %s3201_s16 }
 0x3df   : > { %v2074_v12 = vpop.permute.xlu1 %2073 }
 0x3e0   : > { %v1787_v46 = vpop.permute.xlu0 %1786  ;;  %2112 = vst.msk [vmem:[#allocation4 + $0x48] sm:$0xff] %vm884_vm6, %v2074_v12 }
 0x3e1   : > { %1824 = vst.msk [vmem:[#allocation4 + $0x50] sm:$0xff] %vm520_vm3, %v1787_v46 }
 0x3e3   : > { %v2455_v47 = vpop.permute.xlu1 %2454  ;;  %v2510_v49 = vld [vmem:[#allocation4 + $0x30] sm:$0xff] }
 0x3e4   : > { %v2168_v48 = vpop.permute.xlu0 %2167  ;;  %2495 = vst.msk [vmem:[#allocation4 + $0x38] sm:$0xff] %vm1368_vm10, %v2455_v47  ;;  %3067 = vmatprep.mubr.msk.f32.mxu1 %vm1421_vm11, %v2510_v49  ;;  %v4255_v49 = vld [vmem:[%s4340_s4] ss:$0 sm:$0xff] }
 0x3e5   : > { %2207 = vst.msk [vmem:[#allocation4 + $0x40] sm:$0xff] %vm1005_vm7, %v2168_v48 }
 0x3e7   : > { %v1883_v50 = vpop.permute.xlu1 %1882 }
 0x3e8   : > { %v1789_v51 = vpop.permute.xlu0 %1788  ;;  %1920 = vst.msk [vmem:[#allocation4 + $0x50] sm:$0xff] %vm641_vm4, %v1883_v50 }
 0x3e9   : > { %1825 = vst.msk [vmem:[#allocation4 + $0x58] sm:$0xff] %vm520_vm3, %v1789_v51  ;;  %v2729_v51 = vld [vmem:[%s3328_s10 + $0x8] sm:$0xff] }
 0x3eb   : > { %v2265_v18 = vpop.permute.xlu1 %2264  ;;  %v2511_v53 = vld [vmem:[#allocation4 + $0x38] sm:$0xff] }
 0x3ec   : > { %v2170_v52 = vpop.permute.xlu0 %2169  ;;  %2304 = vst.msk [vmem:[#allocation4 + $0x40] sm:$0xff] %vm1126_vm8, %v2265_v18  ;;  %3068 = vmatmul.mubr.msk.f32.gmra.mrb[6].mxu1 %vm1421_vm11, %v2511_v53  ;;  %v2728_v53 = vld [vmem:[%s3328_s10] sm:$0xff] }
 0x3ed   : > { %2208 = vst.msk [vmem:[#allocation4 + $0x48] sm:$0xff] %vm1005_vm7, %v2170_v52 }
 0x3ef   : > { %v1980_v54 = vpop.permute.xlu1 %1979 }
 0x3f0   : > { %v1885_v55 = vpop.permute.xlu0 %1884  ;;  %2017 = vst.msk [vmem:[#allocation4 + $0x50] sm:$0xff] %vm763_vm5, %v1980_v54 }
 0x3f1   : > { %1921 = vst.msk [vmem:[#allocation4 + $0x58] sm:$0xff] %vm641_vm4, %v1885_v55 }
 0x3f3   : > { %v2361_v56 = vpop.permute.xlu1 %2360 }
 0x3f4   : > { %v2267_v57 = vpop.permute.xlu0 %2266  ;;  %2400 = vst.msk [vmem:[#allocation4 + $0x40] sm:$0xff] %vm1247_vm9, %v2361_v56 }
 0x3f5   : > { %2305 = vst.msk [vmem:[#allocation4 + $0x48] sm:$0xff] %vm1126_vm8, %v2267_v57 }
 0x3f7   : > { %v2076_v58 = vpop.permute.xlu1 %2075 }
 0x3f8   : > { %v1982_v59 = vpop.permute.xlu0 %1981  ;;  %2113 = vst.msk [vmem:[#allocation4 + $0x50] sm:$0xff] %vm884_vm6, %v2076_v58 }
 0x3f9   : > { %2018 = vst.msk [vmem:[#allocation4 + $0x58] sm:$0xff] %vm763_vm5, %v1982_v59 }
 0x3fb   : > { %v2457_v61 = vpop.permute.xlu1 %2456 }
 0x3fc   : > { %v2363_v63 = vpop.permute.xlu0 %2362  ;;  %2496 = vst.msk [vmem:[#allocation4 + $0x40] sm:$0xff] %vm1368_vm10, %v2457_v61  ;;  %v2731_v61 = vld [vmem:[%s3328_s10 + $0x18] sm:$0xff] }
 0x3fd   : > { %2401 = vst.msk [vmem:[#allocation4 + $0x48] sm:$0xff] %vm1247_vm9, %v2363_v63 }
 0x3ff   : > { %v2078_v1 = vpop.permute.xlu1 %2077 }
 0x400   : > { %v1791_v60 = vpop.permute.xlu0 %1790  ;;  %2114 = vst.msk [vmem:[#allocation4 + $0x58] sm:$0xff] %vm884_vm6, %v2078_v1 }
 0x401   : > { %1826 = vst.msk [vmem:[#allocation4 + $0x60] sm:$0xff] %vm520_vm3, %v1791_v60  ;;  %v2730_v60 = vld [vmem:[%s3328_s10 + $0x10] sm:$0xff] }
 0x403   : > { %v2459_v5 = vpop.permute.xlu1 %2458  ;;  %v2512_v7 = vld [vmem:[#allocation4 + $0x40] sm:$0xff] }
 0x404   : > { %v2172_v6 = vpop.permute.xlu0 %2171  ;;  %2497 = vst.msk [vmem:[#allocation4 + $0x48] sm:$0xff] %vm1368_vm10, %v2459_v5  ;;  %3070 = vmatprep.mubr.msk.f32.mxu1 %vm1421_vm11, %v2512_v7 }
 0x405   : > { %2209 = vst.msk [vmem:[#allocation4 + $0x50] sm:$0xff] %vm1005_vm7, %v2172_v6 }
 0x407   : > { %v1887_v8 = vpop.permute.xlu1 %1886 }
 0x408   : > { %v1793_v9 = vpop.permute.xlu0 %1792  ;;  %1922 = vst.msk [vmem:[#allocation4 + $0x60] sm:$0xff] %vm641_vm4, %v1887_v8 }
 0x409   : > { %1827 = vst.msk [vmem:[#allocation4 + $0x68] sm:$0xff] %vm520_vm3, %v1793_v9 }
 0x40b   : > { %v2269_v3 = vpop.permute.xlu1 %2268  ;;  %v2513_v10 = vld [vmem:[#allocation4 + $0x48] sm:$0xff] }
 0x40c   : > { %v2174_v62 = vpop.permute.xlu0 %2173  ;;  %2306 = vst.msk [vmem:[#allocation4 + $0x50] sm:$0xff] %vm1126_vm8, %v2269_v3  ;;  %3071 = vmatmul.mubr.msk.f32.gmra.mrb[8].mxu1 %vm1421_vm11, %v2513_v10 }
 0x40d   : > { %2210 = vst.msk [vmem:[#allocation4 + $0x58] sm:$0xff] %vm1005_vm7, %v2174_v62  ;;  %v2733_v62 = vld [vmem:[%s3328_s10 + $0x28] sm:$0xff] }
 0x40f   : > { %v1984_v11 = vpop.permute.xlu1 %1983 }
 0x410   : > { %v1889_v13 = vpop.permute.xlu0 %1888  ;;  %2019 = vst.msk [vmem:[#allocation4 + $0x60] sm:$0xff] %vm763_vm5, %v1984_v11 }
 0x411   : > { %1923 = vst.msk [vmem:[#allocation4 + $0x68] sm:$0xff] %vm641_vm4, %v1889_v13  ;;  %v2732_v13 = vld [vmem:[%s3328_s10 + $0x20] sm:$0xff] }
 0x413   : > { %v2365_v14 = vpop.permute.xlu1 %2364 }
 0x414   : > { %v2271_v15 = vpop.permute.xlu0 %2270  ;;  %2402 = vst.msk [vmem:[#allocation4 + $0x50] sm:$0xff] %vm1247_vm9, %v2365_v14 }
 0x415   : > { %2307 = vst.msk [vmem:[#allocation4 + $0x58] sm:$0xff] %vm1126_vm8, %v2271_v15 }
 0x417   : > { %v2080_v16 = vpop.permute.xlu1 %2079 }
 0x418   : > { %v1986_v17 = vpop.permute.xlu0 %1985  ;;  %2115 = vst.msk [vmem:[#allocation4 + $0x60] sm:$0xff] %vm884_vm6, %v2080_v16 }
 0x419   : > { %2020 = vst.msk [vmem:[#allocation4 + $0x68] sm:$0xff] %vm763_vm5, %v1986_v17 }
 0x41b   : > { %v2461_v19 = vpop.permute.xlu1 %2460 }
 0x41c   : > { %v2367_v20 = vpop.permute.xlu0 %2366  ;;  %2498 = vst.msk [vmem:[#allocation4 + $0x50] sm:$0xff] %vm1368_vm10, %v2461_v19 }
 0x41d   : > { %2403 = vst.msk [vmem:[#allocation4 + $0x58] sm:$0xff] %vm1247_vm9, %v2367_v20 }
 0x41f   : > { %v2082_v21 = vpop.permute.xlu1 %2081 }
 0x420   : > { %v1795_v22 = vpop.permute.xlu0 %1794  ;;  %2116 = vst.msk [vmem:[#allocation4 + $0x68] sm:$0xff] %vm884_vm6, %v2082_v21  ;;  %v2735_v21 = vld [vmem:[%s3328_s10 + $0x38] sm:$0xff] }
 0x421   : > { %1828 = vst.msk [vmem:[#allocation4 + $0x70] sm:$0xff] %vm520_vm3, %v1795_v22 }
 0x423   : > { %v2463_v23 = vpop.permute.xlu1 %2462  ;;  %v2514_v25 = vld [vmem:[#allocation4 + $0x50] sm:$0xff] }
 0x424   : > { %v2176_v24 = vpop.permute.xlu0 %2175  ;;  %2499 = vst.msk [vmem:[#allocation4 + $0x58] sm:$0xff] %vm1368_vm10, %v2463_v23  ;;  %3073 = vmatprep.mubr.msk.f32.mxu1 %vm1421_vm11, %v2514_v25 }
 0x425   : > { %2211 = vst.msk [vmem:[#allocation4 + $0x60] sm:$0xff] %vm1005_vm7, %v2176_v24  ;;  %v2734_v24 = vld [vmem:[%s3328_s10 + $0x30] sm:$0xff] }
 0x427   : > { %v1891_v26 = vpop.permute.xlu1 %1890 }
 0x428   : > { %v1797_v2 = vpop.permute.xlu0 %1796  ;;  %1924 = vst.msk [vmem:[#allocation4 + $0x70] sm:$0xff] %vm641_vm4, %v1891_v26 }
 0x429   : > { %1829 = vst.msk [vmem:[#allocation4 + $0x78] sm:$0xff] %vm520_vm3, %v1797_v2 }
 0x42b   : > { %v2273_v28 = vpop.permute.xlu1 %2272  ;;  %v2515_v29 = vld [vmem:[#allocation4 + $0x58] sm:$0xff] }
 0x42c   : > { %v2178_v27 = vpop.permute.xlu0 %2177  ;;  %2308 = vst.msk [vmem:[#allocation4 + $0x60] sm:$0xff] %vm1126_vm8, %v2273_v28  ;;  %3074 = vmatmul.mubr.msk.f32.gmra.mrb[10].mxu1 %vm1421_vm11, %v2515_v29 }
 0x42d   : > { %2212 = vst.msk [vmem:[#allocation4 + $0x68] sm:$0xff] %vm1005_vm7, %v2178_v27 }
 0x42f   : > { %v1988_v31 = vpop.permute.xlu1 %1987 }
 0x430   : > { %v1893_v30 = vpop.permute.xlu0 %1892  ;;  %2021 = vst.msk [vmem:[#allocation4 + $0x70] sm:$0xff] %vm763_vm5, %v1988_v31 }
 0x431   : > { %1925 = vst.msk [vmem:[#allocation4 + $0x78] sm:$0xff] %vm641_vm4, %v1893_v30  ;;  %v2737_v30 = vld [vmem:[%s3328_s10 + $0x48] sm:$0xff] }
 0x433   : > { %v2369_v0 = vpop.permute.xlu1 %2368 }
 0x434   : > { %v2275_v4 = vpop.permute.xlu0 %2274  ;;  %2404 = vst.msk [vmem:[#allocation4 + $0x60] sm:$0xff] %vm1247_vm9, %v2369_v0  ;;  %v2736_v0 = vld [vmem:[%s3328_s10 + $0x40] sm:$0xff] }
 0x435   : > { %2309 = vst.msk [vmem:[#allocation4 + $0x68] sm:$0xff] %vm1126_vm8, %v2275_v4 }
 0x437   : > { %v2084_v33 = vpop.permute.xlu1 %2083 }
 0x438   : > { %v1990_v32 = vpop.permute.xlu0 %1989  ;;  %2117 = vst.msk [vmem:[#allocation4 + $0x70] sm:$0xff] %vm884_vm6, %v2084_v33 }
 0x439   : > { %2022 = vst.msk [vmem:[#allocation4 + $0x78] sm:$0xff] %vm763_vm5, %v1990_v32 }
 0x43b   : > { %v2465_v35 = vpop.permute.xlu1 %2464 }
 0x43c   : > { %v2371_v34 = vpop.permute.xlu0 %2370  ;;  %2500 = vst.msk [vmem:[#allocation4 + $0x60] sm:$0xff] %vm1368_vm10, %v2465_v35 }
 0x43d   : > { %2405 = vst.msk [vmem:[#allocation4 + $0x68] sm:$0xff] %vm1247_vm9, %v2371_v34 }
 0x43f   : > { %v2180_v37 = vpop.permute.xlu1 %2179 }
 0x440   : > { %v2086_v36 = vpop.permute.xlu0 %2085  ;;  %2213 = vst.msk [vmem:[#allocation4 + $0x70] sm:$0xff] %vm1005_vm7, %v2180_v37 }
 0x441   : > { %2118 = vst.msk [vmem:[#allocation4 + $0x78] sm:$0xff] %vm884_vm6, %v2086_v36 }
 0x443   : > { %v2182_v39 = vpop.permute.xlu1 %2181  ;;  %v2516_v40 = vld [vmem:[#allocation4 + $0x60] sm:$0xff] }
 0x444   : > { %v2467_v38 = vpop.permute.xlu0 %2466  ;;  %2214 = vst.msk [vmem:[#allocation4 + $0x78] sm:$0xff] %vm1005_vm7, %v2182_v39  ;;  %3076 = vmatprep.mubr.msk.f32.mxu1 %vm1421_vm11, %v2516_v40 }
 0x445   : > { %2501 = vst.msk [vmem:[#allocation4 + $0x68] sm:$0xff] %vm1368_vm10, %v2467_v38  ;;  %v2739_v38 = vld [vmem:[%s3328_s10 + $0x58] sm:$0xff] }
 0x447   : > { %v2279_v42 = vpop.permute.xlu1 %2278 }
 0x448   : > { %v2277_v41 = vpop.permute.xlu0 %2276  ;;  %2311 = vst.msk [vmem:[#allocation4 + $0x78] sm:$0xff] %vm1126_vm8, %v2279_v42 }
 0x449   : > { %2310 = vst.msk [vmem:[#allocation4 + $0x70] sm:$0xff] %vm1126_vm8, %v2277_v41  ;;  %v2738_v41 = vld [vmem:[%s3328_s10 + $0x50] sm:$0xff] }
 0x44b   : > { %v2375_v44 = vpop.permute.xlu1 %2374 }
 0x44c   : > { %v2373_v43 = vpop.permute.xlu0 %2372  ;;  %v2517_v45 = vld [vmem:[#allocation4 + $0x68] sm:$0xff]  ;;  %2407 = vst.msk [vmem:[#allocation4 + $0x78] sm:$0xff] %vm1247_vm9, %v2375_v44 }
 0x44d   : > { %2406 = vst.msk [vmem:[#allocation4 + $0x70] sm:$0xff] %vm1247_vm9, %v2373_v43  ;;  %3077 = vmatmul.mubr.msk.f32.gmra.mrb[12].mxu1 %vm1421_vm11, %v2517_v45 }
 0x44f   : > { %v2471_v46 = vpop.permute.xlu1 %2470 }
 0x450   : > { %v2469_v12 = vpop.permute.xlu0 %2468  ;;  %2503 = vst.msk [vmem:[#allocation4 + $0x78] sm:$0xff] %vm1368_vm10, %v2471_v46 }
 0x451   : > { %2502 = vst.msk [vmem:[#allocation4 + $0x70] sm:$0xff] %vm1368_vm10, %v2469_v12 }
 0x457   : > { %v2519_v48 = vld [vmem:[#allocation4 + $0x78] sm:$0xff] }
 0x458   : > { %v2518_v47 = vld [vmem:[#allocation4 + $0x70] sm:$0xff] }
 0x459   : > { %3079 = vmatprep.mubr.msk.f32.mxu1 %vm1421_vm11, %v2518_v47  ;;  %v2741_v47 = vld [vmem:[%s3328_s10 + $0x68] sm:$0xff] }
 0x45a   : > { %3080 = vmatmul.mubr.msk.f32.gmra.mrb[14].mxu1 %vm1421_vm11, %v2519_v48 }
 0x45f   : > { %v3060_v50 = vpop.f32.mrb[0].mxu1 }
 0x460   : > { %v2655_v18 = vadd.f32 %v3060_v50, %v4255_v49  ;;  %v2649_v52 = vpop.f32.mrb[1].mxu1 }
 0x461   : > { %v2650_v54 = vadd.f32 %v4255_v49, %v2649_v52 }
 0x462   : > { %v2745_v55 = vadd.f32 %v2729_v51, %v2655_v18  ;;  %v2740_v51 = vld [vmem:[%s3328_s10 + $0x60] sm:$0xff] }
 0x463   : > { %v2744_v56 = vadd.f32 %v2728_v53, %v2650_v54 }
 0x464   : > { %v2761_v57 = vmax.f32 %v2745_v55, 0.0 }
 0x465   : > { %v2760_v58 = vmax.f32 %v2744_v56, 0.0 }
 0x466   : > { %2777 = vst.msk [vmem:[%s3336_s14 + $0x8] sm:$0xff] %vm315_vm1, %v2761_v57  ;;  %v2743_v57 = vld [vmem:[%s3328_s10 + $0x78] sm:$0xff] }
 0x467   : > { %2776 = vst.msk [vmem:[%s3336_s14] sm:$0xff] %vm315_vm1, %v2760_v58 }
 0x47f   : > { %v3063_v59 = vpop.f32.mrb[2].mxu1 }
 0x480   : > { %v2665_v63 = vadd.f32 %v3063_v59, %v4255_v49  ;;  %v2659_v1 = vpop.f32.mrb[3].mxu1 }
 0x481   : > { %v2660_v5 = vadd.f32 %v4255_v49, %v2659_v1 }
 0x482   : > { %v2747_v6 = vadd.f32 %v2731_v61, %v2665_v63  ;;  %v2742_v61 = vld [vmem:[%s3328_s10 + $0x70] sm:$0xff] }
 0x483   : > { %v2746_v7 = vadd.f32 %v2730_v60, %v2660_v5 }
 0x484   : > { %v2763_v8 = vmax.f32 %v2747_v6, 0.0 }
 0x485   : > { %v2762_v9 = vmax.f32 %v2746_v7, 0.0 }
 0x486   : > { %2779 = vst.msk [vmem:[%s3336_s14 + $0x18] sm:$0xff] %vm315_vm1, %v2763_v8 }
 0x487   : > { %2778 = vst.msk [vmem:[%s3336_s14 + $0x10] sm:$0xff] %vm315_vm1, %v2762_v9 }
 0x49f   : > { %v3066_v3 = vpop.f32.mrb[4].mxu1 }
 0x4a0   : > { %v2675_v10 = vadd.f32 %v3066_v3, %v4255_v49  ;;  %v2669_v11 = vpop.f32.mrb[5].mxu1 }
 0x4a1   : > { %v2670_v14 = vadd.f32 %v4255_v49, %v2669_v11 }
 0x4a2   : > { %v2749_v15 = vadd.f32 %v2733_v62, %v2675_v10 }
 0x4a3   : > { %v2748_v16 = vadd.f32 %v2732_v13, %v2670_v14 }
 0x4a4   : > { %v2765_v17 = vmax.f32 %v2749_v15, 0.0 }
 0x4a5   : > { %v2764_v19 = vmax.f32 %v2748_v16, 0.0 }
 0x4a6   : > { %2781 = vst.msk [vmem:[%s3336_s14 + $0x28] sm:$0xff] %vm315_vm1, %v2765_v17 }
 0x4a7   : > { %2780 = vst.msk [vmem:[%s3336_s14 + $0x20] sm:$0xff] %vm315_vm1, %v2764_v19 }
 0x4bf   : > { %v3069_v20 = vpop.f32.mrb[6].mxu1 }
 0x4c0   : > { %v2685_v22 = vadd.f32 %v3069_v20, %v4255_v49  ;;  %v2679_v23 = vpop.f32.mrb[7].mxu1 }
 0x4c1   : > { %v2680_v25 = vadd.f32 %v4255_v49, %v2679_v23 }
 0x4c2   : > { %v2751_v2 = vadd.f32 %v2735_v21, %v2685_v22 }
 0x4c3   : > { %v2750_v26 = vadd.f32 %v2734_v24, %v2680_v25 }
 0x4c4   : > { %v2767_v27 = vmax.f32 %v2751_v2, 0.0 }
 0x4c5   : > { %v2766_v28 = vmax.f32 %v2750_v26, 0.0 }
 0x4c6   : > { %2783 = vst.msk [vmem:[%s3336_s14 + $0x38] sm:$0xff] %vm315_vm1, %v2767_v27 }
 0x4c7   : > { %2782 = vst.msk [vmem:[%s3336_s14 + $0x30] sm:$0xff] %vm315_vm1, %v2766_v28 }
 0x4df   : > { %v3072_v29 = vpop.f32.mrb[8].mxu1 }
 0x4e0   : > { %v2695_v31 = vadd.f32 %v3072_v29, %v4255_v49  ;;  %v2689_v4 = vpop.f32.mrb[9].mxu1 }
 0x4e1   : > { %v2690_v32 = vadd.f32 %v4255_v49, %v2689_v4 }
 0x4e2   : > { %v2753_v33 = vadd.f32 %v2737_v30, %v2695_v31 }
 0x4e3   : > { %v2752_v34 = vadd.f32 %v2736_v0, %v2690_v32 }
 0x4e4   : > { %v2769_v35 = vmax.f32 %v2753_v33, 0.0 }
 0x4e5   : > { %v2768_v36 = vmax.f32 %v2752_v34, 0.0 }
 0x4e6   : > { %2785 = vst.msk [vmem:[%s3336_s14 + $0x48] sm:$0xff] %vm315_vm1, %v2769_v35 }
 0x4e7   : > { %2784 = vst.msk [vmem:[%s3336_s14 + $0x40] sm:$0xff] %vm315_vm1, %v2768_v36 }
 0x4ff   : > { %v3075_v37 = vpop.f32.mrb[10].mxu1 }
 0x500   : > { %v2705_v39 = vadd.f32 %v3075_v37, %v4255_v49  ;;  %v2699_v40 = vpop.f32.mrb[11].mxu1 }
 0x501   : > { %v2700_v42 = vadd.f32 %v4255_v49, %v2699_v40 }
 0x502   : > { %v2755_v43 = vadd.f32 %v2739_v38, %v2705_v39 }
 0x503   : > { %v2754_v44 = vadd.f32 %v2738_v41, %v2700_v42 }
 0x504   : > { %v2771_v45 = vmax.f32 %v2755_v43, 0.0 }
 0x505   : > { %v2770_v12 = vmax.f32 %v2754_v44, 0.0 }
 0x506   : > { %2787 = vst.msk [vmem:[%s3336_s14 + $0x58] sm:$0xff] %vm315_vm1, %v2771_v45 }
 0x507   : > { %2786 = vst.msk [vmem:[%s3336_s14 + $0x50] sm:$0xff] %vm315_vm1, %v2770_v12 }
 0x520   : > { %v3078_v46 = vpop.f32.mrb[12].mxu1 }
 0x521   : > { %v2715_v48 = vadd.f32 %v3078_v46, %v4255_v49  ;;  %v2709_v50 = vpop.f32.mrb[13].mxu1 }
 0x522   : > { %v2710_v18 = vadd.f32 %v4255_v49, %v2709_v50 }
 0x523   : > { %v2757_v52 = vadd.f32 %v2741_v47, %v2715_v48 }
 0x524   : > { %v2756_v53 = vadd.f32 %v2740_v51, %v2710_v18 }
 0x525   : > { %v2773_v54 = vmax.f32 %v2757_v52, 0.0 }
 0x526   : > { %v2772_v55 = vmax.f32 %v2756_v53, 0.0 }
 0x527   : > { %2789 = vst.msk [vmem:[%s3336_s14 + $0x68] sm:$0xff] %vm315_vm1, %v2773_v54 }
 0x528   : > { %2788 = vst.msk [vmem:[%s3336_s14 + $0x60] sm:$0xff] %vm315_vm1, %v2772_v55 }
 0x52d   : > { %v3081_v56 = vpop.f32.mrb[14].mxu1 }
 0x52e   : > { %v2725_v58 = vadd.f32 %v3081_v56, %v4255_v49  ;;  %v2719_v59 = vpop.f32.mrb[15].mxu1 }
 0x52f   : > { %v2720_v63 = vadd.f32 %v4255_v49, %v2719_v59 }
 0x530   : > { %v2759_v1 = vadd.f32 %v2743_v57, %v2725_v58 }
 0x531   : > { %v2758_v60 = vadd.f32 %v2742_v61, %v2720_v63 }
 0x532   : > { %v2775_v5 = vmax.f32 %v2759_v1, 0.0 }
 0x533   : > { %v2774_v6 = vmax.f32 %v2758_v60, 0.0 }
 0x534   : > { %2791 = vst.msk [vmem:[%s3336_s14 + $0x78] sm:$0xff] %vm315_vm1, %v2775_v5 }
 0x535   : > { %2790 = vst.msk [vmem:[%s3336_s14 + $0x70] sm:$0xff] %vm315_vm1, %v2774_v6 }
 0x536 PF: > { %s15_s22 = sadd.s32 1, %s3189_s22   ;;  %s4342_s18 = smov %s3181_s20 }
 0x537   : > { %p12_p11 = scmp.ge.s32.totalorder %s15_s22, 6   ;;  %s4343_s19 = smov %s3185_s21 }
 0x538   : > { %s4344_s20 = smov %s4347_s23  ;;  %s4345_s21 = smov %s4351_s24 }
 0x539   :  { %14 = sbr.rel (!%p12_p11) target bundleno = 3 (0x3), region = 104 }

</bundles_post_ra>
